<compile_context>
chip_gen: v6e
topology: v6e:2x2x1
jax: 0.10.0
libtpu: 0.0.40
codegen_flags: <defaults>
</compile_context>

<pallas_src>
import functools

import jax
import jax.numpy as jnp
from jax import lax
from jax.experimental import pallas as pl
from jax.experimental.pallas import tpu as pltpu  # noqa: F401  (TPU backend)

_NEG_BIG = -1e30


# --------------------------- fused Pallas kernel ----------------------------

def _fused_forward_kernel(x_ref, adj_ref, gid_ref, member_ref, same_ref,
                          w1_ref, b1_ref, p1_ref,
                          w2_ref, b2_ref, p2_ref,
                          w3_ref, b3_ref, p3_ref,
                          hw1_ref, hb1_ref, hw2_ref, hb2_ref, hw3_ref, hb3_ref,
                          o_ref, *, ratio, num_graphs):
    """Whole model forward in one VMEM-resident kernel.

    Nodes are masked, never compacted; `valid` marks live nodes, `adj[dst, src]`
    holds edge multiplicities (zero rows/cols for dead nodes).
    """
    n = x_ref.shape[0]
    c = w1_ref.shape[1]

    # ---- shared constants, hoisted once for all three layers ---------------
    row_i = lax.broadcasted_iota(jnp.int32, (n, n), 0)
    col_j = lax.broadcasted_iota(jnp.int32, (n, n), 1)
    eye = row_i == col_j
    gid = gid_ref[...]                  # (n, 1) graph id per node (f32)
    member = member_ref[...]            # (G, n) graph membership
    same = same_ref[...]                # (n, n) same-graph mask

    def to_row(col):                    # (n,1) -> (1,n) without a transpose op
        return jnp.sum(jnp.where(eye, col, 0.0), axis=0, keepdims=True)

    def layer(x, adj, valid, w_ref, b_ref, p_ref):
        # GraphConv + ReLU: relu((A@X) @ W_rel + X @ W_root + b).
        # w_ref holds [W_rel ; W_root]; static ref slices are free.
        agg = jnp.dot(adj, x, preferred_element_type=jnp.float32)
        h = (jnp.dot(agg, w_ref[0:c, :], preferred_element_type=jnp.float32)
             + jnp.dot(x, w_ref[c:, :], preferred_element_type=jnp.float32))
        h = jnp.maximum(h + b_ref[...], 0.0) * valid        # mask bias leak on dead nodes

        # TopKPooling: score = tanh(h @ p/||p||); keep top ceil(ratio * n_g) per graph.
        score = jnp.tanh(jnp.sum(h * p_ref[...], axis=1, keepdims=True))   # (n, 1)
        s_row = to_row(score)
        v_row = to_row(valid)
        # node j "beats" node i if higher score (ties broken by lower index)
        beats = jnp.where((s_row > score) | ((s_row == score) & (col_j < row_i)), 1.0, 0.0)
        rank = jnp.sum(same * v_row * beats, axis=1, keepdims=True)        # (n, 1)
        n_g = jnp.sum(same * v_row, axis=1, keepdims=True)                 # valid nodes/graph
        k_g = jnp.ceil(ratio * n_g - 1e-4)                                 # ceil(ratio * n_g)
        keep = jnp.where((rank < k_g) & (valid > 0.0), 1.0, 0.0)           # (n, 1)
        keep_row = to_row(keep)

        x_pool = h * score * keep                                          # gated kept features
        adj_new = adj * keep * keep_row                                    # drop removed nodes' edges

        # readout: [global_max | global_mean] over kept nodes (kept as two (G,C) halves)
        cnt = jnp.sum(member * keep_row, axis=1, keepdims=True)            # (G, 1)
        summed = jnp.dot(member, x_pool, preferred_element_type=jnp.float32)
        mean = summed * pl.reciprocal(jnp.maximum(cnt, 1.0), approx=True)  # (G, C)
        maxs = []
        for gi in range(num_graphs):                                       # tiny static loop, 2-D only
            sel = (gid == jnp.float32(gi)) & (keep > 0.0)                  # (n, 1)
            mg = jnp.max(jnp.where(sel, x_pool, _NEG_BIG), axis=0, keepdims=True)
            maxs.append(jnp.where(cnt[gi:gi + 1, :] > 0.0, mg, 0.0))       # empty-graph guard
        maxp = jnp.concatenate(maxs, axis=0)                               # (G, C)
        return x_pool, adj_new, keep, maxp, mean

    x = x_ref[...]                      # (n, C) padded features
    adj = adj_ref[...]                  # (n, n)
    valid = jnp.ones((n, 1), jnp.float32)

    x, adj, valid, mx1, mn1 = layer(x, adj, valid, w1_ref, b1_ref, p1_ref)
    x, adj, valid, mx2, mn2 = layer(x, adj, valid, w2_ref, b2_ref, p2_ref)
    _, _, _, mx3, mn3 = layer(x, adj, valid, w3_ref, b3_ref, p3_ref)

    max_sum = mx1 + mx2 + mx3           # (G, C)
    mean_sum = mn1 + mn2 + mn3          # (G, C)

    # MLP head: Linear(+folded BN)+ReLU -> Linear(+folded BN)+ReLU -> Linear -> softmax.
    # lin1's 2C-wide input is split so [max | mean] never needs a lane-dim concat.
    h1 = jnp.maximum(
        jnp.dot(max_sum, hw1_ref[0:c, :], preferred_element_type=jnp.float32)
        + jnp.dot(mean_sum, hw1_ref[c:, :], preferred_element_type=jnp.float32)
        + hb1_ref[...], 0.0)
    # TODO(synk): nn.Dropout is identity in eval mode; train-mode RNG dropout not implemented.
    h2 = jnp.maximum(jnp.dot(h1, hw2_ref[...], preferred_element_type=jnp.float32) + hb2_ref[...], 0.0)
    logits = jnp.dot(h2, hw3_ref[...], preferred_element_type=jnp.float32) + hb3_ref[...]
    m = jnp.max(logits, axis=1, keepdims=True)
    e = jnp.exp(logits - m)
    o_ref[...] = e / jnp.sum(e, axis=1, keepdims=True)


def fused_forward(x, adj, gidf, member, same, layer_params, head_params, *, ratio, num_graphs):
    (w1, b1, p1), (w2, b2, p2), (w3, b3, p3) = layer_params
    hw1, hb1, hw2, hb2, hw3, hb3 = head_params
    return pl.pallas_call(
        functools.partial(_fused_forward_kernel, ratio=float(ratio), num_graphs=int(num_graphs)),
        out_shape=jax.ShapeDtypeStruct((num_graphs, 2), jnp.float32),
    )(x, adj, gidf, member, same,
      w1, b1, p1, w2, b2, p2, w3, b3, p3,
      hw1, hb1, hw2, hb2, hw3, hb3)


# ----------------------- host-side parameter helpers ------------------------

def fused_graphconv_weight(w_rel, w_root, bias, pad_in_to):
    """Stack [W_rel ; W_root] (zero-padding the input dim so every layer shares one shape)."""
    cin, cout = w_rel.shape
    if pad_in_to > cin:
        z = jnp.zeros((pad_in_to - cin, cout), jnp.float32)
        w_rel = jnp.concatenate([w_rel, z], axis=0)
        w_root = jnp.concatenate([w_root, z], axis=0)
    return jnp.concatenate([w_rel, w_root], axis=0), bias.reshape(1, -1)


def fold_bn_into_linear(w, b, gamma, beta, running_mean, running_var, eps=1e-5):
    """Eval-mode BatchNorm1d folded into a preceding Linear: y = x @ w' + b'."""
    scale = gamma * lax.rsqrt(running_var + eps)
    return w * scale[None, :], (b - running_mean) * scale + beta


# ------------------------------ full forward --------------------------------

@functools.partial(jax.jit, static_argnames=("num_graphs",))
def model_forward(x, edge_index, batch, layer_params, head_params, *, num_graphs):
    n, f_in = x.shape
    c_pad = layer_params[0][0].shape[0] // 2          # fused weight is (2*C, C)
    x = x.astype(jnp.float32)
    if f_in < c_pad:                                  # pad features once so all layers match
        x = jnp.concatenate([x, jnp.zeros((n, c_pad - f_in), jnp.float32)], axis=1)

    src, dst = edge_index[0], edge_index[1]
    adj = jnp.zeros((n, n), jnp.float32).at[dst, src].add(1.0)     # A[dst, src] += 1 (sum aggr)
    gid_ids = jnp.arange(num_graphs, dtype=batch.dtype)
    member = (batch[None, :] == gid_ids[:, None]).astype(jnp.float32)   # (G, N)
    same = (batch[None, :] == batch[:, None]).astype(jnp.float32)       # (N, N)
    gidf = batch.astype(jnp.float32).reshape(n, 1)                      # (N, 1)

    return fused_forward(x, adj, gidf, member, same, layer_params, head_params,
                         ratio=0.8, num_graphs=num_graphs)


# ---------------------------------- main -------------------------------------

if __name__ == "__main__":
    key = jax.random.PRNGKey(0)
    keys = jax.random.split(key, 20)

    G, nodes_per_graph, F_in, C = 3, 8, 6, 128
    N = G * nodes_per_graph
    batch = jnp.repeat(jnp.arange(G, dtype=jnp.int32), nodes_per_graph)

    x = jax.random.normal(keys[0], (N, F_in), jnp.float32)
    e_local = jax.random.randint(keys[1], (2, G * 16), 0, nodes_per_graph, dtype=jnp.int32)
    offs = jnp.repeat(jnp.arange(G, dtype=jnp.int32) * nodes_per_graph, 16)
    edge_index = e_local + offs[None, :]

    def lin_init(k, fan_in, fan_out):
        return 0.1 * jax.random.normal(k, (fan_in, fan_out), jnp.float32)

    # GraphConv params (W_rel acts on A@X, W_root on X) -> fused [W_rel ; W_root]
    conv1_w, conv1_b = fused_graphconv_weight(lin_init(keys[2], F_in, C), lin_init(keys[3], F_in, C),
                                              jnp.zeros((C,), jnp.float32), C)
    conv2_w, conv2_b = fused_graphconv_weight(lin_init(keys[4], C, C), lin_init(keys[5], C, C),
                                              jnp.zeros((C,), jnp.float32), C)
    conv3_w, conv3_b = fused_graphconv_weight(lin_init(keys[6], C, C), lin_init(keys[7], C, C),
                                              jnp.zeros((C,), jnp.float32), C)

    def pool_p(k):                                     # pre-normalized TopKPooling score vector
        p = jax.random.normal(k, (C,), jnp.float32)
        return (p / jnp.linalg.norm(p)).reshape(1, -1)

    layer_params = (
        (conv1_w, conv1_b, pool_p(keys[8])),
        (conv2_w, conv2_b, pool_p(keys[9])),
        (conv3_w, conv3_b, pool_p(keys[10])),
    )

    # MLP head; eval-mode BatchNorm (default running stats: mean=0, var=1) folded into lin1/lin2.
    w1, b1 = lin_init(keys[11], 2 * C, 128), 0.01 * jax.random.normal(keys[12], (128,), jnp.float32)
    w2, b2 = lin_init(keys[13], 128, 64), 0.01 * jax.random.normal(keys[14], (64,), jnp.float32)
    w3, b3 = lin_init(keys[15], 64, 2), 0.01 * jax.random.normal(keys[16], (2,), jnp.float32)
    g1, be1 = jnp.ones((128,), jnp.float32), jnp.zeros((128,), jnp.float32)
    g2, be2 = jnp.ones((64,), jnp.float32), jnp.zeros((64,), jnp.float32)
    rm1, rv1 = jnp.zeros((128,), jnp.float32), jnp.ones((128,), jnp.float32)
    rm2, rv2 = jnp.zeros((64,), jnp.float32), jnp.ones((64,), jnp.float32)

    w1f, b1f = fold_bn_into_linear(w1, b1, g1, be1, rm1, rv1)
    w2f, b2f = fold_bn_into_linear(w2, b2, g2, be2, rm2, rv2)
    head_params = (w1f, b1f.reshape(1, -1), w2f, b2f.reshape(1, -1), w3, b3.reshape(1, -1))

    out = model_forward(x, edge_index, batch, layer_params, head_params, num_graphs=G)
    out = jax.block_until_ready(out)

    assert out.shape == (G, 2)
    assert bool(jnp.all(jnp.isfinite(out)))
    # softmax rows sum to ~1 (exact divide in the kernel -> tight tolerance)
    assert bool(jnp.all(jnp.abs(jnp.sum(out, axis=1) - 1.0) < 1e-3))
    print("KERNEL_OK")
</pallas_src>

<mosaic_0001>
module attributes {stable_mosaic.version = 11 : i64} {
  func.func private @main(%arg0: i32) attributes {dimension_semantics = [#tpu.dimension_semantics<core_parallel>], iteration_bounds = array<i64: 2>, tpu.core_type = #tpu.core_type<sc_scalar_subcore>, window_params = []} {
    return
  }
}

module attributes {stable_mosaic.version = 11 : i64} {
  func.func private @main(%arg0: i32) attributes {dimension_semantics = [#tpu.dimension_semantics<core_parallel>], iteration_bounds = array<i64: 2>, tpu.core_type = #tpu.core_type<sc_scalar_subcore>, window_params = []} {
    return
  }
}

module attributes {stable_mosaic.version = 11 : i64} {
  func.func @_fused_forward_kernel(%arg0: memref<24x128xf32, #tpu.memory_space<vmem>>, %arg1: memref<24x24xf32, #tpu.memory_space<vmem>>, %arg2: memref<24x1xf32, #tpu.memory_space<vmem>>, %arg3: memref<3x24xf32, #tpu.memory_space<vmem>>, %arg4: memref<24x24xf32, #tpu.memory_space<vmem>>, %arg5: memref<256x128xf32, #tpu.memory_space<vmem>>, %arg6: memref<1x128xf32, #tpu.memory_space<vmem>>, %arg7: memref<1x128xf32, #tpu.memory_space<vmem>>, %arg8: memref<256x128xf32, #tpu.memory_space<vmem>>, %arg9: memref<1x128xf32, #tpu.memory_space<vmem>>, %arg10: memref<1x128xf32, #tpu.memory_space<vmem>>, %arg11: memref<256x128xf32, #tpu.memory_space<vmem>>, %arg12: memref<1x128xf32, #tpu.memory_space<vmem>>, %arg13: memref<1x128xf32, #tpu.memory_space<vmem>>, %arg14: memref<256x128xf32, #tpu.memory_space<vmem>>, %arg15: memref<1x128xf32, #tpu.memory_space<vmem>>, %arg16: memref<128x64xf32, #tpu.memory_space<vmem>>, %arg17: memref<1x64xf32, #tpu.memory_space<vmem>>, %arg18: memref<64x2xf32, #tpu.memory_space<vmem>>, %arg19: memref<1x2xf32, #tpu.memory_space<vmem>>, %arg20: memref<3x2xf32, #tpu.memory_space<vmem>>) attributes {dimension_semantics = [], scalar_prefetch = 0 : i64, scratch_operands = 0 : i64, tpu.core_type = #tpu.core_type<tc>} {
    %0 = tpu.iota {dimensions = array<i32: 0>} : vector<24x24xi32>
    %1 = tpu.iota {dimensions = array<i32: 1>} : vector<24x24xi32>
    %2 = arith.cmpi eq, %0, %1 : vector<24x24xi32>
    %c0 = arith.constant 0 : index
    %c0_0 = arith.constant 0 : index
    %3 = vector.load %arg2[%c0, %c0_0] : memref<24x1xf32, #tpu.memory_space<vmem>>, vector<24x1xf32>
    %c0_1 = arith.constant 0 : index
    %c0_2 = arith.constant 0 : index
    %4 = vector.load %arg3[%c0_1, %c0_2] : memref<3x24xf32, #tpu.memory_space<vmem>>, vector<3x24xf32>
    %c0_3 = arith.constant 0 : index
    %c0_4 = arith.constant 0 : index
    %5 = vector.load %arg4[%c0_3, %c0_4] : memref<24x24xf32, #tpu.memory_space<vmem>>, vector<24x24xf32>
    %c0_5 = arith.constant 0 : index
    %c0_6 = arith.constant 0 : index
    %6 = vector.load %arg0[%c0_5, %c0_6] : memref<24x128xf32, #tpu.memory_space<vmem>>, vector<24x128xf32>
    %c0_7 = arith.constant 0 : index
    %c0_8 = arith.constant 0 : index
    %7 = vector.load %arg1[%c0_7, %c0_8] : memref<24x24xf32, #tpu.memory_space<vmem>>, vector<24x24xf32>
    %cst = arith.constant 1.000000e+00 : f32
    %8 = vector.broadcast %cst : f32 to vector<24x1xf32>
    %cst_9 = arith.constant dense<0.000000e+00> : vector<24x128xf32>
    %9 = tpu.matmul %7, %6, %cst_9 {dimension_numbers = #tpu.dot_dimension_numbers<[1], [0], [0], [1], [0, 0, 1, 1], [], []>} : vector<24x24xf32>, vector<24x128xf32>, vector<24x128xf32> -> vector<24x128xf32>
    %c0_10 = arith.constant 0 : index
    %c0_11 = arith.constant 0 : index
    %10 = vector.load %arg5[%c0_10, %c0_11] : memref<256x128xf32, #tpu.memory_space<vmem>>, vector<128x128xf32>
    %cst_12 = arith.constant dense<0.000000e+00> : vector<24x128xf32>
    %11 = tpu.matmul %9, %10, %cst_12 {dimension_numbers = #tpu.dot_dimension_numbers<[1], [0], [0], [1], [0, 0, 1, 1], [], []>} : vector<24x128xf32>, vector<128x128xf32>, vector<24x128xf32> -> vector<24x128xf32>
    %c128 = arith.constant 128 : index
    %c0_13 = arith.constant 0 : index
    %12 = vector.load %arg5[%c128, %c0_13] : memref<256x128xf32, #tpu.memory_space<vmem>>, vector<128x128xf32>
    %cst_14 = arith.constant dense<0.000000e+00> : vector<24x128xf32>
    %13 = tpu.matmul %6, %12, %cst_14 {dimension_numbers = #tpu.dot_dimension_numbers<[1], [0], [0], [1], [0, 0, 1, 1], [], []>} : vector<24x128xf32>, vector<128x128xf32>, vector<24x128xf32> -> vector<24x128xf32>
    %14 = arith.addf %11, %13 : vector<24x128xf32>
    %c0_15 = arith.constant 0 : index
    %c0_16 = arith.constant 0 : index
    %15 = vector.load %arg6[%c0_15, %c0_16] : memref<1x128xf32, #tpu.memory_space<vmem>>, vector<1x128xf32>
    %16 = vector.broadcast %15 : vector<1x128xf32> to vector<24x128xf32>
    %17 = arith.addf %14, %16 : vector<24x128xf32>
    %cst_17 = arith.constant 0.000000e+00 : f32
    %18 = vector.broadcast %cst_17 : f32 to vector<24x128xf32>
    %19 = arith.maximumf %17, %18 : vector<24x128xf32>
    %20 = vector.broadcast %8 : vector<24x1xf32> to vector<24x128xf32>
    %21 = arith.mulf %19, %20 : vector<24x128xf32>
    %c0_18 = arith.constant 0 : index
    %c0_19 = arith.constant 0 : index
    %22 = vector.load %arg7[%c0_18, %c0_19] : memref<1x128xf32, #tpu.memory_space<vmem>>, vector<1x128xf32>
    %23 = vector.broadcast %22 : vector<1x128xf32> to vector<24x128xf32>
    %24 = arith.mulf %21, %23 : vector<24x128xf32>
    %cst_20 = arith.constant dense<0.000000e+00> : vector<24xf32>
    %25 = vector.multi_reduction <add>, %24, %cst_20 [1] : vector<24x128xf32> to vector<24xf32>
    %26 = vector.shape_cast %25 : vector<24xf32> to vector<24x1xf32>
    %27 = math.tanh %26 : vector<24x1xf32>
    %cst_21 = arith.constant 0.000000e+00 : f32
    %28 = vector.shape_cast %27 : vector<24x1xf32> to vector<24x1xf32>
    %29 = vector.broadcast %28 : vector<24x1xf32> to vector<24x24xf32>
    %30 = vector.broadcast %cst_21 : f32 to vector<24x24xf32>
    %31 = arith.select %2, %29, %30 : vector<24x24xi1>, vector<24x24xf32>
    %cst_22 = arith.constant dense<0.000000e+00> : vector<24xf32>
    %32 = vector.multi_reduction <add>, %31, %cst_22 [0] : vector<24x24xf32> to vector<24xf32>
    %33 = vector.shape_cast %32 : vector<24xf32> to vector<1x24xf32>
    %cst_23 = arith.constant 0.000000e+00 : f32
    %34 = vector.shape_cast %8 : vector<24x1xf32> to vector<24x1xf32>
    %35 = vector.broadcast %34 : vector<24x1xf32> to vector<24x24xf32>
    %36 = vector.broadcast %cst_23 : f32 to vector<24x24xf32>
    %37 = arith.select %2, %35, %36 : vector<24x24xi1>, vector<24x24xf32>
    %cst_24 = arith.constant dense<0.000000e+00> : vector<24xf32>
    %38 = vector.multi_reduction <add>, %37, %cst_24 [0] : vector<24x24xf32> to vector<24xf32>
    %39 = vector.shape_cast %38 : vector<24xf32> to vector<1x24xf32>
    %40 = vector.broadcast %33 : vector<1x24xf32> to vector<24x24xf32>
    %41 = vector.broadcast %27 : vector<24x1xf32> to vector<24x24xf32>
    %42 = arith.cmpf ogt, %40, %41 : vector<24x24xf32>
    %43 = vector.broadcast %33 : vector<1x24xf32> to vector<24x24xf32>
    %44 = vector.broadcast %27 : vector<24x1xf32> to vector<24x24xf32>
    %45 = arith.cmpf oeq, %43, %44 : vector<24x24xf32>
    %46 = arith.cmpi slt, %1, %0 : vector<24x24xi32>
    %47 = arith.andi %45, %46 : vector<24x24xi1>
    %48 = arith.ori %42, %47 : vector<24x24xi1>
    %cst_25 = arith.constant 1.000000e+00 : f32
    %cst_26 = arith.constant 0.000000e+00 : f32
    %49 = vector.broadcast %cst_25 : f32 to vector<24x24xf32>
    %50 = vector.broadcast %cst_26 : f32 to vector<24x24xf32>
    %51 = arith.select %48, %49, %50 : vector<24x24xi1>, vector<24x24xf32>
    %52 = vector.broadcast %39 : vector<1x24xf32> to vector<24x24xf32>
    %53 = arith.mulf %5, %52 : vector<24x24xf32>
    %54 = arith.mulf %53, %51 : vector<24x24xf32>
    %cst_27 = arith.constant dense<0.000000e+00> : vector<24xf32>
    %55 = vector.multi_reduction <add>, %54, %cst_27 [1] : vector<24x24xf32> to vector<24xf32>
    %56 = vector.shape_cast %55 : vector<24xf32> to vector<24x1xf32>
    %57 = vector.broadcast %39 : vector<1x24xf32> to vector<24x24xf32>
    %58 = arith.mulf %5, %57 : vector<24x24xf32>
    %cst_28 = arith.constant dense<0.000000e+00> : vector<24xf32>
    %59 = vector.multi_reduction <add>, %58, %cst_28 [1] : vector<24x24xf32> to vector<24xf32>
    %60 = vector.shape_cast %59 : vector<24xf32> to vector<24x1xf32>
    %cst_29 = arith.constant 8.000000e-01 : f32
    %61 = vector.broadcast %cst_29 : f32 to vector<24x1xf32>
    %62 = arith.mulf %61, %60 : vector<24x1xf32>
    %cst_30 = arith.constant 9.99999974E-5 : f32
    %63 = vector.broadcast %cst_30 : f32 to vector<24x1xf32>
    %64 = arith.subf %62, %63 : vector<24x1xf32>
    %65 = math.ceil %64 : vector<24x1xf32>
    %66 = arith.cmpf olt, %56, %65 : vector<24x1xf32>
    %cst_31 = arith.constant 0.000000e+00 : f32
    %67 = vector.broadcast %cst_31 : f32 to vector<24x1xf32>
    %68 = arith.cmpf ogt, %8, %67 : vector<24x1xf32>
    %69 = arith.andi %66, %68 : vector<24x1xi1>
    %cst_32 = arith.constant 1.000000e+00 : f32
    %cst_33 = arith.constant 0.000000e+00 : f32
    %70 = vector.broadcast %cst_32 : f32 to vector<24x1xf32>
    %71 = vector.broadcast %cst_33 : f32 to vector<24x1xf32>
    %72 = arith.select %69, %70, %71 : vector<24x1xi1>, vector<24x1xf32>
    %cst_34 = arith.constant 0.000000e+00 : f32
    %73 = vector.shape_cast %72 : vector<24x1xf32> to vector<24x1xf32>
    %74 = vector.broadcast %73 : vector<24x1xf32> to vector<24x24xf32>
    %75 = vector.broadcast %cst_34 : f32 to vector<24x24xf32>
    %76 = arith.select %2, %74, %75 : vector<24x24xi1>, vector<24x24xf32>
    %cst_35 = arith.constant dense<0.000000e+00> : vector<24xf32>
    %77 = vector.multi_reduction <add>, %76, %cst_35 [0] : vector<24x24xf32> to vector<24xf32>
    %78 = vector.shape_cast %77 : vector<24xf32> to vector<1x24xf32>
    %79 = vector.broadcast %27 : vector<24x1xf32> to vector<24x128xf32>
    %80 = arith.mulf %21, %79 : vector<24x128xf32>
    %81 = vector.broadcast %72 : vector<24x1xf32> to vector<24x128xf32>
    %82 = arith.mulf %80, %81 : vector<24x128xf32>
    %83 = vector.broadcast %72 : vector<24x1xf32> to vector<24x24xf32>
    %84 = arith.mulf %7, %83 : vector<24x24xf32>
    %85 = vector.broadcast %78 : vector<1x24xf32> to vector<24x24xf32>
    %86 = arith.mulf %84, %85 : vector<24x24xf32>
    %87 = vector.broadcast %78 : vector<1x24xf32> to vector<3x24xf32>
    %88 = arith.mulf %4, %87 : vector<3x24xf32>
    %cst_36 = arith.constant dense<0.000000e+00> : vector<3xf32>
    %89 = vector.multi_reduction <add>, %88, %cst_36 [1] : vector<3x24xf32> to vector<3xf32>
    %90 = vector.shape_cast %89 : vector<3xf32> to vector<3x1xf32>
    %cst_37 = arith.constant dense<0.000000e+00> : vector<3x128xf32>
    %91 = tpu.matmul %4, %82, %cst_37 {dimension_numbers = #tpu.dot_dimension_numbers<[1], [0], [0], [1], [0, 0, 1, 1], [], []>} : vector<3x24xf32>, vector<24x128xf32>, vector<3x128xf32> -> vector<3x128xf32>
    %cst_38 = arith.constant 1.000000e+00 : f32
    %92 = vector.broadcast %cst_38 : f32 to vector<3x1xf32>
    %93 = arith.maximumf %90, %92 : vector<3x1xf32>
    %94 = tpu.reciprocal %93 {approx = true} : vector<3x1xf32> -> vector<3x1xf32>
    %95 = vector.broadcast %94 : vector<3x1xf32> to vector<3x128xf32>
    %96 = arith.mulf %91, %95 : vector<3x128xf32>
    %cst_39 = arith.constant 0.000000e+00 : f32
    %97 = vector.broadcast %cst_39 : f32 to vector<24x1xf32>
    %98 = arith.cmpf oeq, %3, %97 : vector<24x1xf32>
    %cst_40 = arith.constant 0.000000e+00 : f32
    %99 = vector.broadcast %cst_40 : f32 to vector<24x1xf32>
    %100 = arith.cmpf ogt, %72, %99 : vector<24x1xf32>
    %101 = arith.andi %98, %100 : vector<24x1xi1>
    %cst_41 = arith.constant -1.000000e+30 : f32
    %102 = vector.shape_cast %101 : vector<24x1xi1> to vector<24x1xi1>
    %103 = vector.broadcast %102 : vector<24x1xi1> to vector<24x128xi1>
    %104 = vector.broadcast %cst_41 : f32 to vector<24x128xf32>
    %105 = arith.select %103, %82, %104 : vector<24x128xi1>, vector<24x128xf32>
    %cst_42 = arith.constant dense<0xFF800000> : vector<128xf32>
    %106 = vector.multi_reduction <maximumf>, %105, %cst_42 [0] : vector<24x128xf32> to vector<128xf32>
    %107 = vector.shape_cast %106 : vector<128xf32> to vector<1x128xf32>
    %108 = vector.extract_strided_slice %90 {offsets = [0, 0], sizes = [1, 1], strides = [1, 1]} : vector<3x1xf32> to vector<1x1xf32>
    %cst_43 = arith.constant 0.000000e+00 : f32
    %109 = vector.broadcast %cst_43 : f32 to vector<1x1xf32>
    %110 = arith.cmpf ogt, %108, %109 : vector<1x1xf32>
    %cst_44 = arith.constant 0.000000e+00 : f32
    %111 = vector.shape_cast %110 : vector<1x1xi1> to vector<1x1xi1>
    %112 = vector.broadcast %111 : vector<1x1xi1> to vector<1x128xi1>
    %113 = vector.broadcast %cst_44 : f32 to vector<1x128xf32>
    %114 = arith.select %112, %107, %113 : vector<1x128xi1>, vector<1x128xf32>
    %cst_45 = arith.constant 1.000000e+00 : f32
    %115 = vector.broadcast %cst_45 : f32 to vector<24x1xf32>
    %116 = arith.cmpf oeq, %3, %115 : vector<24x1xf32>
    %cst_46 = arith.constant 0.000000e+00 : f32
    %117 = vector.broadcast %cst_46 : f32 to vector<24x1xf32>
    %118 = arith.cmpf ogt, %72, %117 : vector<24x1xf32>
    %119 = arith.andi %116, %118 : vector<24x1xi1>
    %cst_47 = arith.constant -1.000000e+30 : f32
    %120 = vector.shape_cast %119 : vector<24x1xi1> to vector<24x1xi1>
    %121 = vector.broadcast %120 : vector<24x1xi1> to vector<24x128xi1>
    %122 = vector.broadcast %cst_47 : f32 to vector<24x128xf32>
    %123 = arith.select %121, %82, %122 : vector<24x128xi1>, vector<24x128xf32>
    %cst_48 = arith.constant dense<0xFF800000> : vector<128xf32>
    %124 = vector.multi_reduction <maximumf>, %123, %cst_48 [0] : vector<24x128xf32> to vector<128xf32>
    %125 = vector.shape_cast %124 : vector<128xf32> to vector<1x128xf32>
    %126 = vector.extract_strided_slice %90 {offsets = [1, 0], sizes = [1, 1], strides = [1, 1]} : vector<3x1xf32> to vector<1x1xf32>
    %cst_49 = arith.constant 0.000000e+00 : f32
    %127 = vector.broadcast %cst_49 : f32 to vector<1x1xf32>
    %128 = arith.cmpf ogt, %126, %127 : vector<1x1xf32>
    %cst_50 = arith.constant 0.000000e+00 : f32
    %129 = vector.shape_cast %128 : vector<1x1xi1> to vector<1x1xi1>
    %130 = vector.broadcast %129 : vector<1x1xi1> to vector<1x128xi1>
    %131 = vector.broadcast %cst_50 : f32 to vector<1x128xf32>
    %132 = arith.select %130, %125, %131 : vector<1x128xi1>, vector<1x128xf32>
    %cst_51 = arith.constant 2.000000e+00 : f32
    %133 = vector.broadcast %cst_51 : f32 to vector<24x1xf32>
    %134 = arith.cmpf oeq, %3, %133 : vector<24x1xf32>
    %cst_52 = arith.constant 0.000000e+00 : f32
    %135 = vector.broadcast %cst_52 : f32 to vector<24x1xf32>
    %136 = arith.cmpf ogt, %72, %135 : vector<24x1xf32>
    %137 = arith.andi %134, %136 : vector<24x1xi1>
    %cst_53 = arith.constant -1.000000e+30 : f32
    %138 = vector.shape_cast %137 : vector<24x1xi1> to vector<24x1xi1>
    %139 = vector.broadcast %138 : vector<24x1xi1> to vector<24x128xi1>
    %140 = vector.broadcast %cst_53 : f32 to vector<24x128xf32>
    %141 = arith.select %139, %82, %140 : vector<24x128xi1>, vector<24x128xf32>
    %cst_54 = arith.constant dense<0xFF800000> : vector<128xf32>
    %142 = vector.multi_reduction <maximumf>, %141, %cst_54 [0] : vector<24x128xf32> to vector<128xf32>
    %143 = vector.shape_cast %142 : vector<128xf32> to vector<1x128xf32>
    %144 = vector.extract_strided_slice %90 {offsets = [2, 0], sizes = [1, 1], strides = [1, 1]} : vector<3x1xf32> to vector<1x1xf32>
    %cst_55 = arith.constant 0.000000e+00 : f32
    %145 = vector.broadcast %cst_55 : f32 to vector<1x1xf32>
    %146 = arith.cmpf ogt, %144, %145 : vector<1x1xf32>
    %cst_56 = arith.constant 0.000000e+00 : f32
    %147 = vector.shape_cast %146 : vector<1x1xi1> to vector<1x1xi1>
    %148 = vector.broadcast %147 : vector<1x1xi1> to vector<1x128xi1>
    %149 = vector.broadcast %cst_56 : f32 to vector<1x128xf32>
    %150 = arith.select %148, %143, %149 : vector<1x128xi1>, vector<1x128xf32>
    %151 = tpu.concatenate %114, %132, %150 in 0 : vector<1x128xf32>, vector<1x128xf32>, vector<1x128xf32> -> vector<3x128xf32>
    %cst_57 = arith.constant dense<0.000000e+00> : vector<24x128xf32>
    %152 = tpu.matmul %86, %82, %cst_57 {dimension_numbers = #tpu.dot_dimension_numbers<[1], [0], [0], [1], [0, 0, 1, 1], [], []>} : vector<24x24xf32>, vector<24x128xf32>, vector<24x128xf32> -> vector<24x128xf32>
    %c0_58 = arith.constant 0 : index
    %c0_59 = arith.constant 0 : index
    %153 = vector.load %arg8[%c0_58, %c0_59] : memref<256x128xf32, #tpu.memory_space<vmem>>, vector<128x128xf32>
    %cst_60 = arith.constant dense<0.000000e+00> : vector<24x128xf32>
    %154 = tpu.matmul %152, %153, %cst_60 {dimension_numbers = #tpu.dot_dimension_numbers<[1], [0], [0], [1], [0, 0, 1, 1], [], []>} : vector<24x128xf32>, vector<128x128xf32>, vector<24x128xf32> -> vector<24x128xf32>
    %c128_61 = arith.constant 128 : index
    %c0_62 = arith.constant 0 : index
    %155 = vector.load %arg8[%c128_61, %c0_62] : memref<256x128xf32, #tpu.memory_space<vmem>>, vector<128x128xf32>
    %cst_63 = arith.constant dense<0.000000e+00> : vector<24x128xf32>
    %156 = tpu.matmul %82, %155, %cst_63 {dimension_numbers = #tpu.dot_dimension_numbers<[1], [0], [0], [1], [0, 0, 1, 1], [], []>} : vector<24x128xf32>, vector<128x128xf32>, vector<24x128xf32> -> vector<24x128xf32>
    %157 = arith.addf %154, %156 : vector<24x128xf32>
    %c0_64 = arith.constant 0 : index
    %c0_65 = arith.constant 0 : index
    %158 = vector.load %arg9[%c0_64, %c0_65] : memref<1x128xf32, #tpu.memory_space<vmem>>, vector<1x128xf32>
    %159 = vector.broadcast %158 : vector<1x128xf32> to vector<24x128xf32>
    %160 = arith.addf %157, %159 : vector<24x128xf32>
    %cst_66 = arith.constant 0.000000e+00 : f32
    %161 = vector.broadcast %cst_66 : f32 to vector<24x128xf32>
    %162 = arith.maximumf %160, %161 : vector<24x128xf32>
    %163 = vector.broadcast %72 : vector<24x1xf32> to vector<24x128xf32>
    %164 = arith.mulf %162, %163 : vector<24x128xf32>
    %c0_67 = arith.constant 0 : index
    %c0_68 = arith.constant 0 : index
    %165 = vector.load %arg10[%c0_67, %c0_68] : memref<1x128xf32, #tpu.memory_space<vmem>>, vector<1x128xf32>
    %166 = vector.broadcast %165 : vector<1x128xf32> to vector<24x128xf32>
    %167 = arith.mulf %164, %166 : vector<24x128xf32>
    %cst_69 = arith.constant dense<0.000000e+00> : vector<24xf32>
    %168 = vector.multi_reduction <add>, %167, %cst_69 [1] : vector<24x128xf32> to vector<24xf32>
    %169 = vector.shape_cast %168 : vector<24xf32> to vector<24x1xf32>
    %170 = math.tanh %169 : vector<24x1xf32>
    %cst_70 = arith.constant 0.000000e+00 : f32
    %171 = vector.shape_cast %170 : vector<24x1xf32> to vector<24x1xf32>
    %172 = vector.broadcast %171 : vector<24x1xf32> to vector<24x24xf32>
    %173 = vector.broadcast %cst_70 : f32 to vector<24x24xf32>
    %174 = arith.select %2, %172, %173 : vector<24x24xi1>, vector<24x24xf32>
    %cst_71 = arith.constant dense<0.000000e+00> : vector<24xf32>
    %175 = vector.multi_reduction <add>, %174, %cst_71 [0] : vector<24x24xf32> to vector<24xf32>
    %176 = vector.shape_cast %175 : vector<24xf32> to vector<1x24xf32>
    %cst_72 = arith.constant 0.000000e+00 : f32
    %177 = vector.shape_cast %72 : vector<24x1xf32> to vector<24x1xf32>
    %178 = vector.broadcast %177 : vector<24x1xf32> to vector<24x24xf32>
    %179 = vector.broadcast %cst_72 : f32 to vector<24x24xf32>
    %180 = arith.select %2, %178, %179 : vector<24x24xi1>, vector<24x24xf32>
    %cst_73 = arith.constant dense<0.000000e+00> : vector<24xf32>
    %181 = vector.multi_reduction <add>, %180, %cst_73 [0] : vector<24x24xf32> to vector<24xf32>
    %182 = vector.shape_cast %181 : vector<24xf32> to vector<1x24xf32>
    %183 = vector.broadcast %176 : vector<1x24xf32> to vector<24x24xf32>
    %184 = vector.broadcast %170 : vector<24x1xf32> to vector<24x24xf32>
    %185 = arith.cmpf ogt, %183, %184 : vector<24x24xf32>
    %186 = vector.broadcast %176 : vector<1x24xf32> to vector<24x24xf32>
    %187 = vector.broadcast %170 : vector<24x1xf32> to vector<24x24xf32>
    %188 = arith.cmpf oeq, %186, %187 : vector<24x24xf32>
    %189 = arith.cmpi slt, %1, %0 : vector<24x24xi32>
    %190 = arith.andi %188, %189 : vector<24x24xi1>
    %191 = arith.ori %185, %190 : vector<24x24xi1>
    %cst_74 = arith.constant 1.000000e+00 : f32
    %cst_75 = arith.constant 0.000000e+00 : f32
    %192 = vector.broadcast %cst_74 : f32 to vector<24x24xf32>
    %193 = vector.broadcast %cst_75 : f32 to vector<24x24xf32>
    %194 = arith.select %191, %192, %193 : vector<24x24xi1>, vector<24x24xf32>
    %195 = vector.broadcast %182 : vector<1x24xf32> to vector<24x24xf32>
    %196 = arith.mulf %5, %195 : vector<24x24xf32>
    %197 = arith.mulf %196, %194 : vector<24x24xf32>
    %cst_76 = arith.constant dense<0.000000e+00> : vector<24xf32>
    %198 = vector.multi_reduction <add>, %197, %cst_76 [1] : vector<24x24xf32> to vector<24xf32>
    %199 = vector.shape_cast %198 : vector<24xf32> to vector<24x1xf32>
    %200 = vector.broadcast %182 : vector<1x24xf32> to vector<24x24xf32>
    %201 = arith.mulf %5, %200 : vector<24x24xf32>
    %cst_77 = arith.constant dense<0.000000e+00> : vector<24xf32>
    %202 = vector.multi_reduction <add>, %201, %cst_77 [1] : vector<24x24xf32> to vector<24xf32>
    %203 = vector.shape_cast %202 : vector<24xf32> to vector<24x1xf32>
    %cst_78 = arith.constant 8.000000e-01 : f32
    %204 = vector.broadcast %cst_78 : f32 to vector<24x1xf32>
    %205 = arith.mulf %204, %203 : vector<24x1xf32>
    %cst_79 = arith.constant 9.99999974E-5 : f32
    %206 = vector.broadcast %cst_79 : f32 to vector<24x1xf32>
    %207 = arith.subf %205, %206 : vector<24x1xf32>
    %208 = math.ceil %207 : vector<24x1xf32>
    %209 = arith.cmpf olt, %199, %208 : vector<24x1xf32>
    %cst_80 = arith.constant 0.000000e+00 : f32
    %210 = vector.broadcast %cst_80 : f32 to vector<24x1xf32>
    %211 = arith.cmpf ogt, %72, %210 : vector<24x1xf32>
    %212 = arith.andi %209, %211 : vector<24x1xi1>
    %cst_81 = arith.constant 1.000000e+00 : f32
    %cst_82 = arith.constant 0.000000e+00 : f32
    %213 = vector.broadcast %cst_81 : f32 to vector<24x1xf32>
    %214 = vector.broadcast %cst_82 : f32 to vector<24x1xf32>
    %215 = arith.select %212, %213, %214 : vector<24x1xi1>, vector<24x1xf32>
    %cst_83 = arith.constant 0.000000e+00 : f32
    %216 = vector.shape_cast %215 : vector<24x1xf32> to vector<24x1xf32>
    %217 = vector.broadcast %216 : vector<24x1xf32> to vector<24x24xf32>
    %218 = vector.broadcast %cst_83 : f32 to vector<24x24xf32>
    %219 = arith.select %2, %217, %218 : vector<24x24xi1>, vector<24x24xf32>
    %cst_84 = arith.constant dense<0.000000e+00> : vector<24xf32>
    %220 = vector.multi_reduction <add>, %219, %cst_84 [0] : vector<24x24xf32> to vector<24xf32>
    %221 = vector.shape_cast %220 : vector<24xf32> to vector<1x24xf32>
    %222 = vector.broadcast %170 : vector<24x1xf32> to vector<24x128xf32>
    %223 = arith.mulf %164, %222 : vector<24x128xf32>
    %224 = vector.broadcast %215 : vector<24x1xf32> to vector<24x128xf32>
    %225 = arith.mulf %223, %224 : vector<24x128xf32>
    %226 = vector.broadcast %215 : vector<24x1xf32> to vector<24x24xf32>
    %227 = arith.mulf %86, %226 : vector<24x24xf32>
    %228 = vector.broadcast %221 : vector<1x24xf32> to vector<24x24xf32>
    %229 = arith.mulf %227, %228 : vector<24x24xf32>
    %230 = vector.broadcast %221 : vector<1x24xf32> to vector<3x24xf32>
    %231 = arith.mulf %4, %230 : vector<3x24xf32>
    %cst_85 = arith.constant dense<0.000000e+00> : vector<3xf32>
    %232 = vector.multi_reduction <add>, %231, %cst_85 [1] : vector<3x24xf32> to vector<3xf32>
    %233 = vector.shape_cast %232 : vector<3xf32> to vector<3x1xf32>
    %cst_86 = arith.constant dense<0.000000e+00> : vector<3x128xf32>
    %234 = tpu.matmul %4, %225, %cst_86 {dimension_numbers = #tpu.dot_dimension_numbers<[1], [0], [0], [1], [0, 0, 1, 1], [], []>} : vector<3x24xf32>, vector<24x128xf32>, vector<3x128xf32> -> vector<3x128xf32>
    %cst_87 = arith.constant 1.000000e+00 : f32
    %235 = vector.broadcast %cst_87 : f32 to vector<3x1xf32>
    %236 = arith.maximumf %233, %235 : vector<3x1xf32>
    %237 = tpu.reciprocal %236 {approx = true} : vector<3x1xf32> -> vector<3x1xf32>
    %238 = vector.broadcast %237 : vector<3x1xf32> to vector<3x128xf32>
    %239 = arith.mulf %234, %238 : vector<3x128xf32>
    %cst_88 = arith.constant 0.000000e+00 : f32
    %240 = vector.broadcast %cst_88 : f32 to vector<24x1xf32>
    %241 = arith.cmpf oeq, %3, %240 : vector<24x1xf32>
    %cst_89 = arith.constant 0.000000e+00 : f32
    %242 = vector.broadcast %cst_89 : f32 to vector<24x1xf32>
    %243 = arith.cmpf ogt, %215, %242 : vector<24x1xf32>
    %244 = arith.andi %241, %243 : vector<24x1xi1>
    %cst_90 = arith.constant -1.000000e+30 : f32
    %245 = vector.shape_cast %244 : vector<24x1xi1> to vector<24x1xi1>
    %246 = vector.broadcast %245 : vector<24x1xi1> to vector<24x128xi1>
    %247 = vector.broadcast %cst_90 : f32 to vector<24x128xf32>
    %248 = arith.select %246, %225, %247 : vector<24x128xi1>, vector<24x128xf32>
    %cst_91 = arith.constant dense<0xFF800000> : vector<128xf32>
    %249 = vector.multi_reduction <maximumf>, %248, %cst_91 [0] : vector<24x128xf32> to vector<128xf32>
    %250 = vector.shape_cast %249 : vector<128xf32> to vector<1x128xf32>
    %251 = vector.extract_strided_slice %233 {offsets = [0, 0], sizes = [1, 1], strides = [1, 1]} : vector<3x1xf32> to vector<1x1xf32>
    %cst_92 = arith.constant 0.000000e+00 : f32
    %252 = vector.broadcast %cst_92 : f32 to vector<1x1xf32>
    %253 = arith.cmpf ogt, %251, %252 : vector<1x1xf32>
    %cst_93 = arith.constant 0.000000e+00 : f32
    %254 = vector.shape_cast %253 : vector<1x1xi1> to vector<1x1xi1>
    %255 = vector.broadcast %254 : vector<1x1xi1> to vector<1x128xi1>
    %256 = vector.broadcast %cst_93 : f32 to vector<1x128xf32>
    %257 = arith.select %255, %250, %256 : vector<1x128xi1>, vector<1x128xf32>
    %cst_94 = arith.constant 1.000000e+00 : f32
    %258 = vector.broadcast %cst_94 : f32 to vector<24x1xf32>
    %259 = arith.cmpf oeq, %3, %258 : vector<24x1xf32>
    %cst_95 = arith.constant 0.000000e+00 : f32
    %260 = vector.broadcast %cst_95 : f32 to vector<24x1xf32>
    %261 = arith.cmpf ogt, %215, %260 : vector<24x1xf32>
    %262 = arith.andi %259, %261 : vector<24x1xi1>
    %cst_96 = arith.constant -1.000000e+30 : f32
    %263 = vector.shape_cast %262 : vector<24x1xi1> to vector<24x1xi1>
    %264 = vector.broadcast %263 : vector<24x1xi1> to vector<24x128xi1>
    %265 = vector.broadcast %cst_96 : f32 to vector<24x128xf32>
    %266 = arith.select %264, %225, %265 : vector<24x128xi1>, vector<24x128xf32>
    %cst_97 = arith.constant dense<0xFF800000> : vector<128xf32>
    %267 = vector.multi_reduction <maximumf>, %266, %cst_97 [0] : vector<24x128xf32> to vector<128xf32>
    %268 = vector.shape_cast %267 : vector<128xf32> to vector<1x128xf32>
    %269 = vector.extract_strided_slice %233 {offsets = [1, 0], sizes = [1, 1], strides = [1, 1]} : vector<3x1xf32> to vector<1x1xf32>
    %cst_98 = arith.constant 0.000000e+00 : f32
    %270 = vector.broadcast %cst_98 : f32 to vector<1x1xf32>
    %271 = arith.cmpf ogt, %269, %270 : vector<1x1xf32>
    %cst_99 = arith.constant 0.000000e+00 : f32
    %272 = vector.shape_cast %271 : vector<1x1xi1> to vector<1x1xi1>
    %273 = vector.broadcast %272 : vector<1x1xi1> to vector<1x128xi1>
    %274 = vector.broadcast %cst_99 : f32 to vector<1x128xf32>
    %275 = arith.select %273, %268, %274 : vector<1x128xi1>, vector<1x128xf32>
    %cst_100 = arith.constant 2.000000e+00 : f32
    %276 = vector.broadcast %cst_100 : f32 to vector<24x1xf32>
    %277 = arith.cmpf oeq, %3, %276 : vector<24x1xf32>
    %cst_101 = arith.constant 0.000000e+00 : f32
    %278 = vector.broadcast %cst_101 : f32 to vector<24x1xf32>
    %279 = arith.cmpf ogt, %215, %278 : vector<24x1xf32>
    %280 = arith.andi %277, %279 : vector<24x1xi1>
    %cst_102 = arith.constant -1.000000e+30 : f32
    %281 = vector.shape_cast %280 : vector<24x1xi1> to vector<24x1xi1>
    %282 = vector.broadcast %281 : vector<24x1xi1> to vector<24x128xi1>
    %283 = vector.broadcast %cst_102 : f32 to vector<24x128xf32>
    %284 = arith.select %282, %225, %283 : vector<24x128xi1>, vector<24x128xf32>
    %cst_103 = arith.constant dense<0xFF800000> : vector<128xf32>
    %285 = vector.multi_reduction <maximumf>, %284, %cst_103 [0] : vector<24x128xf32> to vector<128xf32>
    %286 = vector.shape_cast %285 : vector<128xf32> to vector<1x128xf32>
    %287 = vector.extract_strided_slice %233 {offsets = [2, 0], sizes = [1, 1], strides = [1, 1]} : vector<3x1xf32> to vector<1x1xf32>
    %cst_104 = arith.constant 0.000000e+00 : f32
    %288 = vector.broadcast %cst_104 : f32 to vector<1x1xf32>
    %289 = arith.cmpf ogt, %287, %288 : vector<1x1xf32>
    %cst_105 = arith.constant 0.000000e+00 : f32
    %290 = vector.shape_cast %289 : vector<1x1xi1> to vector<1x1xi1>
    %291 = vector.broadcast %290 : vector<1x1xi1> to vector<1x128xi1>
    %292 = vector.broadcast %cst_105 : f32 to vector<1x128xf32>
    %293 = arith.select %291, %286, %292 : vector<1x128xi1>, vector<1x128xf32>
    %294 = tpu.concatenate %257, %275, %293 in 0 : vector<1x128xf32>, vector<1x128xf32>, vector<1x128xf32> -> vector<3x128xf32>
    %cst_106 = arith.constant dense<0.000000e+00> : vector<24x128xf32>
    %295 = tpu.matmul %229, %225, %cst_106 {dimension_numbers = #tpu.dot_dimension_numbers<[1], [0], [0], [1], [0, 0, 1, 1], [], []>} : vector<24x24xf32>, vector<24x128xf32>, vector<24x128xf32> -> vector<24x128xf32>
    %c0_107 = arith.constant 0 : index
    %c0_108 = arith.constant 0 : index
    %296 = vector.load %arg11[%c0_107, %c0_108] : memref<256x128xf32, #tpu.memory_space<vmem>>, vector<128x128xf32>
    %cst_109 = arith.constant dense<0.000000e+00> : vector<24x128xf32>
    %297 = tpu.matmul %295, %296, %cst_109 {dimension_numbers = #tpu.dot_dimension_numbers<[1], [0], [0], [1], [0, 0, 1, 1], [], []>} : vector<24x128xf32>, vector<128x128xf32>, vector<24x128xf32> -> vector<24x128xf32>
    %c128_110 = arith.constant 128 : index
    %c0_111 = arith.constant 0 : index
    %298 = vector.load %arg11[%c128_110, %c0_111] : memref<256x128xf32, #tpu.memory_space<vmem>>, vector<128x128xf32>
    %cst_112 = arith.constant dense<0.000000e+00> : vector<24x128xf32>
    %299 = tpu.matmul %225, %298, %cst_112 {dimension_numbers = #tpu.dot_dimension_numbers<[1], [0], [0], [1], [0, 0, 1, 1], [], []>} : vector<24x128xf32>, vector<128x128xf32>, vector<24x128xf32> -> vector<24x128xf32>
    %300 = arith.addf %297, %299 : vector<24x128xf32>
    %c0_113 = arith.constant 0 : index
    %c0_114 = arith.constant 0 : index
    %301 = vector.load %arg12[%c0_113, %c0_114] : memref<1x128xf32, #tpu.memory_space<vmem>>, vector<1x128xf32>
    %302 = vector.broadcast %301 : vector<1x128xf32> to vector<24x128xf32>
    %303 = arith.addf %300, %302 : vector<24x128xf32>
    %cst_115 = arith.constant 0.000000e+00 : f32
    %304 = vector.broadcast %cst_115 : f32 to vector<24x128xf32>
    %305 = arith.maximumf %303, %304 : vector<24x128xf32>
    %306 = vector.broadcast %215 : vector<24x1xf32> to vector<24x128xf32>
    %307 = arith.mulf %305, %306 : vector<24x128xf32>
    %c0_116 = arith.constant 0 : index
    %c0_117 = arith.constant 0 : index
    %308 = vector.load %arg13[%c0_116, %c0_117] : memref<1x128xf32, #tpu.memory_space<vmem>>, vector<1x128xf32>
    %309 = vector.broadcast %308 : vector<1x128xf32> to vector<24x128xf32>
    %310 = arith.mulf %307, %309 : vector<24x128xf32>
    %cst_118 = arith.constant dense<0.000000e+00> : vector<24xf32>
    %311 = vector.multi_reduction <add>, %310, %cst_118 [1] : vector<24x128xf32> to vector<24xf32>
    %312 = vector.shape_cast %311 : vector<24xf32> to vector<24x1xf32>
    %313 = math.tanh %312 : vector<24x1xf32>
    %cst_119 = arith.constant 0.000000e+00 : f32
    %314 = vector.shape_cast %313 : vector<24x1xf32> to vector<24x1xf32>
    %315 = vector.broadcast %314 : vector<24x1xf32> to vector<24x24xf32>
    %316 = vector.broadcast %cst_119 : f32 to vector<24x24xf32>
    %317 = arith.select %2, %315, %316 : vector<24x24xi1>, vector<24x24xf32>
    %cst_120 = arith.constant dense<0.000000e+00> : vector<24xf32>
    %318 = vector.multi_reduction <add>, %317, %cst_120 [0] : vector<24x24xf32> to vector<24xf32>
    %319 = vector.shape_cast %318 : vector<24xf32> to vector<1x24xf32>
    %cst_121 = arith.constant 0.000000e+00 : f32
    %320 = vector.shape_cast %215 : vector<24x1xf32> to vector<24x1xf32>
    %321 = vector.broadcast %320 : vector<24x1xf32> to vector<24x24xf32>
    %322 = vector.broadcast %cst_121 : f32 to vector<24x24xf32>
    %323 = arith.select %2, %321, %322 : vector<24x24xi1>, vector<24x24xf32>
    %cst_122 = arith.constant dense<0.000000e+00> : vector<24xf32>
    %324 = vector.multi_reduction <add>, %323, %cst_122 [0] : vector<24x24xf32> to vector<24xf32>
    %325 = vector.shape_cast %324 : vector<24xf32> to vector<1x24xf32>
    %326 = vector.broadcast %319 : vector<1x24xf32> to vector<24x24xf32>
    %327 = vector.broadcast %313 : vector<24x1xf32> to vector<24x24xf32>
    %328 = arith.cmpf ogt, %326, %327 : vector<24x24xf32>
    %329 = vector.broadcast %319 : vector<1x24xf32> to vector<24x24xf32>
    %330 = vector.broadcast %313 : vector<24x1xf32> to vector<24x24xf32>
    %331 = arith.cmpf oeq, %329, %330 : vector<24x24xf32>
    %332 = arith.cmpi slt, %1, %0 : vector<24x24xi32>
    %333 = arith.andi %331, %332 : vector<24x24xi1>
    %334 = arith.ori %328, %333 : vector<24x24xi1>
    %cst_123 = arith.constant 1.000000e+00 : f32
    %cst_124 = arith.constant 0.000000e+00 : f32
    %335 = vector.broadcast %cst_123 : f32 to vector<24x24xf32>
    %336 = vector.broadcast %cst_124 : f32 to vector<24x24xf32>
    %337 = arith.select %334, %335, %336 : vector<24x24xi1>, vector<24x24xf32>
    %338 = vector.broadcast %325 : vector<1x24xf32> to vector<24x24xf32>
    %339 = arith.mulf %5, %338 : vector<24x24xf32>
    %340 = arith.mulf %339, %337 : vector<24x24xf32>
    %cst_125 = arith.constant dense<0.000000e+00> : vector<24xf32>
    %341 = vector.multi_reduction <add>, %340, %cst_125 [1] : vector<24x24xf32> to vector<24xf32>
    %342 = vector.shape_cast %341 : vector<24xf32> to vector<24x1xf32>
    %343 = vector.broadcast %325 : vector<1x24xf32> to vector<24x24xf32>
    %344 = arith.mulf %5, %343 : vector<24x24xf32>
    %cst_126 = arith.constant dense<0.000000e+00> : vector<24xf32>
    %345 = vector.multi_reduction <add>, %344, %cst_126 [1] : vector<24x24xf32> to vector<24xf32>
    %346 = vector.shape_cast %345 : vector<24xf32> to vector<24x1xf32>
    %cst_127 = arith.constant 8.000000e-01 : f32
    %347 = vector.broadcast %cst_127 : f32 to vector<24x1xf32>
    %348 = arith.mulf %347, %346 : vector<24x1xf32>
    %cst_128 = arith.constant 9.99999974E-5 : f32
    %349 = vector.broadcast %cst_128 : f32 to vector<24x1xf32>
    %350 = arith.subf %348, %349 : vector<24x1xf32>
    %351 = math.ceil %350 : vector<24x1xf32>
    %352 = arith.cmpf olt, %342, %351 : vector<24x1xf32>
    %cst_129 = arith.constant 0.000000e+00 : f32
    %353 = vector.broadcast %cst_129 : f32 to vector<24x1xf32>
    %354 = arith.cmpf ogt, %215, %353 : vector<24x1xf32>
    %355 = arith.andi %352, %354 : vector<24x1xi1>
    %cst_130 = arith.constant 1.000000e+00 : f32
    %cst_131 = arith.constant 0.000000e+00 : f32
    %356 = vector.broadcast %cst_130 : f32 to vector<24x1xf32>
    %357 = vector.broadcast %cst_131 : f32 to vector<24x1xf32>
    %358 = arith.select %355, %356, %357 : vector<24x1xi1>, vector<24x1xf32>
    %cst_132 = arith.constant 0.000000e+00 : f32
    %359 = vector.shape_cast %358 : vector<24x1xf32> to vector<24x1xf32>
    %360 = vector.broadcast %359 : vector<24x1xf32> to vector<24x24xf32>
    %361 = vector.broadcast %cst_132 : f32 to vector<24x24xf32>
    %362 = arith.select %2, %360, %361 : vector<24x24xi1>, vector<24x24xf32>
    %cst_133 = arith.constant dense<0.000000e+00> : vector<24xf32>
    %363 = vector.multi_reduction <add>, %362, %cst_133 [0] : vector<24x24xf32> to vector<24xf32>
    %364 = vector.shape_cast %363 : vector<24xf32> to vector<1x24xf32>
    %365 = vector.broadcast %313 : vector<24x1xf32> to vector<24x128xf32>
    %366 = arith.mulf %307, %365 : vector<24x128xf32>
    %367 = vector.broadcast %358 : vector<24x1xf32> to vector<24x128xf32>
    %368 = arith.mulf %366, %367 : vector<24x128xf32>
    %369 = vector.broadcast %364 : vector<1x24xf32> to vector<3x24xf32>
    %370 = arith.mulf %4, %369 : vector<3x24xf32>
    %cst_134 = arith.constant dense<0.000000e+00> : vector<3xf32>
    %371 = vector.multi_reduction <add>, %370, %cst_134 [1] : vector<3x24xf32> to vector<3xf32>
    %372 = vector.shape_cast %371 : vector<3xf32> to vector<3x1xf32>
    %cst_135 = arith.constant dense<0.000000e+00> : vector<3x128xf32>
    %373 = tpu.matmul %4, %368, %cst_135 {dimension_numbers = #tpu.dot_dimension_numbers<[1], [0], [0], [1], [0, 0, 1, 1], [], []>} : vector<3x24xf32>, vector<24x128xf32>, vector<3x128xf32> -> vector<3x128xf32>
    %cst_136 = arith.constant 1.000000e+00 : f32
    %374 = vector.broadcast %cst_136 : f32 to vector<3x1xf32>
    %375 = arith.maximumf %372, %374 : vector<3x1xf32>
    %376 = tpu.reciprocal %375 {approx = true} : vector<3x1xf32> -> vector<3x1xf32>
    %377 = vector.broadcast %376 : vector<3x1xf32> to vector<3x128xf32>
    %378 = arith.mulf %373, %377 : vector<3x128xf32>
    %cst_137 = arith.constant 0.000000e+00 : f32
    %379 = vector.broadcast %cst_137 : f32 to vector<24x1xf32>
    %380 = arith.cmpf oeq, %3, %379 : vector<24x1xf32>
    %cst_138 = arith.constant 0.000000e+00 : f32
    %381 = vector.broadcast %cst_138 : f32 to vector<24x1xf32>
    %382 = arith.cmpf ogt, %358, %381 : vector<24x1xf32>
    %383 = arith.andi %380, %382 : vector<24x1xi1>
    %cst_139 = arith.constant -1.000000e+30 : f32
    %384 = vector.shape_cast %383 : vector<24x1xi1> to vector<24x1xi1>
    %385 = vector.broadcast %384 : vector<24x1xi1> to vector<24x128xi1>
    %386 = vector.broadcast %cst_139 : f32 to vector<24x128xf32>
    %387 = arith.select %385, %368, %386 : vector<24x128xi1>, vector<24x128xf32>
    %cst_140 = arith.constant dense<0xFF800000> : vector<128xf32>
    %388 = vector.multi_reduction <maximumf>, %387, %cst_140 [0] : vector<24x128xf32> to vector<128xf32>
    %389 = vector.shape_cast %388 : vector<128xf32> to vector<1x128xf32>
    %390 = vector.extract_strided_slice %372 {offsets = [0, 0], sizes = [1, 1], strides = [1, 1]} : vector<3x1xf32> to vector<1x1xf32>
    %cst_141 = arith.constant 0.000000e+00 : f32
    %391 = vector.broadcast %cst_141 : f32 to vector<1x1xf32>
    %392 = arith.cmpf ogt, %390, %391 : vector<1x1xf32>
    %cst_142 = arith.constant 0.000000e+00 : f32
    %393 = vector.shape_cast %392 : vector<1x1xi1> to vector<1x1xi1>
    %394 = vector.broadcast %393 : vector<1x1xi1> to vector<1x128xi1>
    %395 = vector.broadcast %cst_142 : f32 to vector<1x128xf32>
    %396 = arith.select %394, %389, %395 : vector<1x128xi1>, vector<1x128xf32>
    %cst_143 = arith.constant 1.000000e+00 : f32
    %397 = vector.broadcast %cst_143 : f32 to vector<24x1xf32>
    %398 = arith.cmpf oeq, %3, %397 : vector<24x1xf32>
    %cst_144 = arith.constant 0.000000e+00 : f32
    %399 = vector.broadcast %cst_144 : f32 to vector<24x1xf32>
    %400 = arith.cmpf ogt, %358, %399 : vector<24x1xf32>
    %401 = arith.andi %398, %400 : vector<24x1xi1>
    %cst_145 = arith.constant -1.000000e+30 : f32
    %402 = vector.shape_cast %401 : vector<24x1xi1> to vector<24x1xi1>
    %403 = vector.broadcast %402 : vector<24x1xi1> to vector<24x128xi1>
    %404 = vector.broadcast %cst_145 : f32 to vector<24x128xf32>
    %405 = arith.select %403, %368, %404 : vector<24x128xi1>, vector<24x128xf32>
    %cst_146 = arith.constant dense<0xFF800000> : vector<128xf32>
    %406 = vector.multi_reduction <maximumf>, %405, %cst_146 [0] : vector<24x128xf32> to vector<128xf32>
    %407 = vector.shape_cast %406 : vector<128xf32> to vector<1x128xf32>
    %408 = vector.extract_strided_slice %372 {offsets = [1, 0], sizes = [1, 1], strides = [1, 1]} : vector<3x1xf32> to vector<1x1xf32>
    %cst_147 = arith.constant 0.000000e+00 : f32
    %409 = vector.broadcast %cst_147 : f32 to vector<1x1xf32>
    %410 = arith.cmpf ogt, %408, %409 : vector<1x1xf32>
    %cst_148 = arith.constant 0.000000e+00 : f32
    %411 = vector.shape_cast %410 : vector<1x1xi1> to vector<1x1xi1>
    %412 = vector.broadcast %411 : vector<1x1xi1> to vector<1x128xi1>
    %413 = vector.broadcast %cst_148 : f32 to vector<1x128xf32>
    %414 = arith.select %412, %407, %413 : vector<1x128xi1>, vector<1x128xf32>
    %cst_149 = arith.constant 2.000000e+00 : f32
    %415 = vector.broadcast %cst_149 : f32 to vector<24x1xf32>
    %416 = arith.cmpf oeq, %3, %415 : vector<24x1xf32>
    %cst_150 = arith.constant 0.000000e+00 : f32
    %417 = vector.broadcast %cst_150 : f32 to vector<24x1xf32>
    %418 = arith.cmpf ogt, %358, %417 : vector<24x1xf32>
    %419 = arith.andi %416, %418 : vector<24x1xi1>
    %cst_151 = arith.constant -1.000000e+30 : f32
    %420 = vector.shape_cast %419 : vector<24x1xi1> to vector<24x1xi1>
    %421 = vector.broadcast %420 : vector<24x1xi1> to vector<24x128xi1>
    %422 = vector.broadcast %cst_151 : f32 to vector<24x128xf32>
    %423 = arith.select %421, %368, %422 : vector<24x128xi1>, vector<24x128xf32>
    %cst_152 = arith.constant dense<0xFF800000> : vector<128xf32>
    %424 = vector.multi_reduction <maximumf>, %423, %cst_152 [0] : vector<24x128xf32> to vector<128xf32>
    %425 = vector.shape_cast %424 : vector<128xf32> to vector<1x128xf32>
    %426 = vector.extract_strided_slice %372 {offsets = [2, 0], sizes = [1, 1], strides = [1, 1]} : vector<3x1xf32> to vector<1x1xf32>
    %cst_153 = arith.constant 0.000000e+00 : f32
    %427 = vector.broadcast %cst_153 : f32 to vector<1x1xf32>
    %428 = arith.cmpf ogt, %426, %427 : vector<1x1xf32>
    %cst_154 = arith.constant 0.000000e+00 : f32
    %429 = vector.shape_cast %428 : vector<1x1xi1> to vector<1x1xi1>
    %430 = vector.broadcast %429 : vector<1x1xi1> to vector<1x128xi1>
    %431 = vector.broadcast %cst_154 : f32 to vector<1x128xf32>
    %432 = arith.select %430, %425, %431 : vector<1x128xi1>, vector<1x128xf32>
    %433 = tpu.concatenate %396, %414, %432 in 0 : vector<1x128xf32>, vector<1x128xf32>, vector<1x128xf32> -> vector<3x128xf32>
    %434 = arith.addf %151, %294 : vector<3x128xf32>
    %435 = arith.addf %434, %433 : vector<3x128xf32>
    %436 = arith.addf %96, %239 : vector<3x128xf32>
    %437 = arith.addf %436, %378 : vector<3x128xf32>
    %c0_155 = arith.constant 0 : index
    %c0_156 = arith.constant 0 : index
    %438 = vector.load %arg14[%c0_155, %c0_156] : memref<256x128xf32, #tpu.memory_space<vmem>>, vector<128x128xf32>
    %cst_157 = arith.constant dense<0.000000e+00> : vector<3x128xf32>
    %439 = tpu.matmul %435, %438, %cst_157 {dimension_numbers = #tpu.dot_dimension_numbers<[1], [0], [0], [1], [0, 0, 1, 1], [], []>} : vector<3x128xf32>, vector<128x128xf32>, vector<3x128xf32> -> vector<3x128xf32>
    %c128_158 = arith.constant 128 : index
    %c0_159 = arith.constant 0 : index
    %440 = vector.load %arg14[%c128_158, %c0_159] : memref<256x128xf32, #tpu.memory_space<vmem>>, vector<128x128xf32>
    %cst_160 = arith.constant dense<0.000000e+00> : vector<3x128xf32>
    %441 = tpu.matmul %437, %440, %cst_160 {dimension_numbers = #tpu.dot_dimension_numbers<[1], [0], [0], [1], [0, 0, 1, 1], [], []>} : vector<3x128xf32>, vector<128x128xf32>, vector<3x128xf32> -> vector<3x128xf32>
    %442 = arith.addf %439, %441 : vector<3x128xf32>
    %c0_161 = arith.constant 0 : index
    %c0_162 = arith.constant 0 : index
    %443 = vector.load %arg15[%c0_161, %c0_162] : memref<1x128xf32, #tpu.memory_space<vmem>>, vector<1x128xf32>
    %444 = vector.broadcast %443 : vector<1x128xf32> to vector<3x128xf32>
    %445 = arith.addf %442, %444 : vector<3x128xf32>
    %cst_163 = arith.constant 0.000000e+00 : f32
    %446 = vector.broadcast %cst_163 : f32 to vector<3x128xf32>
    %447 = arith.maximumf %445, %446 : vector<3x128xf32>
    %c0_164 = arith.constant 0 : index
    %c0_165 = arith.constant 0 : index
    %448 = vector.load %arg16[%c0_164, %c0_165] : memref<128x64xf32, #tpu.memory_space<vmem>>, vector<128x64xf32>
    %cst_166 = arith.constant dense<0.000000e+00> : vector<3x64xf32>
    %449 = tpu.matmul %447, %448, %cst_166 {dimension_numbers = #tpu.dot_dimension_numbers<[1], [0], [0], [1], [0, 0, 1, 1], [], []>} : vector<3x128xf32>, vector<128x64xf32>, vector<3x64xf32> -> vector<3x64xf32>
    %c0_167 = arith.constant 0 : index
    %c0_168 = arith.constant 0 : index
    %450 = vector.load %arg17[%c0_167, %c0_168] : memref<1x64xf32, #tpu.memory_space<vmem>>, vector<1x64xf32>
    %451 = vector.broadcast %450 : vector<1x64xf32> to vector<3x64xf32>
    %452 = arith.addf %449, %451 : vector<3x64xf32>
    %cst_169 = arith.constant 0.000000e+00 : f32
    %453 = vector.broadcast %cst_169 : f32 to vector<3x64xf32>
    %454 = arith.maximumf %452, %453 : vector<3x64xf32>
    %c0_170 = arith.constant 0 : index
    %c0_171 = arith.constant 0 : index
    %455 = vector.load %arg18[%c0_170, %c0_171] : memref<64x2xf32, #tpu.memory_space<vmem>>, vector<64x2xf32>
    %cst_172 = arith.constant dense<0.000000e+00> : vector<3x2xf32>
    %456 = tpu.matmul %454, %455, %cst_172 {dimension_numbers = #tpu.dot_dimension_numbers<[1], [0], [0], [1], [0, 0, 1, 1], [], []>} : vector<3x64xf32>, vector<64x2xf32>, vector<3x2xf32> -> vector<3x2xf32>
    %c0_173 = arith.constant 0 : index
    %c0_174 = arith.constant 0 : index
    %457 = vector.load %arg19[%c0_173, %c0_174] : memref<1x2xf32, #tpu.memory_space<vmem>>, vector<1x2xf32>
    %458 = vector.broadcast %457 : vector<1x2xf32> to vector<3x2xf32>
    %459 = arith.addf %456, %458 : vector<3x2xf32>
    %cst_175 = arith.constant dense<0xFF800000> : vector<3xf32>
    %460 = vector.multi_reduction <maximumf>, %459, %cst_175 [1] : vector<3x2xf32> to vector<3xf32>
    %461 = vector.shape_cast %460 : vector<3xf32> to vector<3x1xf32>
    %462 = vector.broadcast %461 : vector<3x1xf32> to vector<3x2xf32>
    %463 = arith.subf %459, %462 : vector<3x2xf32>
    %464 = math.exp %463 : vector<3x2xf32>
    %cst_176 = arith.constant dense<0.000000e+00> : vector<3xf32>
    %465 = vector.multi_reduction <add>, %464, %cst_176 [1] : vector<3x2xf32> to vector<3xf32>
    %466 = vector.shape_cast %465 : vector<3xf32> to vector<3x1xf32>
    %467 = vector.broadcast %466 : vector<3x1xf32> to vector<3x2xf32>
    %468 = arith.divf %464, %467 : vector<3x2xf32>
    %c0_177 = arith.constant 0 : index
    %c0_178 = arith.constant 0 : index
    %469 = vector.load %arg20[%c0_177, %c0_178] : memref<3x2xf32, #tpu.memory_space<vmem>>, vector<3x2xf32>
    tpu.vector_store %arg20[%c0_177, %c0_178], %468 {strides = array<i32>} : memref<3x2xf32, #tpu.memory_space<vmem>>, vector<3x2xf32>,
    return
  }
}

</mosaic_0001>

<bundles_post_ra>
// kernel: model_forward.1
= control target key start
LH: loop header
LB: loop body
LE: loop exit
PB: predicated region body
PF: predicated region fallthrough
CT: control target
= control target key end

     0   :  { %s4567_s0 = inlined_call_operand.vmem [shape: f32[24,128], index: 0, kind: input, shape index: {}]   ;;  %s4568_s1 = inlined_call_operand.hbm [shape: f32[24,24], index: 1, kind: input, shape index: {}]   ;;  %s4569_s2 = inlined_call_operand.vmem [shape: f32[24,1], index: 2, kind: input, shape index: {}]   ;;  %s4570_s3 = inlined_call_operand.vmem [shape: f32[3,24], index: 3, kind: input, shape index: {}]   ;;  %s4571_s4 = inlined_call_operand.vmem [shape: f32[24,24], index: 4, kind: input, shape index: {}]   ;;  %s4572_s5 = inlined_call_operand.vmem [shape: f32[256,128], index: 5, kind: input, shape index: {}]   ;;  %s4573_s6 = inlined_call_operand.vmem [shape: f32[1,128], index: 6, kind: input, shape index: {}]   ;;  %s4574_s7 = inlined_call_operand.vmem [shape: f32[1,128], index: 7, kind: input, shape index: {}]   ;;  %s4575_s8 = inlined_call_operand.vmem [shape: f32[256,128], index: 8, kind: input, shape index: {}]   ;;  %s4576_s9 = inlined_call_operand.vmem [shape: f32[1,128], index: 9, kind: input, shape index: {}]   ;;  %s4577_s10 = inlined_call_operand.vmem [shape: f32[1,128], index: 10, kind: input, shape index: {}]   ;;  %s4578_s11 = inlined_call_operand.vmem [shape: f32[256,128], index: 11, kind: input, shape index: {}]   ;;  %s4579_s12 = inlined_call_operand.vmem [shape: f32[1,128], index: 12, kind: input, shape index: {}]   ;;  %s4580_s13 = inlined_call_operand.vmem [shape: f32[1,128], index: 13, kind: input, shape index: {}]   ;;  %s4581_s14 = inlined_call_operand.vmem [shape: f32[256,128], index: 14, kind: input, shape index: {}]   ;;  %s4582_s15 = inlined_call_operand.vmem [shape: f32[1,128], index: 15, kind: input, shape index: {}]   ;;  %s4583_s16 = inlined_call_operand.vmem [shape: f32[128,64], index: 16, kind: input, shape index: {}]   ;;  %s4584_s17 = inlined_call_operand.vmem [shape: f32[1,64], index: 17, kind: input, shape index: {}]   ;;  %s4585_s18 = inlined_call_operand.vmem [shape: f32[64,2], index: 18, kind: input, shape index: {}]   ;;  %s4586_s19 = inlined_call_operand.vmem [shape: f32[1,2], index: 19, kind: input, shape index: {}]   ;;  %s4587_s20 = inlined_call_operand.vmem [shape: f32[3,2], index: 20, kind: output, shape index: {}]  }
   0x1   :  { %4610 = sst [smem:[#allocation5_spill]] %s4567_s0 }
   0x2   :  { %4611 = sst [smem:[#allocation6_spill]] %s4568_s1 }
   0x3   :  { %4612 = sst [smem:[#allocation7_spill]] %s4569_s2 }
   0x4   :  { %4613 = sst [smem:[#allocation8_spill]] %s4570_s3 }
   0x5   :  { %4614 = sst [smem:[#allocation9_spill]] %s4571_s4 }
   0x6   :  { %25 = vsyncpa [#allocation3], 0  ;;  %s3015_s1 = smov [#allocation2]  }
   0x7   :  { %s33_s22 = sshll.u32 %s3015_s1, 4  ;;  %s34_s22 = int_to_ptr.vmem [resolvable:$true] %s33_s22 }
   0x8   :  { %s3001_s23 = scalar_lea.vmem %s34_s22, 384  ;;  %p3006_p1 = scmp.lt.s32.totalorder %s34_s22, %s34_s22 }
   0x9   :  { %p3002_p0 = scmp.ne.s32.totalorder %s34_s22, %s3001_s23  ;;  %p3007_p2 = scmp.lt.s32.totalorder %s3001_s23, %s3001_s23 }
   0xb   :  { %p3008_p3 = por %p3007_p2, %p3006_p1 }
   0xd   :  { %p3009_p4 = pnand %p3008_p3, %p3002_p0 }
   0xf   :  { %3012 = shalt.err (!%p3009_p4)
}
  0x10   :  { %s3016_s24 = smov 128   ;;  %s3017_s2 = smov 8  }
  0x11   :  { %s4615_s26 = sld [smem:[#allocation6_spill]] }
  0x17   :  { %39 = dma.hbm_to_vmem [thread:$0]  %s4615_s26, 384, %s34_s22, [#allocation3], %s3016_s24, %s3016_s24, %s3017_s2  }
  0x18   :  { %3013 = dma.done.wait [#allocation3], 384  }
  0x19   :  { %3014 = vsyncadd [#allocation3], 4294966912  ;;  %v3018_v0 = vmov 0.0   ;;  %vm4592_vm0 = vmmov 0   ;;  %s4616_s4 = sld [smem:[#allocation5_spill]]  ;;  %v206_v4 = vld [vmem:[%s4572_s5 + $0x78] sm:$0xff] }
  0x1a   :  { %2511 = vmatprep.subr.mxu1 %v3018_v0  ;;  %2517 = vmatprep.mubr.msk.f32.mxu1 %vm4592_vm0, %v3018_v0  ;;  %v3156_v5 = vld [vmem:[#allocation2] sm:$0xff]  ;;  %vm4594_vm1 = vcmask 195584   ;;  %v205_v6 = vld [vmem:[%s4572_s5 + $0x70] sm:$0xff]  ;;  %v222_v7 = vld [vmem:[%s4572_s5 + $0xf8] sm:$0xff]  ;;  %s4623_s26 = sld [smem:[#allocation9_spill]] }
  0x1b   :  { %2567 = vmatprep.subr.mxu0 %v3018_v0  ;;  %2599 = vmatprep.mubr.msk.f32.mxu0 %vm4592_vm0, %v3018_v0  ;;  %v221_v8 = vld [vmem:[%s4572_s5 + $0xf0] sm:$0xff]  ;;  %v204_v9 = vld [vmem:[%s4572_s5 + $0x68] sm:$0xff]  ;;  %v219_v12 = vld [vmem:[%s4572_s5 + $0xe0] sm:$0xff]  ;;  %s4631_s21 = sld [smem:[#allocation8_spill]] }
  0x1c   :  { %2568 = vmatpush3.msra.mxu0 %v206_v4  ;;  %v3178_v10 = vld [vmem:[#allocation2 + $0x8] sm:$0xff]  ;;  %v203_v13 = vld [vmem:[%s4572_s5 + $0x60] sm:$0xff]  ;;  %v3196_v14 = vld [vmem:[#allocation2 + $0x10] sm:$0xff] }
  0x1d   :  { %2569 = vmatprep.subr.mxu0 %v3018_v0  ;;  %v220_v11 = vld [vmem:[%s4572_s5 + $0xe8] sm:$0xff]  ;;  %v218_v15 = vld [vmem:[%s4572_s5 + $0xd8] sm:$0xff]  ;;  %v217_v17 = vld [vmem:[%s4572_s5 + $0xd0] sm:$0xff] }
  0x1e   :  { %2570 = vmatpush3.msra.mxu0 %v205_v6  ;;  %v202_v16 = vld [vmem:[%s4572_s5 + $0x58] sm:$0xff]  ;;  %v201_v18 = vld [vmem:[%s4572_s5 + $0x50] sm:$0xff]  ;;  %v216_v19 = vld [vmem:[%s4572_s5 + $0xc8] sm:$0xff] }
  0x1f   :  { %v3138_v1 = vld [vmem:[%s4616_s4 + $0x10] sm:$0xff]  ;;  %v3143_v2 = vld [vmem:[%s4616_s4 + $0x8] sm:$0xff]  ;;  %v3150_v3 = vld [vmem:[%s4616_s4] sm:$0xff]  ;;  %2571 = vmatprep.subr.mxu0 %v3018_v0 }
  0x20   :  { %2512 = vmatpush3.msra.mxu1 %v3138_v1  ;;  %2572 = vmatpush3.msra.mxu0 %v204_v9  ;;  %v200_v20 = vld [vmem:[%s4572_s5 + $0x48] sm:$0xff]  ;;  %v215_v21 = vld [vmem:[%s4572_s5 + $0xc0] sm:$0xff]  ;;  %v214_v23 = vld [vmem:[%s4572_s5 + $0xb8] sm:$0xff]  ;;  %v79_v9 = vlaneseq }
  0x21   :  { %2513 = vmatprep.subr.mxu1 %v3018_v0  ;;  %2573 = vmatprep.subr.mxu0 %v3018_v0  ;;  %v199_v22 = vld [vmem:[%s4572_s5 + $0x40] sm:$0xff]  ;;  %v198_v24 = vld [vmem:[%s4572_s5 + $0x38] sm:$0xff]  ;;  %v213_v25 = vld [vmem:[%s4572_s5 + $0xb0] sm:$0xff] }
  0x22   :  { %2514 = vmatpush3.msra.mxu1 %v3143_v2  ;;  %2574 = vmatpush3.msra.mxu0 %v203_v13  ;;  %v197_v26 = vld [vmem:[%s4572_s5 + $0x30] sm:$0xff]  ;;  %v212_v27 = vld [vmem:[%s4572_s5 + $0xa8] sm:$0xff]  ;;  %v211_v29 = vld [vmem:[%s4572_s5 + $0xa0] sm:$0xff] }
  0x23   :  { %2515 = vmatprep.subr.mxu1 %v3018_v0  ;;  %2575 = vmatprep.subr.mxu0 %v3018_v0  ;;  %v196_v28 = vld [vmem:[%s4572_s5 + $0x28] sm:$0xff]  ;;  %v195_v30 = vld [vmem:[%s4572_s5 + $0x20] sm:$0xff]  ;;  %v210_v31 = vld [vmem:[%s4572_s5 + $0x98] sm:$0xff] }
  0x24   :  { %2516 = vmatpush3.msra.mxu1 %v3150_v3  ;;  %2576 = vmatpush3.msra.mxu0 %v202_v16  ;;  %v194_v32 = vld [vmem:[%s4572_s5 + $0x18] sm:$0xff]  ;;  %v209_v33 = vld [vmem:[%s4572_s5 + $0x90] sm:$0xff]  ;;  %v208_v35 = vld [vmem:[%s4572_s5 + $0x88] sm:$0xff] }
  0x25   :  { %2518 = vmatmul.mubr.msk.f32.vlgmr.msra.gmra.mxu1 %vm4594_vm1, %v3156_v5  ;;  %2526 = vmatprep.subr.mxu1 %v3018_v0  ;;  %v193_v34 = vld [vmem:[%s4572_s5 + $0x10] sm:$0xff]  ;;  %v207_v36 = vld [vmem:[%s4572_s5 + $0x80] sm:$0xff]  ;;  %v192_v37 = vld [vmem:[%s4572_s5 + $0x8] sm:$0xff] }
  0x26   :  { %2520 = vmatprep.mubr.msk.f32.mxu1 %vm4592_vm0, %v3018_v0  ;;  %2527 = vmatpush3.msra.mxu1 %v222_v7  ;;  %v191_v38 = vld [vmem:[%s4572_s5] sm:$0xff] }
  0x27   :  { %2528 = vmatprep.subr.mxu1 %v3018_v0  ;;  %2577 = vmatprep.subr.mxu0 %v3018_v0  ;;  %v2279_v52 = vld [vmem:[%s4573_s6] ss:$0 sm:$0xff] }
  0x28   :  { %2529 = vmatpush3.msra.mxu1 %v221_v8  ;;  %2578 = vmatpush3.msra.mxu0 %v201_v18  ;;  %v2280_v57 = vld [vmem:[%s4574_s7] ss:$0 sm:$0xff] }
  0x29   :  { %2521 = vmatmul.mubr.msk.f32.gmra.mxu1 %vm4594_vm1, %v3178_v10  ;;  %2530 = vmatprep.subr.mxu1 %v3018_v0 }
  0x2a   :  { %2523 = vmatprep.mubr.msk.f32.mxu1 %vm4592_vm0, %v3018_v0  ;;  %2531 = vmatpush3.msra.mxu1 %v220_v11  ;;  %v3338_v11 = vshrl.u32 %v79_v9, 7 }
  0x2b   :  { %2532 = vmatprep.subr.mxu1 %v3018_v0  ;;  %2579 = vmatprep.subr.mxu0 %v3018_v0 }
  0x2c   :  { %2533 = vmatpush3.msra.mxu1 %v219_v12  ;;  %2580 = vmatpush3.msra.mxu0 %v200_v20  ;;  %v3340_v12 = vand.u32 127, %v79_v9  ;;  %v3343_v13 = vadd.s32 8, %v3338_v11 }
  0x2d   :  { %2524 = vmatmul.mubr.msk.f32.gmra.mxu1 %vm4594_vm1, %v3196_v14  ;;  %2534 = vmatprep.subr.mxu1 %v3018_v0 }
  0x2e   :  { %2535 = vmatpush3.msra.mxu1 %v218_v15  ;;  %2581 = vmatprep.subr.mxu0 %v3018_v0  ;;  %v3346_v15 = vadd.s32 16, %v3338_v11  ;;  %vm3350_vm2 = vcmp.eq.s32.totalorder %v3338_v11, %v3340_v12  ;;  %vm3359_vm3 = vcmp.eq.s32.totalorder %v3343_v13, %v3340_v12  ;;  %vm4598_vm5 = vcmp.lt.s32.totalorder %v3340_v12, %v3343_v13 }
  0x2f   :  { %2536 = vmatprep.subr.mxu1 %v3018_v0  ;;  %2582 = vmatpush3.msra.mxu0 %v199_v22  ;;  %vm4603_vm6 = vcmp.lt.s32.totalorder %v3340_v12, %v3338_v11 }
  0x30   :  { %2537 = vmatpush3.msra.mxu1 %v217_v17  ;;  %2583 = vmatprep.subr.mxu0 %v3018_v0  ;;  %v429_v17 = vsel %vm3350_vm2, 1.0, %v3018_v0  ;;  %vm3365_vm4 = vcmp.eq.s32.totalorder %v3346_v15, %v3340_v12  ;;  %vm4597_vm7 = vcmp.lt.s32.totalorder %v3340_v12, %v3346_v15 }
  0x31   :  { %2538 = vmatprep.subr.mxu1 %v3018_v0  ;;  %2584 = vmatpush3.msra.mxu0 %v198_v24  ;;  %v432_v20 = vsel %vm4594_vm1, %v429_v17, 0.0  ;;  %v431_v22 = vsel %vm3365_vm4, 1.0, %v3018_v0 }
  0x32   :  { %2539 = vmatpush3.msra.mxu1 %v216_v19  ;;  %2585 = vmatprep.subr.mxu0 %v3018_v0  ;;  %v4621_v19 = vmov 0  ;;  %v435_v24 = vsel %vm4594_vm1, %v431_v22, 0.0 }
  0x33   :  { %2540 = vmatprep.subr.mxu1 %v3018_v0  ;;  %2586 = vmatpush3.msra.mxu0 %v197_v26  ;;  %v4622_v19 = vsel %vm3365_vm4, 4294967295, %v4621_v19 }
  0x34   :  { %2541 = vmatpush3.msra.mxu1 %v215_v21  ;;  %2587 = vmatprep.subr.mxu0 %v3018_v0  ;;  %v430_v21 = vsel %vm3359_vm3, 1.0, %v3018_v0 }
  0x35   :  { %2542 = vmatprep.subr.mxu1 %v3018_v0  ;;  %2588 = vmatpush3.msra.mxu0 %v196_v28 }
  0x36   :  { %2543 = vmatpush3.msra.mxu1 %v214_v23  ;;  %2589 = vmatprep.subr.mxu0 %v3018_v0  ;;  %v433_v23 = vsel %vm4594_vm1, %v430_v21, 0.0 }
  0x37   :  { %2544 = vmatprep.subr.mxu1 %v3018_v0  ;;  %2590 = vmatpush3.msra.mxu0 %v195_v30 }
  0x38   :  { %2545 = vmatpush3.msra.mxu1 %v213_v25  ;;  %2591 = vmatprep.subr.mxu0 %v3018_v0  ;;  %v434_v25 = vadd.f32 %v433_v23, %v432_v20 }
  0x39   :  { %2546 = vmatprep.subr.mxu1 %v3018_v0  ;;  %2592 = vmatpush3.msra.mxu0 %v194_v32  ;;  %v3381_v32 = vld [vmem:[%s4623_s26] sm:$0xff] }
  0x3a   :  { %2547 = vmatpush3.msra.mxu1 %v212_v27  ;;  %2593 = vmatprep.subr.mxu0 %v3018_v0  ;;  %v436_v26 = vadd.f32 %v435_v24, %v434_v25  ;;  %v3020_v24 = vmov 0  }
  0x3b   :  { %2548 = vmatprep.subr.mxu1 %v3018_v0  ;;  %2594 = vmatpush3.msra.mxu0 %v193_v34  ;;  %v3391_v34 = vld [vmem:[%s4623_s26 + $0x10] sm:$0xff] }
  0x3c   :  { %2549 = vmatpush3.msra.mxu1 %v211_v29  ;;  %2595 = vmatprep.subr.mxu0 %v3018_v0  ;;  %v437_v27 = vrot.slane %v436_v26, 4 }
  0x3d   :  { %2550 = vmatprep.subr.mxu1 %v3018_v0  ;;  %2558 = vmatprep.mubr.msk.f32.mxu1 %vm4592_vm0, %v3018_v0 }
  0x3e   :  { %2551 = vmatpush3.msra.mxu1 %v210_v31  ;;  %2596 = vmatpush3.msra.mxu0 %v192_v37  ;;  %v438_v28 = vadd.f32 %v437_v27, %v436_v26 }
  0x3f   :  { %2552 = vmatprep.subr.mxu1 %v3018_v0  ;;  %2597 = vmatprep.subr.mxu0 %v3018_v0 }
  0x40   :  { %2553 = vmatpush3.msra.mxu1 %v209_v33  ;;  %2598 = vmatpush3.msra.mxu0 %v191_v38  ;;  %v439_v29 = vrot.slane %v438_v28, 2  ;;  %v3386_v33 = vld [vmem:[%s4623_s26 + $0x8] sm:$0xff] }
  0x41   :  { %2554 = vmatprep.subr.mxu1 %v3018_v0  ;;  %2617 = vmatprep.subr.mxu0 %v3018_v0 }
  0x42   :  { %2555 = vmatpush3.msra.mxu1 %v208_v35  ;;  %v440_v30 = vadd.f32 %v439_v29, %v438_v28  ;;  %2960 = vset.pattern.permute.xlu1 %v3020_v24 }
  0x43   :  { %2556 = vmatprep.subr.mxu1 %v3018_v0  ;;  %2959 = vset.pattern.permute.xlu0 %v3020_v24 }
  0x44   :  { %2557 = vmatpush3.msra.mxu1 %v207_v36  ;;  %v441_v31 = vrot.slane %v440_v30, 1 }
  0x45   :  { %2559 = vmatmul.mubr.f32.vlgmr.msra.gmra.mxu1 %v3150_v3  ;;  %2608 = vmatprep.subr.mxu1 %v3018_v0 }
  0x46   :  { %2561 = vmatprep.mubr.msk.f32.mxu1 %vm4592_vm0, %v3018_v0  ;;  %v442_v35 = vadd.f32 %v441_v31, %v440_v30 }
  0x48   :  { %v461_v36 = vmul.f32 %v442_v35, %v3381_v32  ;;  %v462_v37 = vmul.f32 %v442_v35, %v3386_v33  ;;  %v463_v38 = vmul.f32 %v442_v35, %v3391_v34 }
  0x49   :  { %2562 = vmatmul.mubr.f32.gmra.mxu1 %v3143_v2 }
  0x4a   :  { %2564 = vmatprep.mubr.msk.f32.mxu1 %vm4592_vm0, %v3018_v0 }
  0x4d   :  { %2565 = vmatmul.mubr.f32.gmra.mxu1 %v3138_v1 }
  0x4e   :  { %2614 = vmatprep.mubr.msk.f32.mxu1 %vm4592_vm0, %v3018_v0 }
  0xe5   :  { %v177_v39 = vpop.f32.mrf.mxu1 }
  0xe6   :  { %2600 = vmatmul.mubr.f32.vlgmr.msra.gmra.mxu0 %v177_v39  ;;  %v476_v39 = vsel %vm4594_vm1, %v461_v36, 0.0 }
  0xe7   :  { %v2519_v40 = vpop.f32.mrf.mxu1  ;;  %2602 = vmatprep.mubr.msk.f32.mxu0 %vm4592_vm0, %v3018_v0 }
  0xe8   :  { %v479_v40 = vsel %vm4594_vm1, %v462_v37, 0.0 }
  0xe9   :  { %v182_v41 = vpop.f32.mrf.mxu1 }
  0xea   :  { %2603 = vmatmul.mubr.f32.gmra.mxu0 %v182_v41  ;;  %v482_v41 = vsel %vm4594_vm1, %v463_v38, 0.0 }
  0xeb   :  { %v2522_v42 = vpop.f32.mrf.mxu1  ;;  %2605 = vmatprep.mubr.msk.f32.mxu0 %vm4592_vm0, %v3018_v0 }
  0xed   :  { %v187_v43 = vpop.f32.mrf.mxu1 }
  0xee   :  { %2606 = vmatmul.mubr.f32.gmra.mxu0 %v187_v43 }
  0xef   :  { %v2525_v44 = vpop.f32.mrf.mxu1  ;;  %2623 = vmatprep.mubr.msk.f32.mxu0 %vm4592_vm0, %v3018_v0 }
 0x105   :  { %v289_v45 = vpop.f32.mrf.mxu1 }
 0x107   :  { %v2560_v46 = vpop.f32.mrf.mxu1 }
 0x109   :  { %v294_v47 = vpop.f32.mrf.mxu1 }
 0x10b   :  { %v2563_v48 = vpop.f32.mrf.mxu1 }
 0x10d   :  { %v299_v49 = vpop.f32.mrf.mxu1 }
 0x10f   :  { %v2566_v50 = vpop.f32.mrf.mxu1 }
 0x1a6   :  { %v369_v51 = vpop.f32.mrf.mxu0 }
 0x1a7   :  { %v370_v53 = vadd.f32 %v369_v51, %v289_v45 }
 0x1a8   :  { %v2601_v54 = vpop.f32.mrf.mxu0 }
 0x1a9   :  { %v3320_v55 = vadd.f32 %v2279_v52, %v370_v53 }
 0x1aa   :  { %v374_v56 = vpop.f32.mrf.mxu0 }
 0x1ab   :  { %v375_v58 = vadd.f32 %v374_v56, %v294_v47  ;;  %v393_v59 = vmax.f32 %v3320_v55, 0.0  ;;  %v3488_v55 = vld [vmem:[%s4631_s21] sm:$0x7] }
 0x1ac   :  { %v2604_v60 = vpop.f32.mrf.mxu0 }
 0x1ad   :  { %v3326_v61 = vadd.f32 %v2279_v52, %v375_v58  ;;  %v403_v62 = vmul.f32 %v2280_v57, %v393_v59 }
 0x1ae   :  { %v379_v63 = vpop.f32.mrf.mxu0 }
 0x1af   :  { %v394_v1 = vmax.f32 %v3326_v61, 0.0  ;;  %v380_v2 = vadd.f32 %v379_v63, %v299_v49  ;;  %406 = vadd.xlane.f32.xlu0 %v403_v62 }
 0x1b0   :  { %v2607_v3 = vpop.f32.mrf.mxu0 }
 0x1b1   :  { %v404_v4 = vmul.f32 %v2280_v57, %v394_v1  ;;  %v3333_v6 = vadd.f32 %v2279_v52, %v380_v2 }
 0x1b3   :  { %408 = vadd.xlane.f32.xlu0 %v404_v4  ;;  %v395_v7 = vmax.f32 %v3333_v6, 0.0 }
 0x1b5   :  { %v405_v8 = vmul.f32 %v2280_v57, %v395_v7 }
 0x1b7   :  { %410 = vadd.xlane.f32.xlu1 %v405_v8  ;;  %480 = vadd.xlane.f32.xlu0 %v479_v40 }
 0x1bb   :  { %477 = vadd.xlane.f32.xlu1 %v476_v39 }
 0x1bf   :  { %483 = vadd.xlane.f32.xlu1 %v482_v41 }
 0x238   :  { %v407_v42 = vpop.xlane.xlu0 %406 }
 0x239   :  { %2961 = vtanh.f32 %v407_v42 }
 0x23c   :  { %v409_v43 = vpop.xlane.xlu0 %408 }
 0x23d   :  { %2963 = vtanh.f32 %v409_v43 }
 0x240   :  { %v411_v44 = vpop.xlane.xlu1 %410  ;;  %v481_v25 = vpop.xlane.xlu0 %480 }
 0x241   :  { %2965 = vtanh.f32 %v411_v44  ;;  %v486_v27 = vmul.f32 0.8, %v481_v25  ;;  %v833_v25 = vld [vmem:[%s4575_s8 + $0xc0] sm:$0xff] }
 0x243   :  { %v2282_v29 = vadd.f32 -0.0001, %v486_v27  ;;  %v823_v27 = vld [vmem:[%s4575_s8 + $0x70] sm:$0xff] }
 0x244   :  { %v478_v26 = vpop.xlane.xlu1 %477 }
 0x245   :  { %v485_v28 = vmul.f32 0.8, %v478_v26 }
 0x246   :  { %v3405_v45 = vpop.eup %2961 }
 0x247   :  { %v415_v47 = vsel %vm3350_vm2, %v3405_v45, 0.0  ;;  %v2281_v31 = vadd.f32 -0.0001, %v485_v28 }
 0x248   :  { %v418_v51 = vsel %vm4594_vm1, %v415_v47, 0.0  ;;  %v484_v30 = vpop.xlane.xlu1 %483 }
 0x249   :  { %v487_v35 = vmul.f32 0.8, %v484_v30 }
 0x24a   :  { %v3407_v46 = vpop.eup %2963 }
 0x24b   :  { %v416_v48 = vsel %vm3359_vm3, %v3407_v46, 0.0 }
 0x24c   :  { %v419_v49 = vsel %vm4594_vm1, %v416_v48, 0.0 }
 0x24d   :  { %v420_v53 = vadd.f32 %v419_v49, %v418_v51 }
 0x24e   :  { %v2966_v50 = vpop.eup %2965 }
 0x24f   :  { %v417_v52 = vsel %vm3365_vm4, %v2966_v50, 0.0 }
 0x250   :  { %v421_v54 = vsel %vm4594_vm1, %v417_v52, 0.0  ;;  %v520_v52 = vmul.f32 %v2966_v50, %v395_v7  ;;  %v518_v7 = vmul.f32 %v3405_v45, %v393_v59  ;;  %v840_v59 = vld [vmem:[%s4575_s8 + $0xf8] sm:$0xff] }
 0x251   :  { %v422_v56 = vadd.f32 %v421_v54, %v420_v53  ;;  %v519_v54 = vmul.f32 %v3407_v46, %v394_v1 }
 0x253   :  { %v423_v57 = vrot.slane %v422_v56, 4 }
 0x255   :  { %v424_v58 = vadd.f32 %v423_v57, %v422_v56 }
 0x257   :  { %v425_v60 = vrot.slane %v424_v58, 2 }
 0x259   :  { %v426_v62 = vadd.f32 %v425_v60, %v424_v58 }
 0x25b   :  { %v427_v63 = vrot.slane %v426_v62, 1 }
 0x25d   :  { %v428_v2 = vadd.f32 %v427_v63, %v426_v62  ;;  %v838_v63 = vld [vmem:[%s4575_s8 + $0xe8] sm:$0xff] }
 0x25f   :  { %vm444_vm8 = vcmp.gt.f32.partialorder %v428_v2, %v3407_v46  ;;  %vm447_vm9 = vcmp.eq.f32.partialorder %v428_v2, %v3407_v46  ;;  %vm446_vm10 = vcmp.eq.f32.partialorder %v428_v2, %v3405_v45  ;;  %vm443_vm12 = vcmp.gt.f32.partialorder %v428_v2, %v3405_v45 }
 0x260   :  { %vm453_vm11 = vmand %vm447_vm9, %vm4598_vm5  ;;  %vm448_vm14 = vcmp.eq.f32.partialorder %v428_v2, %v2966_v50  ;;  %vm445_vm0 = vcmp.gt.f32.partialorder %v428_v2, %v2966_v50  ;;  %vm4624_vm9 = vcmask 195584   ;;  %v839_v50 = vld [vmem:[%s4575_s8 + $0xf0] sm:$0xff] }
 0x261   :  { %vm456_vm13 = vmor %vm444_vm8, %vm453_vm11 }
 0x262   :  { %v459_v3 = vsel %vm456_vm13, 1.0, %v3018_v0  ;;  %vm452_vm15 = vmand %vm446_vm10, %vm4603_vm6 }
 0x263   :  { %v465_v4 = vmul.f32 %v462_v37, %v459_v3  ;;  %vm455_vm1 = vmor %vm443_vm12, %vm452_vm15  ;;  %v491_v37 = vceil.f32 %v2281_v31  ;;  %v837_v3 = vld [vmem:[%s4575_s8 + $0xe0] sm:$0xff]  ;;  %v830_v31 = vld [vmem:[%s4575_s8 + $0xa8] sm:$0xff] }
 0x264   :  { %v458_v8 = vsel %vm455_vm1, 1.0, %v3018_v0  ;;  %vm454_vm4 = vmand %vm448_vm14, %vm4597_vm7  ;;  %vm4629_vm14 = vnez %v4622_v19 }
 0x265   :  { %v470_v9 = vsel %vm4624_vm9, %v465_v4, 0.0  ;;  %v464_v17 = vmul.f32 %v461_v36, %v458_v8  ;;  %vm457_vm8 = vmor %vm445_vm0, %vm454_vm4  ;;  %v492_v36 = vceil.f32 %v2282_v29  ;;  %v836_v8 = vld [vmem:[%s4575_s8 + $0xd8] sm:$0xff]  ;;  %v831_v29 = vld [vmem:[%s4575_s8 + $0xb0] sm:$0xff] }
 0x266   :  { %471 = vadd.xlane.f32.xlu1 %v470_v9  ;;  %v460_v20 = vsel %vm457_vm8, 1.0, %v3018_v0  ;;  %vm4625_vm11 = vmmov %vm4624_vm9  ;;  %vm4633_vm8 = vmmov 0  }
 0x267   :  { %v467_v21 = vsel %vm4625_vm11, %v464_v17, 0.0  ;;  %v466_v22 = vmul.f32 %v463_v38, %v460_v20  ;;  %vm4626_vm10 = vmmov %vm4624_vm9  ;;  %v2283_v38 = vadd.f32 -0.0001, %v487_v35  ;;  %v835_v20 = vld [vmem:[%s4575_s8 + $0xd0] sm:$0xff]  ;;  %v821_v35 = vld [vmem:[%s4575_s8 + $0x60] sm:$0xff] }
 0x268   :  { %468 = vadd.xlane.f32.xlu0 %v467_v21  ;;  %vm4627_vm4 = vmmov %vm4624_vm9 }
 0x269   :  { %v473_v23 = vsel %vm4626_vm10, %v466_v22, 0.0  ;;  %v493_v42 = vceil.f32 %v2283_v38  ;;  %vm4628_vm12 = vmmov %vm4627_vm4  ;;  %v834_v22 = vld [vmem:[%s4575_s8 + $0xc8] sm:$0xff]  ;;  %v828_v38 = vld [vmem:[%s4575_s8 + $0x98] sm:$0xff] }
 0x26a   :  { %vm4630_vm15 = vmmov %vm4627_vm4 }
 0x26b   :  { %vm4632_vm9 = vmmov %vm4627_vm4 }
 0x26c   :  { %474 = vadd.xlane.f32.xlu0 %v473_v23  ;;  %vm4634_vm11 = vmmov %vm4627_vm4 }
 0x26d   :  { %vm4635_vm10 = vmmov %vm4627_vm4 }
 0x2ef   :  { %v472_v39 = vpop.xlane.xlu1 %471 }
 0x2f0   :  { %vm495_vm0 = vcmp.lt.f32.partialorder %v472_v39, %v492_v36  ;;  %v829_v36 = vld [vmem:[%s4575_s8 + $0xa0] sm:$0xff]  ;;  %v819_v39 = vld [vmem:[%s4575_s8 + $0x50] sm:$0xff] }
 0x2f1   :  { %v3442_v40 = vsel %vm495_vm0, 1.0, %v3018_v0  ;;  %v469_v41 = vpop.xlane.xlu0 %468  ;;  %vm4636_vm0 = vmmov %vm4627_vm4 }
 0x2f2   :  { %v505_v43 = vsel %vm3359_vm3, %v3442_v40, 0.0  ;;  %vm494_vm1 = vcmp.lt.f32.partialorder %v469_v41, %v491_v37  ;;  %v3471_v6 = vmul.f32 %v519_v54, %v3442_v40  ;;  %v525_v23 = vmul.f32 %v3442_v40, %v3178_v10  ;;  %v832_v10 = vld [vmem:[%s4575_s8 + $0xb8] sm:$0xff]  ;;  %v827_v41 = vld [vmem:[%s4575_s8 + $0x90] sm:$0xff]  ;;  %v813_v54 = vld [vmem:[%s4575_s8 + $0x20] sm:$0xff] }
 0x2f3   :  { %v3448_v44 = vsel %vm494_vm1, 1.0, %v3018_v0  ;;  %v508_v48 = vsel %vm4627_vm4, %v505_v43, 0.0  ;;  %v820_v37 = vld [vmem:[%s4575_s8 + $0x58] sm:$0xff]  ;;  %v826_v43 = vld [vmem:[%s4575_s8 + $0x88] sm:$0xff]  ;;  %vm4637_vm1 = vmmov %vm4636_vm0 }
 0x2f4   :  { %v504_v47 = vsel %vm3350_vm2, %v3448_v44, 0.0  ;;  %v3481_v1 = vmul.f32 %v518_v7, %v3448_v44  ;;  %v524_v9 = vmul.f32 %v3448_v44, %v3156_v5  ;;  %v824_v5 = vld [vmem:[%s4575_s8 + $0x78] sm:$0xff]  ;;  %v809_v7 = vld [vmem:[%s4575_s8] sm:$0xff]  ;;  %vm4638_vm4 = vmmov %vm4636_vm0 }
 0x2f5   :  { %v507_v49 = vsel %vm4628_vm12, %v504_v47, 0.0  ;;  %v475_v51 = vpop.xlane.xlu0 %474  ;;  %v817_v47 = vld [vmem:[%s4575_s8 + $0x40] sm:$0xff]  ;;  %vm4639_vm12 = vmmov %vm4636_vm0 }
 0x2f6   :  { %vm496_vm13 = vcmp.lt.f32.partialorder %v475_v51, %v493_v42  ;;  %v509_v56 = vadd.f32 %v508_v48, %v507_v49  ;;  %v818_v42 = vld [vmem:[%s4575_s8 + $0x48] sm:$0xff]  ;;  %v825_v48 = vld [vmem:[%s4575_s8 + $0x80] sm:$0xff]  ;;  %v816_v49 = vld [vmem:[%s4575_s8 + $0x38] sm:$0xff] }
 0x2f7   :  { %v3458_v53 = vsel %vm496_vm13, 1.0, %v3018_v0  ;;  %v815_v51 = vld [vmem:[%s4575_s8 + $0x30] sm:$0xff]  ;;  %vm4640_vm13 = vmmov %vm4636_vm0 }
 0x2f8   :  { %v506_v57 = vsel %vm4629_vm14, %v3458_v53, 0.0  ;;  %v3467_v58 = vmul.f32 %v520_v52, %v3458_v53  ;;  %v526_v28 = vmul.f32 %v3458_v53, %v3196_v14  ;;  %v822_v14 = vld [vmem:[%s4575_s8 + $0x68] sm:$0xff] }
 0x2f9   :  { %v510_v60 = vsel %vm4630_vm15, %v506_v57, 0.0  ;;  %v814_v52 = vld [vmem:[%s4575_s8 + $0x28] sm:$0xff]  ;;  %v811_v57 = vld [vmem:[%s4575_s8 + $0x10] sm:$0xff]  ;;  %vm4641_vm15 = vmmov %vm4636_vm0 }
 0x2fa   :  { %v511_v61 = vadd.f32 %v510_v60, %v509_v56  ;;  %2609 = vmatpush3.msra.mxu1 %v3467_v58  ;;  %2618 = vmatpush3.msra.mxu0 %v3467_v58  ;;  %v812_v56 = vld [vmem:[%s4575_s8 + $0x18] sm:$0xff]  ;;  %v810_v60 = vld [vmem:[%s4575_s8 + $0x8] sm:$0xff]  ;;  %s4665_s8 = sld [smem:[#allocation7_spill]] }
 0x2fb   :  { %2610 = vmatprep.subr.mxu1 %v3018_v0  ;;  %2619 = vmatprep.subr.mxu0 %v3018_v0 }
 0x2fc   :  { %v512_v46 = vrot.slane %v511_v61, 4  ;;  %2611 = vmatpush3.msra.mxu1 %v3471_v6  ;;  %2620 = vmatpush3.msra.mxu0 %v3471_v6 }
 0x2fd   :  { %2612 = vmatprep.subr.mxu1 %v3018_v0  ;;  %2621 = vmatprep.subr.mxu0 %v3018_v0 }
 0x2fe   :  { %v513_v45 = vadd.f32 %v512_v46, %v511_v61  ;;  %2613 = vmatpush3.msra.mxu1 %v3481_v1  ;;  %2622 = vmatpush3.msra.mxu0 %v3481_v1 }
 0x2ff   :  { %2632 = vmatprep.subr.mxu1 %v3018_v0  ;;  %2615 = vmatmul.mubr.msk.f32.vlgmr.msra.gmra.mxu1 %vm4632_vm9, %v3488_v55  ;;  %vm4642_vm9 = vmmov %vm4636_vm0 }
 0x300   :  { %v514_v62 = vrot.slane %v513_v45, 2  ;;  %2633 = vmatpush3.msra.mxu1 %v840_v59  ;;  %2664 = vmatprep.mubr.msk.f32.mxu1 %vm4633_vm8, %v3018_v0 }
 0x301   :  { %2634 = vmatprep.subr.mxu1 %v3018_v0  ;;  %2673 = vmatprep.subr.mxu0 %v3018_v0 }
 0x302   :  { %v515_v2 = vadd.f32 %v514_v62, %v513_v45  ;;  %2635 = vmatpush3.msra.mxu1 %v839_v50 }
 0x303   :  { %2636 = vmatprep.subr.mxu1 %v3018_v0 }
 0x304   :  { %v516_v4 = vrot.slane %v515_v2, 1  ;;  %2637 = vmatpush3.msra.mxu1 %v838_v63 }
 0x305   :  { %2638 = vmatprep.subr.mxu1 %v3018_v0 }
 0x306   :  { %v3520_v17 = vadd.f32 %v516_v4, %v515_v2  ;;  %2639 = vmatpush3.msra.mxu1 %v837_v3 }
 0x307   :  { %2640 = vmatprep.subr.mxu1 %v3018_v0 }
 0x308   :  { %2641 = vmatpush3.msra.mxu1 %v836_v8  ;;  %v3527_v21 = vmul.f32 %v524_v9, %v3520_v17  ;;  %v3547_v26 = vmul.f32 %v525_v23, %v3520_v17  ;;  %v3568_v30 = vmul.f32 %v526_v28, %v3520_v17  ;;  %v2288_v23 = vld [vmem:[%s4576_s9] ss:$0 sm:$0xff] }
 0x309   :  { %2642 = vmatprep.subr.mxu1 %v3018_v0 }
 0x30a   :  { %2624 = vmatmul.mubr.msk.f32.vlgmr.msra.gmra.mxu0 %vm4634_vm11, %v3527_v21  ;;  %2643 = vmatpush3.msra.mxu1 %v835_v20 }
 0x30b   :  { %2644 = vmatprep.subr.mxu1 %v3018_v0  ;;  %2626 = vmatprep.mubr.msk.f32.mxu0 %vm4633_vm8, %v3018_v0 }
 0x30c   :  { %2645 = vmatpush3.msra.mxu1 %v834_v22  ;;  %2674 = vmatpush3.msra.mxu0 %v824_v5 }
 0x30d   :  { %2646 = vmatprep.subr.mxu1 %v3018_v0  ;;  %2675 = vmatprep.subr.mxu0 %v3018_v0 }
 0x30e   :  { %2627 = vmatmul.mubr.msk.f32.gmra.mxu0 %vm4635_vm10, %v3547_v26  ;;  %2647 = vmatpush3.msra.mxu1 %v833_v25 }
 0x30f   :  { %2648 = vmatprep.subr.mxu1 %v3018_v0  ;;  %2629 = vmatprep.mubr.msk.f32.mxu0 %vm4633_vm8, %v3018_v0 }
 0x310   :  { %2649 = vmatpush3.msra.mxu1 %v832_v10  ;;  %2676 = vmatpush3.msra.mxu0 %v823_v27 }
 0x311   :  { %2650 = vmatprep.subr.mxu1 %v3018_v0  ;;  %2677 = vmatprep.subr.mxu0 %v3018_v0 }
 0x312   :  { %2630 = vmatmul.mubr.msk.f32.gmra.mxu0 %vm4636_vm0, %v3568_v30  ;;  %2651 = vmatpush3.msra.mxu1 %v831_v29 }
 0x313   :  { %2652 = vmatprep.subr.mxu1 %v3018_v0  ;;  %2678 = vmatpush3.msra.mxu0 %v822_v14 }
 0x314   :  { %2653 = vmatpush3.msra.mxu1 %v830_v31  ;;  %2679 = vmatprep.subr.mxu0 %v3018_v0 }
 0x315   :  { %2654 = vmatprep.subr.mxu1 %v3018_v0  ;;  %2680 = vmatpush3.msra.mxu0 %v821_v35  ;;  %v2289_v35 = vld [vmem:[%s4577_s10] ss:$0 sm:$0xff] }
 0x316   :  { %2655 = vmatpush3.msra.mxu1 %v829_v36  ;;  %2681 = vmatprep.subr.mxu0 %v3018_v0 }
 0x317   :  { %2656 = vmatprep.subr.mxu1 %v3018_v0  ;;  %2682 = vmatpush3.msra.mxu0 %v820_v37 }
 0x318   :  { %2657 = vmatpush3.msra.mxu1 %v828_v38  ;;  %2683 = vmatprep.subr.mxu0 %v3018_v0 }
 0x319   :  { %2658 = vmatprep.subr.mxu1 %v3018_v0  ;;  %2684 = vmatpush3.msra.mxu0 %v819_v39 }
 0x31a   :  { %2659 = vmatpush3.msra.mxu1 %v827_v41  ;;  %2685 = vmatprep.subr.mxu0 %v3018_v0 }
 0x31b   :  { %2660 = vmatprep.subr.mxu1 %v3018_v0  ;;  %2686 = vmatpush3.msra.mxu0 %v818_v42 }
 0x31c   :  { %2661 = vmatpush3.msra.mxu1 %v826_v43  ;;  %2687 = vmatprep.subr.mxu0 %v3018_v0 }
 0x31d   :  { %2662 = vmatprep.subr.mxu1 %v3018_v0  ;;  %2688 = vmatpush3.msra.mxu0 %v817_v47 }
 0x31e   :  { %2663 = vmatpush3.msra.mxu1 %v825_v48  ;;  %2689 = vmatprep.subr.mxu0 %v3018_v0 }
 0x31f   :  { %2665 = vmatmul.mubr.f32.vlgmr.msra.gmra.mxu1 %v3481_v1  ;;  %2690 = vmatpush3.msra.mxu0 %v816_v49 }
 0x320   :  { %2667 = vmatprep.mubr.msk.f32.mxu1 %vm4633_vm8, %v3018_v0  ;;  %2691 = vmatprep.subr.mxu0 %v3018_v0 }
 0x321   :  { %2692 = vmatpush3.msra.mxu0 %v815_v51  ;;  %2705 = vmatprep.mubr.msk.f32.mxu0 %vm4633_vm8, %v3018_v0 }
 0x322   :  { %2693 = vmatprep.subr.mxu0 %v3018_v0  ;;  %2714 = vmatprep.subr.mxu1 %v3018_v0 }
 0x323   :  { %2668 = vmatmul.mubr.f32.gmra.mxu1 %v3471_v6  ;;  %2694 = vmatpush3.msra.mxu0 %v814_v52  ;;  %v1065_v52 = vmul.f32 %v3520_v17, %v3381_v32 }
 0x324   :  { %2670 = vmatprep.mubr.msk.f32.mxu1 %vm4633_vm8, %v3018_v0  ;;  %2695 = vmatprep.subr.mxu0 %v3018_v0 }
 0x325   :  { %2696 = vmatpush3.msra.mxu0 %v813_v54 }
 0x326   :  { %2697 = vmatprep.subr.mxu0 %v3018_v0 }
 0x327   :  { %2671 = vmatmul.mubr.f32.gmra.mxu1 %v3467_v58  ;;  %2698 = vmatpush3.msra.mxu0 %v812_v56 }
 0x328   :  { %2699 = vmatprep.subr.mxu0 %v3018_v0  ;;  %2720 = vmatprep.mubr.msk.f32.mxu1 %vm4633_vm8, %v3018_v0 }
 0x329   :  { %2700 = vmatpush3.msra.mxu0 %v811_v57  ;;  %v1080_v57 = vsel %vm4637_vm1, %v1065_v52, 0.0 }
 0x32a   :  { %2701 = vmatprep.subr.mxu0 %v3018_v0 }
 0x32b   :  { %2702 = vmatpush3.msra.mxu0 %v810_v60  ;;  %v1067_v60 = vmul.f32 %v3520_v17, %v3391_v34 }
 0x32c   :  { %2703 = vmatprep.subr.mxu0 %v3018_v0 }
 0x32d   :  { %2704 = vmatpush3.msra.mxu0 %v809_v7  ;;  %v1066_v7 = vmul.f32 %v3520_v17, %v3386_v33 }
 0x32e   :  { %2723 = vmatprep.subr.mxu0 %v3018_v0 }
 0x32f   :  { %v1083_v32 = vsel %vm4639_vm12, %v1066_v7, 0.0 }
 0x3bf   :  { %v3666_v61 = vpop.f32.mrf.mxu1 }
 0x3c1   :  { %v2616_v46 = vpop.f32.mrf.mxu1 }
 0x3c2   :  { %v1086_v46 = vsel %vm4638_vm4, %v1067_v60, 0.0 }
 0x3ca   :  { %v795_v59 = vpop.f32.mrf.mxu0 }
 0x3cb   :  { %2706 = vmatmul.mubr.f32.vlgmr.msra.gmra.mxu0 %v795_v59 }
 0x3cc   :  { %v2625_v45 = vpop.f32.mrf.mxu0  ;;  %2708 = vmatprep.mubr.msk.f32.mxu0 %vm4633_vm8, %v3018_v0 }
 0x3ce   :  { %v800_v50 = vpop.f32.mrf.mxu0 }
 0x3cf   :  { %2709 = vmatmul.mubr.f32.gmra.mxu0 %v800_v50 }
 0x3d0   :  { %v2628_v62 = vpop.f32.mrf.mxu0  ;;  %2711 = vmatprep.mubr.msk.f32.mxu0 %vm4633_vm8, %v3018_v0 }
 0x3d2   :  { %v805_v63 = vpop.f32.mrf.mxu0 }
 0x3d3   :  { %2712 = vmatmul.mubr.f32.gmra.mxu0 %v805_v63 }
 0x3d4   :  { %v2631_v2 = vpop.f32.mrf.mxu0  ;;  %2729 = vmatprep.mubr.msk.f32.mxu0 %vm4633_vm8, %v3018_v0  ;;  %vm4644_vm8 = vcmask 195584  }
 0x3df   :  { %v907_v3 = vpop.f32.mrf.mxu1 }
 0x3e1   :  { %v2666_v4 = vpop.f32.mrf.mxu1 }
 0x3e3   :  { %v912_v8 = vpop.f32.mrf.mxu1 }
 0x3e5   :  { %v2669_v9 = vpop.f32.mrf.mxu1 }
 0x3e7   :  { %v917_v20 = vpop.f32.mrf.mxu1 }
 0x3e9   :  { %v2672_v22 = vpop.f32.mrf.mxu1 }
 0x48b   :  { %v987_v5 = vpop.f32.mrf.mxu0 }
 0x48c   :  { %v988_v25 = vadd.f32 %v987_v5, %v907_v3 }
 0x48d   :  { %v2707_v10 = vpop.f32.mrf.mxu0 }
 0x48e   :  { %v1008_v27 = vadd.f32 %v2288_v23, %v988_v25 }
 0x48f   :  { %v992_v28 = vpop.f32.mrf.mxu0 }
 0x490   :  { %v1011_v29 = vmax.f32 %v1008_v27, 0.0  ;;  %v993_v14 = vadd.f32 %v992_v28, %v912_v8 }
 0x491   :  { %v2710_v31 = vpop.f32.mrf.mxu0 }
 0x492   :  { %v1009_v36 = vadd.f32 %v2288_v23, %v993_v14  ;;  %v3681_v37 = vmul.f32 %v1011_v29, %v3448_v44 }
 0x493   :  { %v997_v38 = vpop.f32.mrf.mxu0 }
 0x494   :  { %v1012_v39 = vmax.f32 %v1009_v36, 0.0  ;;  %v998_v41 = vadd.f32 %v997_v38, %v917_v20  ;;  %v1024_v42 = vmul.f32 %v2289_v35, %v3681_v37 }
 0x495   :  { %v2713_v43 = vpop.f32.mrf.mxu0 }
 0x496   :  { %v1010_v47 = vadd.f32 %v2288_v23, %v998_v41  ;;  %1027 = vadd.xlane.f32.xlu1 %v1024_v42  ;;  %v3685_v48 = vmul.f32 %v1012_v39, %v3442_v40 }
 0x498   :  { %v1013_v49 = vmax.f32 %v1010_v47, 0.0  ;;  %v1025_v51 = vmul.f32 %v2289_v35, %v3685_v48 }
 0x49a   :  { %1029 = vadd.xlane.f32.xlu0 %v1025_v51  ;;  %v3691_v54 = vmul.f32 %v1013_v49, %v3458_v53 }
 0x49c   :  { %v1026_v56 = vmul.f32 %v2289_v35, %v3691_v54 }
 0x49e   :  { %1081 = vadd.xlane.f32.xlu0 %v1080_v57  ;;  %1031 = vadd.xlane.f32.xlu1 %v1026_v56 }
 0x4a2   :  { %1087 = vadd.xlane.f32.xlu0 %v1086_v46  ;;  %1084 = vadd.xlane.f32.xlu1 %v1083_v32 }
 0x51f   :  { %v1028_v59 = vpop.xlane.xlu1 %1027 }
 0x520   :  { %2967 = vtanh.f32 %v1028_v59 }
 0x523   :  { %v1030_v45 = vpop.xlane.xlu0 %1029 }
 0x524   :  { %2969 = vtanh.f32 %v1030_v45 }
 0x527   :  { %v1032_v50 = vpop.xlane.xlu1 %1031  ;;  %v1082_v43 = vpop.xlane.xlu0 %1081 }
 0x528   :  { %2971 = vtanh.f32 %v1032_v50  ;;  %v1089_v51 = vmul.f32 0.8, %v1082_v43 }
 0x52b   :  { %v1085_v47 = vpop.xlane.xlu1 %1084  ;;  %v1088_v56 = vpop.xlane.xlu0 %1087 }
 0x52c   :  { %v1090_v49 = vmul.f32 0.8, %v1085_v47  ;;  %v1091_v46 = vmul.f32 0.8, %v1088_v56  ;;  %v1423_v47 = vld [vmem:[%s4578_s11 + $0xd0] sm:$0xff] }
 0x52d   :  { %v3701_v62 = vpop.eup %2967 }
 0x52e   :  { %v1036_v33 = vsel %vm3350_vm2, %v3701_v62, 0.0  ;;  %v2291_v57 = vadd.f32 -0.0001, %v1090_v49  ;;  %v2292_v45 = vadd.f32 -0.0001, %v1091_v46  ;;  %v1411_v46 = vld [vmem:[%s4578_s11 + $0x70] sm:$0xff] }
 0x52f   :  { %v1039_v4 = vsel %vm4641_vm15, %v1036_v33, 0.0 }
 0x531   :  { %v3703_v34 = vpop.eup %2969 }
 0x532   :  { %v1037_v63 = vsel %vm3359_vm3, %v3703_v34, 0.0 }
 0x533   :  { %v1040_v2 = vsel %vm4640_vm13, %v1037_v63, 0.0  ;;  %v1097_v63 = vceil.f32 %v2292_v45  ;;  %v1418_v45 = vld [vmem:[%s4578_s11 + $0xa8] sm:$0xff] }
 0x534   :  { %v1041_v9 = vadd.f32 %v1040_v2, %v1039_v4 }
 0x535   :  { %v3712_v3 = vpop.eup %2971 }
 0x536   :  { %v1038_v8 = vsel %vm4629_vm14, %v3712_v3, 0.0 }
 0x537   :  { %v1042_v20 = vsel %vm4642_vm9, %v1038_v8, 0.0 }
 0x538   :  { %v1043_v22 = vadd.f32 %v1042_v20, %v1041_v9 }
 0x53a   :  { %v1044_v5 = vrot.slane %v1043_v22, 4 }
 0x53c   :  { %v1045_v23 = vadd.f32 %v1044_v5, %v1043_v22  ;;  %v1123_v22 = vmul.f32 %v3712_v3, %v3691_v54 }
 0x53e   :  { %v1046_v25 = vrot.slane %v1045_v23, 2 }
 0x540   :  { %v1047_v10 = vadd.f32 %v1046_v25, %v1045_v23  ;;  %v1122_v23 = vmul.f32 %v3703_v34, %v3685_v48 }
 0x542   :  { %v1048_v27 = vrot.slane %v1047_v10, 1 }
 0x544   :  { %v1049_v28 = vadd.f32 %v1048_v27, %v1047_v10 }
 0x546   :  { %vm1051_vm11 = vcmp.gt.f32.partialorder %v1049_v28, %v3703_v34  ;;  %vm1054_vm10 = vcmp.eq.f32.partialorder %v1049_v28, %v3703_v34  ;;  %vm1053_vm0 = vcmp.eq.f32.partialorder %v1049_v28, %v3701_v62  ;;  %vm1050_vm4 = vcmp.gt.f32.partialorder %v1049_v28, %v3701_v62 }
 0x547   :  { %vm1057_vm1 = vmand %vm1054_vm10, %vm4598_vm5  ;;  %vm1055_vm13 = vcmp.eq.f32.partialorder %v1049_v28, %v3712_v3  ;;  %vm1052_vm9 = vcmp.gt.f32.partialorder %v1049_v28, %v3712_v3  ;;  %vm4643_vm10 = vcmp.lt.s32.totalorder %v3340_v12, %v3346_v15  ;;  %v1121_v3 = vmul.f32 %v3701_v62, %v3681_v37  ;;  %v1428_v37 = vld [vmem:[%s4578_s11 + $0xf8] sm:$0xff] }
 0x548   :  { %vm1060_vm12 = vmor %vm1051_vm11, %vm1057_vm1 }
 0x549   :  { %v1063_v29 = vsel %vm1060_vm12, 1.0, %v3018_v0  ;;  %vm1056_vm15 = vmand %vm1053_vm0, %vm4603_vm6 }
 0x54a   :  { %v1069_v14 = vmul.f32 %v1066_v7, %v1063_v29  ;;  %vm1059_vm7 = vmor %vm1050_vm4, %vm1056_vm15  ;;  %v2290_v7 = vadd.f32 -0.0001, %v1089_v51  ;;  %vm4601_vm4 = vcmp.gt.f32.partialorder %v3448_v44, 0.0  ;;  %v1422_v51 = vld [vmem:[%s4578_s11 + $0xc8] sm:$0xff] }
 0x54b   :  { %v1062_v31 = vsel %vm1059_vm7, 1.0, %v3018_v0  ;;  %vm1058_vm5 = vmand %vm1055_vm13, %vm4643_vm10  ;;  %vm4600_vm10 = vcmp.gt.f32.partialorder %v3458_v53, 0.0 }
 0x54c   :  { %v1074_v35 = vsel %vm4644_vm8, %v1069_v14, 0.0  ;;  %v1068_v36 = vmul.f32 %v1065_v52, %v1062_v31  ;;  %vm1061_vm11 = vmor %vm1052_vm9, %vm1058_vm5  ;;  %v1096_v52 = vceil.f32 %v2291_v57  ;;  %v1095_v59 = vceil.f32 %v2290_v7  ;;  %v1427_v14 = vld [vmem:[%s4578_s11 + $0xf0] sm:$0xff]  ;;  %v1421_v57 = vld [vmem:[%s4578_s11 + $0xc0] sm:$0xff] }
 0x54d   :  { %1075 = vadd.xlane.f32.xlu0 %v1074_v35  ;;  %v1064_v38 = vsel %vm1061_vm11, 1.0, %v3018_v0  ;;  %vm4645_vm1 = vmmov %vm4644_vm8  ;;  %vm4602_vm5 = vcmp.gt.f32.partialorder %v3442_v40, 0.0  ;;  %v1426_v35 = vld [vmem:[%s4578_s11 + $0xe8] sm:$0xff] }
 0x54e   :  { %v1071_v39 = vsel %vm4645_vm1, %v1068_v36, 0.0  ;;  %v1070_v41 = vmul.f32 %v1067_v60, %v1064_v38  ;;  %vm4646_vm0 = vmmov %vm4645_vm1  ;;  %v1425_v38 = vld [vmem:[%s4578_s11 + $0xe0] sm:$0xff] }
 0x54f   :  { %1072 = vadd.xlane.f32.xlu1 %v1071_v39  ;;  %vm4647_vm15 = vmmov %vm4646_vm0 }
 0x550   :  { %v1077_v42 = vsel %vm4646_vm0, %v1070_v41, 0.0  ;;  %vm4648_vm9 = vmmov %vm4646_vm0  ;;  %v1424_v41 = vld [vmem:[%s4578_s11 + $0xd8] sm:$0xff] }
 0x553   :  { %1078 = vadd.xlane.f32.xlu1 %v1077_v42 }
 0x5d6   :  { %v1076_v32 = vpop.xlane.xlu0 %1075 }
 0x5d7   :  { %vm1099_vm7 = vcmp.lt.f32.partialorder %v1076_v32, %v1096_v52  ;;  %v1419_v32 = vld [vmem:[%s4578_s11 + $0xb0] sm:$0xff] }
 0x5d8   :  { %vm1102_vm8 = vmand %vm1099_vm7, %vm4602_vm5  ;;  %v1073_v60 = vpop.xlane.xlu1 %1072 }
 0x5d9   :  { %v3744_v50 = vsel %vm1102_vm8, 1.0, %v3018_v0  ;;  %vm1098_vm12 = vcmp.lt.f32.partialorder %v1073_v60, %v1095_v59  ;;  %vm4649_vm7 = vmmov %vm4646_vm0  ;;  %vm4650_vm8 = vmmov 0   ;;  %v1409_v60 = vld [vmem:[%s4578_s11 + $0x60] sm:$0xff] }
 0x5da   :  { %v1108_v33 = vsel %vm3359_vm3, %v3744_v50, 0.0  ;;  %vm1101_vm13 = vmand %vm1098_vm12, %vm4601_vm4  ;;  %v3778_v54 = vmul.f32 %v1122_v23, %v3744_v50  ;;  %v1128_v56 = vmul.f32 %v3744_v50, %v3547_v26  ;;  %v1420_v26 = vld [vmem:[%s4578_s11 + $0xb8] sm:$0xff]  ;;  %v1405_v23 = vld [vmem:[%s4578_s11 + $0x40] sm:$0xff] }
 0x5db   :  { %v3753_v2 = vsel %vm1101_vm13, 1.0, %v3018_v0  ;;  %v1111_v9 = vsel %vm4647_vm15, %v1108_v33, 0.0  ;;  %vm4651_vm12 = vmmov %vm4646_vm0  ;;  %v1417_v33 = vld [vmem:[%s4578_s11 + $0xa0] sm:$0xff] }
 0x5dc   :  { %v1107_v4 = vsel %vm3350_vm2, %v3753_v2, 0.0  ;;  %v1079_v8 = vpop.xlane.xlu1 %1078  ;;  %v3787_v48 = vmul.f32 %v1121_v3, %v3753_v2  ;;  %v1127_v42 = vmul.f32 %v3753_v2, %v3527_v21  ;;  %v1412_v21 = vld [vmem:[%s4578_s11 + $0x78] sm:$0xff]  ;;  %vm4652_vm13 = vmmov %vm4646_vm0  ;;  %v1402_v3 = vld [vmem:[%s4578_s11 + $0x28] sm:$0xff] }
 0x5dd   :  { %v1110_v20 = vsel %vm4648_vm9, %v1107_v4, 0.0  ;;  %vm1100_vm11 = vcmp.lt.f32.partialorder %v1079_v8, %v1097_v63  ;;  %vm4653_vm15 = vmmov %vm4646_vm0  ;;  %v1408_v63 = vld [vmem:[%s4578_s11 + $0x58] sm:$0xff]  ;;  %v1407_v8 = vld [vmem:[%s4578_s11 + $0x50] sm:$0xff] }
 0x5de   :  { %vm1103_vm1 = vmand %vm1100_vm11, %vm4600_vm10  ;;  %v1112_v25 = vadd.f32 %v1111_v9, %v1110_v20  ;;  %v1416_v4 = vld [vmem:[%s4578_s11 + $0x98] sm:$0xff]  ;;  %v1415_v9 = vld [vmem:[%s4578_s11 + $0x90] sm:$0xff]  ;;  %vm4660_vm10 = vcmp.lt.s32.totalorder %v3340_v12, %v3343_v13 }
 0x5df   :  { %v3766_v5 = vsel %vm1103_vm1, 1.0, %v3018_v0  ;;  %v1406_v20 = vld [vmem:[%s4578_s11 + $0x48] sm:$0xff]  ;;  %vm4654_vm9 = vmmov %vm4646_vm0 }
 0x5e0   :  { %v1109_v10 = vsel %vm4629_vm14, %v3766_v5, 0.0  ;;  %v3774_v27 = vmul.f32 %v1123_v22, %v3766_v5  ;;  %v1129_v52 = vmul.f32 %v3766_v5, %v3568_v30  ;;  %v1410_v30 = vld [vmem:[%s4578_s11 + $0x68] sm:$0xff]  ;;  %vm4655_vm11 = vmmov %vm4646_vm0 }
 0x5e1   :  { %v1113_v28 = vsel %vm4646_vm0, %v1109_v10, 0.0  ;;  %v1414_v22 = vld [vmem:[%s4578_s11 + $0x88] sm:$0xff]  ;;  %v1404_v10 = vld [vmem:[%s4578_s11 + $0x38] sm:$0xff]  ;;  %vm4656_vm1 = vmmov %vm4646_vm0 }
 0x5e2   :  { %v1114_v29 = vadd.f32 %v1113_v28, %v1112_v25  ;;  %2715 = vmatpush3.msra.mxu1 %v3774_v27  ;;  %2724 = vmatpush3.msra.mxu0 %v3774_v27  ;;  %v1413_v25 = vld [vmem:[%s4578_s11 + $0x80] sm:$0xff]  ;;  %v1403_v28 = vld [vmem:[%s4578_s11 + $0x30] sm:$0xff] }
 0x5e3   :  { %2716 = vmatprep.subr.mxu1 %v3018_v0  ;;  %2725 = vmatprep.subr.mxu0 %v3018_v0 }
 0x5e4   :  { %v1115_v34 = vrot.slane %v1114_v29, 4  ;;  %2717 = vmatpush3.msra.mxu1 %v3778_v54  ;;  %2726 = vmatpush3.msra.mxu0 %v3778_v54 }
 0x5e5   :  { %2718 = vmatprep.subr.mxu1 %v3018_v0  ;;  %2727 = vmatprep.subr.mxu0 %v3018_v0 }
 0x5e6   :  { %v1116_v62 = vadd.f32 %v1115_v34, %v1114_v29  ;;  %2719 = vmatpush3.msra.mxu1 %v3787_v48  ;;  %2728 = vmatpush3.msra.mxu0 %v3787_v48  ;;  %v1401_v29 = vld [vmem:[%s4578_s11 + $0x20] sm:$0xff]  ;;  %v1400_v34 = vld [vmem:[%s4578_s11 + $0x18] sm:$0xff] }
 0x5e7   :  { %2738 = vmatprep.subr.mxu1 %v3018_v0  ;;  %2721 = vmatmul.mubr.msk.f32.vlgmr.msra.gmra.mxu1 %vm4649_vm7, %v3488_v55  ;;  %vm4657_vm7 = vmmov %vm4646_vm0 }
 0x5e8   :  { %v1117_v31 = vrot.slane %v1116_v62, 2  ;;  %2739 = vmatpush3.msra.mxu1 %v1428_v37  ;;  %2770 = vmatprep.mubr.msk.f32.mxu1 %vm4650_vm8, %v3018_v0  ;;  %v1399_v37 = vld [vmem:[%s4578_s11 + $0x10] sm:$0xff] }
 0x5e9   :  { %2740 = vmatprep.subr.mxu1 %v3018_v0  ;;  %2779 = vmatprep.subr.mxu0 %v3018_v0 }
 0x5ea   :  { %v1118_v36 = vadd.f32 %v1117_v31, %v1116_v62  ;;  %2741 = vmatpush3.msra.mxu1 %v1427_v14  ;;  %v1398_v62 = vld [vmem:[%s4578_s11 + $0x8] sm:$0xff]  ;;  %v1397_v14 = vld [vmem:[%s4578_s11] sm:$0xff] }
 0x5eb   :  { %2742 = vmatprep.subr.mxu1 %v3018_v0 }
 0x5ec   :  { %v1119_v39 = vrot.slane %v1118_v36, 1  ;;  %2743 = vmatpush3.msra.mxu1 %v1426_v35 }
 0x5ed   :  { %2744 = vmatprep.subr.mxu1 %v3018_v0 }
 0x5ee   :  { %v3821_v43 = vadd.f32 %v1119_v39, %v1118_v36  ;;  %2745 = vmatpush3.msra.mxu1 %v1425_v38 }
 0x5ef   :  { %2746 = vmatprep.subr.mxu1 %v3018_v0 }
 0x5f0   :  { %2747 = vmatpush3.msra.mxu1 %v1424_v41  ;;  %v1130_v49 = vmul.f32 %v1127_v42, %v3821_v43  ;;  %v1131_v7 = vmul.f32 %v1128_v56, %v3821_v43  ;;  %v1132_v59 = vmul.f32 %v1129_v52, %v3821_v43 }
 0x5f1   :  { %2748 = vmatprep.subr.mxu1 %v3018_v0 }
 0x5f2   :  { %2730 = vmatmul.mubr.msk.f32.vlgmr.msra.gmra.mxu0 %vm4651_vm12, %v1130_v49  ;;  %2749 = vmatpush3.msra.mxu1 %v1423_v47  ;;  %vm4658_vm12 = vmmov %vm4646_vm0 }
 0x5f3   :  { %2750 = vmatprep.subr.mxu1 %v3018_v0  ;;  %2732 = vmatprep.mubr.msk.f32.mxu0 %vm4650_vm8, %v3018_v0 }
 0x5f4   :  { %2751 = vmatpush3.msra.mxu1 %v1422_v51  ;;  %2780 = vmatpush3.msra.mxu0 %v1412_v21 }
 0x5f5   :  { %2752 = vmatprep.subr.mxu1 %v3018_v0  ;;  %2781 = vmatprep.subr.mxu0 %v3018_v0 }
 0x5f6   :  { %2733 = vmatmul.mubr.msk.f32.gmra.mxu0 %vm4652_vm13, %v1131_v7  ;;  %2753 = vmatpush3.msra.mxu1 %v1421_v57 }
 0x5f7   :  { %2754 = vmatprep.subr.mxu1 %v3018_v0  ;;  %2735 = vmatprep.mubr.msk.f32.mxu0 %vm4650_vm8, %v3018_v0 }
 0x5f8   :  { %2755 = vmatpush3.msra.mxu1 %v1420_v26  ;;  %2782 = vmatpush3.msra.mxu0 %v1411_v46  ;;  %v2297_v46 = vld [vmem:[%s4579_s12] ss:$0 sm:$0xff] }
 0x5f9   :  { %2756 = vmatprep.subr.mxu1 %v3018_v0  ;;  %2783 = vmatprep.subr.mxu0 %v3018_v0 }
 0x5fa   :  { %2736 = vmatmul.mubr.msk.f32.gmra.mxu0 %vm4653_vm15, %v1132_v59  ;;  %2757 = vmatpush3.msra.mxu1 %v1419_v32 }
 0x5fb   :  { %2758 = vmatprep.subr.mxu1 %v3018_v0  ;;  %2784 = vmatpush3.msra.mxu0 %v1410_v30 }
 0x5fc   :  { %2759 = vmatpush3.msra.mxu1 %v1418_v45  ;;  %2785 = vmatprep.subr.mxu0 %v3018_v0 }
 0x5fd   :  { %2760 = vmatprep.subr.mxu1 %v3018_v0  ;;  %2786 = vmatpush3.msra.mxu0 %v1409_v60 }
 0x5fe   :  { %2761 = vmatpush3.msra.mxu1 %v1417_v33  ;;  %2787 = vmatprep.subr.mxu0 %v3018_v0 }
 0x5ff   :  { %2762 = vmatprep.subr.mxu1 %v3018_v0  ;;  %2788 = vmatpush3.msra.mxu0 %v1408_v63  ;;  %v2298_v63 = vld [vmem:[%s4580_s13] ss:$0 sm:$0xff] }
 0x600   :  { %2763 = vmatpush3.msra.mxu1 %v1416_v4  ;;  %2789 = vmatprep.subr.mxu0 %v3018_v0 }
 0x601   :  { %2764 = vmatprep.subr.mxu1 %v3018_v0  ;;  %2790 = vmatpush3.msra.mxu0 %v1407_v8 }
 0x602   :  { %2765 = vmatpush3.msra.mxu1 %v1415_v9  ;;  %2791 = vmatprep.subr.mxu0 %v3018_v0 }
 0x603   :  { %2766 = vmatprep.subr.mxu1 %v3018_v0  ;;  %2792 = vmatpush3.msra.mxu0 %v1406_v20 }
 0x604   :  { %2767 = vmatpush3.msra.mxu1 %v1414_v22  ;;  %2793 = vmatprep.subr.mxu0 %v3018_v0 }
 0x605   :  { %2768 = vmatprep.subr.mxu1 %v3018_v0  ;;  %2794 = vmatpush3.msra.mxu0 %v1405_v23 }
 0x606   :  { %2769 = vmatpush3.msra.mxu1 %v1413_v25  ;;  %2795 = vmatprep.subr.mxu0 %v3018_v0 }
 0x607   :  { %2771 = vmatmul.mubr.f32.vlgmr.msra.gmra.mxu1 %v3787_v48  ;;  %2796 = vmatpush3.msra.mxu0 %v1404_v10 }
 0x608   :  { %2773 = vmatprep.mubr.msk.f32.mxu1 %vm4650_vm8, %v3018_v0  ;;  %2797 = vmatprep.subr.mxu0 %v3018_v0 }
 0x609   :  { %2798 = vmatpush3.msra.mxu0 %v1403_v28  ;;  %2811 = vmatprep.mubr.msk.f32.mxu0 %vm4650_vm8, %v3018_v0 }
 0x60a   :  { %2799 = vmatprep.subr.mxu0 %v3018_v0  ;;  %2820 = vmatprep.subr.mxu1 %v3018_v0 }
 0x60b   :  { %2774 = vmatmul.mubr.f32.gmra.mxu1 %v3778_v54  ;;  %2800 = vmatpush3.msra.mxu0 %v1402_v3 }
 0x60c   :  { %2776 = vmatprep.mubr.msk.f32.mxu1 %vm4650_vm8, %v3018_v0  ;;  %2801 = vmatprep.subr.mxu0 %v3018_v0 }
 0x60d   :  { %2802 = vmatpush3.msra.mxu0 %v1401_v29 }
 0x60e   :  { %2803 = vmatprep.subr.mxu0 %v3018_v0 }
 0x60f   :  { %2777 = vmatmul.mubr.f32.gmra.mxu1 %v3774_v27  ;;  %2804 = vmatpush3.msra.mxu0 %v1400_v34  ;;  %v2989_v34 = vld [vmem:[%s4623_s26 + $0x10] sm:$0xff] }
 0x610   :  { %2805 = vmatprep.subr.mxu0 %v3018_v0  ;;  %2826 = vmatprep.mubr.msk.f32.mxu1 %vm4650_vm8, %v3018_v0 }
 0x611   :  { %2806 = vmatpush3.msra.mxu0 %v1399_v37  ;;  %v1655_v37 = vmul.f32 %v2989_v34, %v3821_v43 }
 0x612   :  { %2807 = vmatprep.subr.mxu0 %v3018_v0 }
 0x613   :  { %2808 = vmatpush3.msra.mxu0 %v1398_v62 }
 0x614   :  { %2809 = vmatprep.subr.mxu0 %v3018_v0 }
 0x615   :  { %2810 = vmatpush3.msra.mxu0 %v1397_v14 }
 0x616   :  { %2829 = vmatprep.subr.mxu0 %v3018_v0 }
 0x6a7   :  { %v3958_v31 = vpop.f32.mrf.mxu1 }
 0x6a9   :  { %v2722_v35 = vpop.f32.mrf.mxu1 }
 0x6aa   :  { %v1674_v35 = vsel %vm4654_vm9, %v1655_v37, 0.0 }
 0x6b2   :  { %v1383_v36 = vpop.f32.mrf.mxu0 }
 0x6b3   :  { %2812 = vmatmul.mubr.f32.vlgmr.msra.gmra.mxu0 %v1383_v36  ;;  %v2990_v36 = vld [vmem:[%s4623_s26] sm:$0xff] }
 0x6b4   :  { %v2731_v38 = vpop.f32.mrf.mxu0  ;;  %2814 = vmatprep.mubr.msk.f32.mxu0 %vm4650_vm8, %v3018_v0 }
 0x6b5   :  { %v1653_v38 = vmul.f32 %v2990_v36, %v3821_v43  ;;  %v4047_v36 = vld [vmem:[%s4665_s8 + $0x8] sm:$0xff] }
 0x6b6   :  { %v1388_v39 = vpop.f32.mrf.mxu0 }
 0x6b7   :  { %2815 = vmatmul.mubr.f32.gmra.mxu0 %v1388_v39  ;;  %v2991_v39 = vld [vmem:[%s4623_s26 + $0x8] sm:$0xff] }
 0x6b8   :  { %v2734_v41 = vpop.f32.mrf.mxu0  ;;  %2817 = vmatprep.mubr.msk.f32.mxu0 %vm4650_vm8, %v3018_v0 }
 0x6b9   :  { %v1654_v41 = vmul.f32 %v2991_v39, %v3821_v43 }
 0x6ba   :  { %v1393_v42 = vpop.f32.mrf.mxu0 }
 0x6bb   :  { %2818 = vmatmul.mubr.f32.gmra.mxu0 %v1393_v42  ;;  %v1668_v42 = vsel %vm4655_vm11, %v1653_v38, 0.0  ;;  %vm4659_vm11 = vcmp.lt.s32.totalorder %v3340_v12, %v3346_v15 }
 0x6bc   :  { %v2737_v47 = vpop.f32.mrf.mxu0  ;;  %2861 = vmatprep.mubr.msk.f32.mxu0 %vm4650_vm8, %v3018_v0 }
 0x6bd   :  { %v1671_v47 = vsel %vm4656_vm1, %v1654_v41, 0.0 }
 0x6c7   :  { %v1495_v49 = vpop.f32.mrf.mxu1 }
 0x6c9   :  { %v2772_v51 = vpop.f32.mrf.mxu1 }
 0x6cb   :  { %v1500_v21 = vpop.f32.mrf.mxu1 }
 0x6cd   :  { %v2775_v56 = vpop.f32.mrf.mxu1 }
 0x6cf   :  { %v1505_v57 = vpop.f32.mrf.mxu1 }
 0x6d1   :  { %v2778_v7 = vpop.f32.mrf.mxu1 }
 0x773   :  { %v1575_v26 = vpop.f32.mrf.mxu0 }
 0x774   :  { %v1576_v52 = vadd.f32 %v1575_v26, %v1495_v49 }
 0x775   :  { %v2813_v32 = vpop.f32.mrf.mxu0 }
 0x776   :  { %v1596_v59 = vadd.f32 %v2297_v46, %v1576_v52 }
 0x777   :  { %v1580_v30 = vpop.f32.mrf.mxu0 }
 0x778   :  { %v1599_v45 = vmax.f32 %v1596_v59, 0.0  ;;  %v1581_v60 = vadd.f32 %v1580_v30, %v1500_v21 }
 0x779   :  { %v2816_v33 = vpop.f32.mrf.mxu0 }
 0x77a   :  { %v1597_v4 = vadd.f32 %v2297_v46, %v1581_v60  ;;  %v3973_v8 = vmul.f32 %v1599_v45, %v3753_v2 }
 0x77b   :  { %v1585_v9 = vpop.f32.mrf.mxu0 }
 0x77c   :  { %v1600_v20 = vmax.f32 %v1597_v4, 0.0  ;;  %v1586_v22 = vadd.f32 %v1585_v9, %v1505_v57  ;;  %v1612_v23 = vmul.f32 %v2298_v63, %v3973_v8 }
 0x77d   :  { %v2819_v25 = vpop.f32.mrf.mxu0 }
 0x77e   :  { %v1598_v10 = vadd.f32 %v2297_v46, %v1586_v22  ;;  %1615 = vadd.xlane.f32.xlu0 %v1612_v23  ;;  %v3977_v28 = vmul.f32 %v1600_v20, %v3744_v50 }
 0x780   :  { %v1601_v3 = vmax.f32 %v1598_v10, 0.0  ;;  %v1613_v29 = vmul.f32 %v2298_v63, %v3977_v28 }
 0x782   :  { %1617 = vadd.xlane.f32.xlu1 %v1613_v29  ;;  %v3985_v62 = vmul.f32 %v1601_v3, %v3766_v5 }
 0x784   :  { %v1614_v14 = vmul.f32 %v2298_v63, %v3985_v62 }
 0x786   :  { %1675 = vadd.xlane.f32.xlu1 %v1674_v35  ;;  %1619 = vadd.xlane.f32.xlu0 %v1614_v14 }
 0x78a   :  { %1669 = vadd.xlane.f32.xlu1 %v1668_v42  ;;  %1672 = vadd.xlane.f32.xlu0 %v1671_v47 }
 0x807   :  { %v1616_v49 = vpop.xlane.xlu0 %1615 }
 0x808   :  { %2973 = vtanh.f32 %v1616_v49 }
 0x80b   :  { %v1618_v51 = vpop.xlane.xlu1 %1617 }
 0x80c   :  { %2975 = vtanh.f32 %v1618_v51 }
 0x80f   :  { %v1620_v21 = vpop.xlane.xlu0 %1619 }
 0x810   :  { %2977 = vtanh.f32 %v1620_v21 }
 0x815   :  { %v3999_v56 = vpop.eup %2973 }
 0x816   :  { %v1624_v7 = vsel %vm3350_vm2, %v3999_v56, 0.0 }
 0x817   :  { %v1627_v32 = vsel %vm4657_vm7, %v1624_v7, 0.0 }
 0x819   :  { %v4001_v57 = vpop.eup %2975 }
 0x81a   :  { %v1625_v26 = vsel %vm3359_vm3, %v4001_v57, 0.0 }
 0x81b   :  { %v1628_v46 = vsel %vm4646_vm0, %v1625_v26, 0.0 }
 0x81c   :  { %v1629_v30 = vadd.f32 %v1628_v46, %v1627_v32 }
 0x81d   :  { %v4010_v52 = vpop.eup %2977 }
 0x81e   :  { %v1626_v59 = vsel %vm4629_vm14, %v4010_v52, 0.0  ;;  %vm4662_vm14 = vcmask 195584  }
 0x81f   :  { %v1630_v45 = vsel %vm4658_vm12, %v1626_v59, 0.0 }
 0x820   :  { %v1631_v60 = vadd.f32 %v1630_v45, %v1629_v30 }
 0x822   :  { %v1632_v33 = vrot.slane %v1631_v60, 4 }
 0x824   :  { %v1633_v63 = vadd.f32 %v1632_v33, %v1631_v60  ;;  %v1676_v60 = vpop.xlane.xlu1 %1675  ;;  %v1673_v33 = vpop.xlane.xlu0 %1672 }
 0x826   :  { %v1634_v4 = vrot.slane %v1633_v63, 2 }
 0x828   :  { %v1635_v9 = vadd.f32 %v1634_v4, %v1633_v63  ;;  %v1679_v63 = vmul.f32 0.8, %v1676_v60  ;;  %v1670_v4 = vpop.xlane.xlu1 %1669 }
 0x82a   :  { %v1636_v20 = vrot.slane %v1635_v9, 1 }
 0x82c   :  { %v1637_v22 = vadd.f32 %v1636_v20, %v1635_v9  ;;  %v1678_v9 = vmul.f32 0.8, %v1673_v33  ;;  %v2301_v20 = vadd.f32 -0.0001, %v1679_v63 }
 0x82e   :  { %vm1640_vm13 = vcmp.gt.f32.partialorder %v1637_v22, %v4010_v52  ;;  %vm1643_vm15 = vcmp.eq.f32.partialorder %v1637_v22, %v4010_v52  ;;  %vm1642_vm9 = vcmp.eq.f32.partialorder %v1637_v22, %v4001_v57  ;;  %vm1639_vm0 = vcmp.gt.f32.partialorder %v1637_v22, %v4001_v57 }
 0x82f   :  { %vm1646_vm1 = vmand %vm1643_vm15, %vm4659_vm11  ;;  %vm1641_vm12 = vcmp.eq.f32.partialorder %v1637_v22, %v3999_v56  ;;  %vm1638_vm5 = vcmp.gt.f32.partialorder %v1637_v22, %v3999_v56  ;;  %vm4661_vm15 = vcmp.lt.s32.totalorder %v3340_v12, %v3338_v11  ;;  %v1133_v11 = vmul.f32 %v3821_v43, %v3488_v55 }
 0x830   :  { %vm1649_vm7 = vmor %vm1640_vm13, %vm1646_vm1  ;;  %v1677_v22 = vmul.f32 0.8, %v1670_v4 }
 0x831   :  { %v1652_v23 = vsel %vm1649_vm7, 1.0, %v3018_v0  ;;  %vm1645_vm4 = vmand %vm1642_vm9, %vm4660_vm10 }
 0x832   :  { %v1658_v25 = vmul.f32 %v1655_v37, %v1652_v23  ;;  %vm1648_vm6 = vmor %vm1639_vm0, %vm1645_vm4  ;;  %v530_v37 = vmul.f32 %v3520_v17, %v3488_v55  ;;  %vm4605_vm4 = vcmask 190464   ;;  %v4053_v17 = vld [vmem:[%s4665_s8] sm:$0xff]  ;;  %vm4667_vm0 = vcmp.gt.f32.partialorder %v3448_v44, 0.0 }
 0x833   :  { %v1651_v10 = vsel %vm1648_vm6, 1.0, %v3018_v0  ;;  %vm1644_vm11 = vmand %vm1641_vm12, %vm4661_vm15  ;;  %v1134_v35 = vsel %vm4605_vm4, %v1133_v11, 0.0  ;;  %vm4608_vm9 = vcmp.eq.f32.partialorder %v4053_v17, 1.0  ;;  %vm4609_vm12 = vcmp.eq.f32.partialorder %v4053_v17, 0.0 }
 0x834   :  { %v1665_v15 = vsel %vm4662_vm14, %v1658_v25, 0.0  ;;  %v1657_v3 = vmul.f32 %v1654_v41, %v1651_v10  ;;  %vm1647_vm13 = vmor %vm1638_vm5, %vm1644_vm11  ;;  %v532_v12 = vsel %vm4605_vm4, %v530_v37, 0.0  ;;  %vm4666_vm5 = vcmp.gt.f32.partialorder %v3442_v40, 0.0  ;;  %v4092_v41 = vld [vmem:[%s4665_s8 + $0x10] sm:$0xff] }
 0x835   :  { %1666 = vadd.xlane.f32.xlu0 %v1665_v15  ;;  %v1650_v29 = vsel %vm1647_vm13, 1.0, %v3018_v0  ;;  %vm4663_vm1 = vmmov %vm4662_vm14  ;;  %vm612_vm14 = vcmp.eq.f32.partialorder %v4047_v36, 0.0  ;;  %vm651_vm15 = vcmp.eq.f32.partialorder %v4047_v36, 1.0  ;;  %v2300_v23 = vadd.f32 -0.0001, %v1678_v9 }
 0x836   :  { %v1662_v13 = vsel %vm4663_vm1, %v1657_v3, 0.0  ;;  %v1656_v34 = vmul.f32 %v1653_v38, %v1650_v29  ;;  %vm4664_vm6 = vmmov %vm4663_vm1  ;;  %v1685_v25 = vceil.f32 %v2301_v20  ;;  %v2299_v10 = vadd.f32 -0.0001, %v1677_v22  ;;  %v1919_v22 = vld [vmem:[%s4581_s14 + $0xc8] sm:$0xff] }
 0x837   :  { %1663 = vadd.xlane.f32.xlu1 %v1662_v13  ;;  %vm618_vm10 = vmand %vm612_vm14, %vm4666_vm5  ;;  %v1684_v3 = vceil.f32 %v2300_v23  ;;  %v1711_v29 = vmul.f32 %v4010_v52, %v3985_v62  ;;  %v1710_v37 = vmul.f32 %v4001_v57, %v3977_v28  ;;  %v1709_v52 = vmul.f32 %v3999_v56, %v3973_v8  ;;  %v4207_v8 = vld [vmem:[%s4631_s21] sm:$0x7]  ;;  %v1905_v23 = vld [vmem:[%s4581_s14 + $0x58] sm:$0xff] }
 0x838   :  { %v1659_v14 = vsel %vm4664_vm6, %v1656_v34, 0.0  ;;  %v621_v55 = vsel %vm618_vm10, 1, %v3020_v24  ;;  %vm653_vm7 = vmand %vm4608_vm9, %vm4667_vm0  ;;  %vm1210_vm10 = vcmp.gt.f32.partialorder %v3753_v2, 0.0  ;;  %v1683_v13 = vceil.f32 %v2299_v10  ;;  %v1904_v10 = vld [vmem:[%s4581_s14 + $0x50] sm:$0xff] }
 0x839   :  { %1660 = vadd.xlane.f32.xlu0 %v1659_v14  ;;  %v656_v43 = vsel %vm653_vm7, 1, %v3020_v24  ;;  %vm4668_vm11 = vmmov %vm4667_vm0 }
 0x83a   :  { %vm617_vm13 = vmand %vm4609_vm12, %vm4668_vm11 }
 0x83b   :  { %533 = vadd.xlane.f32.xlu1 %v532_v12  ;;  %vm4669_vm1 = vmmov %vm4666_vm5  ;;  %vm4606_vm5 = vcmp.eq.f32.partialorder %v4047_v36, 2.0  ;;  %v620_v38 = vsel %vm617_vm13, 1, %v3020_v24 }
 0x83c   :  { %vm654_vm6 = vmand %vm651_vm15, %vm4669_vm1 }
 0x83d   :  { %1135 = vadd.xlane.f32.xlu0 %v1134_v35  ;;  %v657_v39 = vsel %vm654_vm6, 1, %v3020_v24  ;;  %vm4670_vm0 = vmmov %vm4669_vm1  ;;  %vm1211_vm1 = vcmp.gt.f32.partialorder %v3744_v50, 0.0 }
 0x83e   :  { %vm687_vm7 = vmand %vm4606_vm5, %vm4670_vm0  ;;  %vm4607_vm0 = vcmp.eq.f32.partialorder %v4092_v41, 1.0 }
 0x83f   :  { %vm1213_vm11 = vmand %vm4609_vm12, %vm1210_vm10  ;;  %v690_v42 = vsel %vm687_vm7, 1, %v3020_v24  ;;  %vm4671_vm7 = vcmp.gt.f32.partialorder %v3458_v53, 0.0  ;;  %vm4673_vm12 = vcmp.gt.f32.partialorder %v3458_v53, 0.0 }
 0x840   :  { %v1216_v40 = vsel %vm1213_vm11, 1, %v3020_v24  ;;  %vm1277_vm13 = vmand %vm4606_vm5, %vm1211_vm1  ;;  %vm1212_vm5 = vcmp.gt.f32.partialorder %v3766_v5, 0.0 }
 0x841   :  { %vm1214_vm6 = vmand %vm612_vm14, %vm1211_vm1  ;;  %v1280_v47 = vsel %vm1277_vm13, 1, %v3020_v24 }
 0x842   :  { %v1217_v49 = vsel %vm1214_vm6, 1, %v3020_v24  ;;  %vm655_vm11 = vmand %vm4607_vm0, %vm4671_vm7  ;;  %vm683_vm7 = vcmp.eq.f32.partialorder %v4053_v17, 2.0 }
 0x843   :  { %vm1246_vm4 = vmand %vm4608_vm9, %vm1210_vm10  ;;  %v658_v51 = vsel %vm655_vm11, 1, %v3020_v24  ;;  %vm685_vm11 = vcmp.eq.f32.partialorder %v4092_v41, 2.0 }
 0x844   :  { %v1249_v21 = vsel %vm1246_vm4, 1, %v3020_v24  ;;  %vm1248_vm13 = vmand %vm4607_vm0, %vm1212_vm5  ;;  %vm4672_vm0 = vcmp.gt.f32.partialorder %v3448_v44, 0.0 }
 0x845   :  { %vm1247_vm6 = vmand %vm651_vm15, %vm1211_vm1  ;;  %v1251_v7 = vsel %vm1248_vm13, 1, %v3020_v24 }
 0x846   :  { %v1250_v26 = vsel %vm1247_vm6, 1, %v3020_v24  ;;  %vm1278_vm4 = vmand %vm685_vm11, %vm1212_vm5  ;;  %vm613_vm6 = vcmp.eq.f32.partialorder %v4092_v41, 0.0 }
 0x847   :  { %vm686_vm9 = vmand %vm683_vm7, %vm4672_vm0  ;;  %v1281_v46 = vsel %vm1278_vm4, 1, %v3020_v24 }
 0x848   :  { %v689_v32 = vsel %vm686_vm9, 1, %v3020_v24  ;;  %vm1276_vm13 = vmand %vm683_vm7, %vm1210_vm10 }
 0x849   :  { %v1279_v59 = vsel %vm1276_vm13, 1, %v3020_v24  ;;  %vm619_vm0 = vmand %vm613_vm6, %vm4673_vm12 }
 0x84a   :  { %v622_v44 = vsel %vm619_vm0, 1, %v3020_v24  ;;  %vm1215_vm9 = vmand %vm613_vm6, %vm1212_vm5 }
 0x84b   :  { %v1218_v30 = vsel %vm1215_vm9, 1, %v3020_v24  ;;  %vm4674_vm4 = vmmov %vm4673_vm12 }
 0x84c   :  { %627 = vperm.xlu1 %2960, %v621_v55   ;;  %vm688_vm13 = vmand %vm685_vm11, %vm4674_vm4 }
 0x84d   :  { %v691_v45 = vsel %vm688_vm13, 1, %v3020_v24 }
 0x850   :  { %660 = vperm.xlu1 %2960, %v656_v43  }
 0x853   :  { %624 = vperm.xlu0 %2959, %v620_v38  }
 0x854   :  { %663 = vperm.xlu1 %2960, %v657_v39  }
 0x857   :  { %696 = vperm.xlu0 %2959, %v690_v42  }
 0x858   :  { %1220 = vperm.xlu1 %2960, %v1216_v40  }
 0x85b   :  { %1286 = vperm.xlu0 %2959, %v1280_v47  }
 0x85c   :  { %1223 = vperm.xlu1 %2960, %v1217_v49   ;;  %v1925_v49 = vld [vmem:[%s4581_s14 + $0xf8] sm:$0xff] }
 0x85d   :  { %2830 = vmatpush3.msra.mxu0 %v1925_v49 }
 0x85e   :  { %2831 = vmatprep.subr.mxu0 %v3018_v0 }
 0x85f   :  { %666 = vperm.xlu0 %2959, %v658_v51   ;;  %v1924_v51 = vld [vmem:[%s4581_s14 + $0xf0] sm:$0xff] }
 0x860   :  { %1253 = vperm.xlu1 %2960, %v1249_v21   ;;  %2832 = vmatpush3.msra.mxu0 %v1924_v51 }
 0x861   :  { %2833 = vmatprep.subr.mxu0 %v3018_v0 }
 0x863   :  { %1259 = vperm.xlu0 %2959, %v1251_v7   ;;  %v1908_v7 = vld [vmem:[%s4581_s14 + $0x70] sm:$0xff] }
 0x864   :  { %1256 = vperm.xlu1 %2960, %v1250_v26   ;;  %v1923_v26 = vld [vmem:[%s4581_s14 + $0xe8] sm:$0xff] }
 0x865   :  { %2834 = vmatpush3.msra.mxu0 %v1923_v26 }
 0x866   :  { %2835 = vmatprep.subr.mxu0 %v3018_v0 }
 0x867   :  { %1289 = vperm.xlu0 %2959, %v1281_v46   ;;  %v1907_v46 = vld [vmem:[%s4581_s14 + $0x68] sm:$0xff] }
 0x868   :  { %693 = vperm.xlu1 %2960, %v689_v32   ;;  %v1922_v32 = vld [vmem:[%s4581_s14 + $0xe0] sm:$0xff] }
 0x869   :  { %2836 = vmatpush3.msra.mxu0 %v1922_v32 }
 0x86a   :  { %2837 = vmatprep.subr.mxu0 %v3018_v0 }
 0x86c   :  { %1283 = vperm.xlu1 %2960, %v1279_v59  }
 0x870   :  { %630 = vperm.xlu1 %2960, %v622_v44   ;;  %v1906_v44 = vld [vmem:[%s4581_s14 + $0x60] sm:$0xff] }
 0x874   :  { %1226 = vperm.xlu1 %2960, %v1218_v30   ;;  %v1921_v30 = vld [vmem:[%s4581_s14 + $0xd8] sm:$0xff] }
 0x875   :  { %2838 = vmatpush3.msra.mxu0 %v1921_v30 }
 0x876   :  { %2839 = vmatprep.subr.mxu0 %v3018_v0 }
 0x878   :  { %699 = vperm.xlu1 %2960, %v691_v45   ;;  %v1920_v45 = vld [vmem:[%s4581_s14 + $0xd0] sm:$0xff] }
 0x879   :  { %2840 = vmatpush3.msra.mxu0 %v1920_v45 }
 0x87a   :  { %2841 = vmatprep.subr.mxu0 %v3018_v0 }
 0x87b   :  { %2842 = vmatpush3.msra.mxu0 %v1919_v22 }
 0x87c   :  { %2843 = vmatprep.subr.mxu0 %v3018_v0 }
 0x8be   :  { %v1667_v15 = vpop.xlane.xlu0 %1666 }
 0x8bf   :  { %vm1688_vm12 = vcmp.lt.f32.partialorder %v1667_v15, %v1685_v25  ;;  %v1918_v25 = vld [vmem:[%s4581_s14 + $0xc0] sm:$0xff] }
 0x8c0   :  { %v1664_v53 = vpop.xlane.xlu1 %1663  ;;  %vm1691_vm0 = vmand %vm1688_vm12, %vm1212_vm5  ;;  %2844 = vmatpush3.msra.mxu0 %v1918_v25 }
 0x8c1   :  { %vm1687_vm9 = vcmp.lt.f32.partialorder %v1664_v53, %v1684_v3  ;;  %v4166_v34 = vsel %vm1691_vm0, 1.0, %v3018_v0  ;;  %2845 = vmatprep.subr.mxu0 %v3018_v0  ;;  %v1903_v3 = vld [vmem:[%s4581_s14 + $0x48] sm:$0xff]  ;;  %v1902_v53 = vld [vmem:[%s4581_s14 + $0x40] sm:$0xff] }
 0x8c2   :  { %vm1690_vm4 = vmand %vm1687_vm9, %vm1211_vm1  ;;  %v4173_v14 = vmul.f32 %v1711_v29, %v4166_v34  ;;  %v1661_v11 = vpop.xlane.xlu0 %1660  ;;  %vm4675_vm9 = vcmp.eq.f32.partialorder %v4053_v17, 0.0 }
 0x8c3   :  { %v1693_v62 = vsel %vm1690_vm4, 1.0, %v3018_v0  ;;  %vm1686_vm13 = vcmp.lt.f32.partialorder %v1661_v11, %v1683_v13  ;;  %v1915_v13 = vld [vmem:[%s4581_s14 + $0xa8] sm:$0xff]  ;;  %v1900_v11 = vld [vmem:[%s4581_s14 + $0x30] sm:$0xff] }
 0x8c4   :  { %v4176_v5 = vmul.f32 %v1710_v37, %v1693_v62  ;;  %vm1793_vm5 = vcmp.gt.f32.partialorder %v1693_v62, 0.0  ;;  %vm1689_vm12 = vmand %vm1686_vm13, %vm1210_vm10  ;;  %2821 = vmatpush3.msra.mxu1 %v4173_v14  ;;  %v4322_v29 = vpop.xlane.xlu1 %533  ;;  %v1914_v37 = vld [vmem:[%s4581_s14 + $0xa0] sm:$0xff] }
 0x8c5   :  { %v1692_v50 = vsel %vm1689_vm12, 1.0, %v3018_v0  ;;  %2822 = vmatprep.subr.mxu1 %v3018_v0  ;;  %vm1796_vm1 = vmand %vm612_vm14, %vm1793_vm5  ;;  %vm4676_vm14 = vcmp.eq.f32.partialorder %v4053_v17, 1.0  ;;  %vm4678_vm12 = vcmp.eq.f32.partialorder %v4047_v36, 2.0  ;;  %v1696_v36 = vsel %vm3359_vm3, %v1693_v62, 0.0  ;;  %v1913_v62 = vld [vmem:[%s4581_s14 + $0x98] sm:$0xff] }
 0x8c6   :  { %v4188_v28 = vmul.f32 %v1709_v52, %v1692_v50  ;;  %vm1792_vm0 = vcmp.gt.f32.partialorder %v1692_v50, 0.0  ;;  %v1799_v57 = vsel %vm1796_vm1, 1, %v3020_v24  ;;  %2823 = vmatpush3.msra.mxu1 %v4176_v5  ;;  %vm1829_vm10 = vmand %vm651_vm15, %vm1793_vm5  ;;  %vm4677_vm15 = vcmask 195584   ;;  %v1899_v52 = vld [vmem:[%s4581_s14 + $0x28] sm:$0xff] }
 0x8c7   :  { %1805 = vperm.xlu0 %2959, %v1799_v57   ;;  %2824 = vmatprep.subr.mxu1 %v3018_v0  ;;  %vm1795_vm4 = vmand %vm4675_vm9, %vm1792_vm0  ;;  %v1832_v56 = vsel %vm1829_vm10, 1, %v3020_v24  ;;  %vm1794_vm9 = vcmp.gt.f32.partialorder %v4166_v34, 0.0  ;;  %v1695_v35 = vsel %vm3350_vm2, %v1692_v50, 0.0  ;;  %vm4679_vm10 = vcmp.eq.f32.partialorder %v4092_v41, 1.0  ;;  %v1917_v41 = vld [vmem:[%s4581_s14 + $0xb8] sm:$0xff]  ;;  %v1912_v50 = vld [vmem:[%s4581_s14 + $0x90] sm:$0xff] }
 0x8c8   :  { %2825 = vmatpush3.msra.mxu1 %v4188_v28  ;;  %v1798_v2 = vsel %vm1795_vm4, 1, %v3020_v24  ;;  %vm1828_vm13 = vmand %vm4676_vm14, %vm1792_vm0  ;;  %2846 = vmatpush3.msra.mxu0 %v1917_v41  ;;  %v1898_v57 = vld [vmem:[%s4581_s14 + $0x20] sm:$0xff] }
 0x8c9   :  { %1802 = vperm.xlu1 %2960, %v1798_v2   ;;  %2827 = vmatmul.mubr.msk.f32.vlgmr.msra.gmra.mxu1 %vm4677_vm15, %v4207_v8  ;;  %vm1859_vm1 = vmand %vm4678_vm12, %vm1793_vm5  ;;  %v1831_v12 = vsel %vm1828_vm13, 1, %v3020_v24  ;;  %v628_v2 = vpop.permute.xlu1 %627 }
 0x8ca   :  { %2864 = vmatprep.subr.mxu1 %v3018_v0  ;;  %2896 = vmatprep.mubr.msk.f32.mxu1 %vm4650_vm8, %v3018_v0  ;;  %vm1858_vm4 = vmand %vm683_vm7, %vm1792_vm0  ;;  %v1862_v55 = vsel %vm1859_vm1, 1, %v3020_v24  ;;  %vm4682_vm0 = vnez %v4622_v19  ;;  %v1909_v19 = vld [vmem:[%s4581_s14 + $0x78] sm:$0xff]  ;;  %vm633_vm12 = vcmp.eq.s32.totalorder %v628_v2, 1 }
 0x8cb   :  { %1838 = vperm.xlu0 %2959, %v1832_v56   ;;  %vm1830_vm5 = vmand %vm4679_vm10, %vm1794_vm9  ;;  %v1861_v43 = vsel %vm1858_vm4, 1, %v3020_v24  ;;  %v1697_v18 = vsel %vm4682_vm0, %v4166_v34, 0.0  ;;  %2865 = vmatpush3.msra.mxu1 %v1909_v19  ;;  %v1901_v34 = vld [vmem:[%s4581_s14 + $0x38] sm:$0xff] }
 0x8cc   :  { %vm4680_vm14 = vmmov %vm4677_vm15  ;;  %v1833_v16 = vsel %vm1830_vm5, 1, %v3020_v24  ;;  %2866 = vmatprep.subr.mxu1 %v3018_v0  ;;  %2847 = vmatprep.subr.mxu0 %v3018_v0  ;;  %v1897_v56 = vld [vmem:[%s4581_s14 + $0x18] sm:$0xff] }
 0x8cd   :  { %1835 = vperm.xlu1 %2960, %v1831_v12   ;;  %v1698_v38 = vsel %vm4680_vm14, %v1695_v35, 0.0  ;;  %vm1797_vm2 = vmand %vm613_vm6, %vm1794_vm9  ;;  %2867 = vmatpush3.msra.mxu1 %v1908_v7  ;;  %vm4684_vm6 = vcmask 190464   ;;  %v1910_v12 = vld [vmem:[%s4581_s14 + $0x80] sm:$0xff]  ;;  %v1896_v35 = vld [vmem:[%s4581_s14 + $0x10] sm:$0xff] }
 0x8ce   :  { %vm4681_vm7 = vmmov %vm4680_vm14  ;;  %v1800_v42 = vsel %vm1797_vm2, 1, %v3020_v24  ;;  %2868 = vmatprep.subr.mxu1 %v3018_v0 }
 0x8cf   :  { %1868 = vperm.xlu0 %2959, %v1862_v55   ;;  %v1699_v17 = vsel %vm4681_vm7, %v1696_v36, 0.0  ;;  %vm4683_vm3 = vmmov %vm4681_vm7  ;;  %2869 = vmatpush3.msra.mxu1 %v1907_v46  ;;  %v1895_v55 = vld [vmem:[%s4581_s14 + $0x8] sm:$0xff]  ;;  %v661_v36 = vpop.permute.xlu1 %660 }
 0x8d0   :  { %v1700_v39 = vadd.f32 %v1699_v17, %v1698_v38  ;;  %v1701_v40 = vsel %vm4683_vm3, %v1697_v18, 0.0  ;;  %2870 = vmatprep.subr.mxu1 %v3018_v0  ;;  %vm1860_vm13 = vmand %vm685_vm11, %vm1794_vm9  ;;  %vm668_vm1 = vcmp.eq.s32.totalorder %v661_v36, 1 }
 0x8d1   :  { %1865 = vperm.xlu1 %2960, %v1861_v43   ;;  %2871 = vmatpush3.msra.mxu1 %v1906_v44  ;;  %v1863_v15 = vsel %vm1860_vm13, 1, %v3020_v24  ;;  %v1916_v24 = vld [vmem:[%s4581_s14 + $0xb0] sm:$0xff]  ;;  %v1894_v43 = vld [vmem:[%s4581_s14] sm:$0xff] }
 0x8d2   :  { %v1702_v47 = vadd.f32 %v1701_v40, %v1700_v39  ;;  %2872 = vmatprep.subr.mxu1 %v3018_v0  ;;  %2848 = vmatpush3.msra.mxu0 %v1916_v24  ;;  %v4382_v39 = vpop.xlane.xlu0 %1135 }
 0x8d3   :  { %1841 = vperm.xlu0 %2959, %v1833_v16   ;;  %2873 = vmatpush3.msra.mxu1 %v1905_v23  ;;  %v664_v38 = vpop.permute.xlu1 %663 }
 0x8d4   :  { %v1703_v21 = vrot.slane %v1702_v47, 4  ;;  %2874 = vmatprep.subr.mxu1 %v3018_v0  ;;  %2849 = vmatprep.subr.mxu0 %v3018_v0  ;;  %vm669_vm15 = vcmp.eq.s32.totalorder %v664_v38, 1 }
 0x8d5   :  { %1808 = vperm.xlu1 %2960, %v1800_v42   ;;  %2875 = vmatpush3.msra.mxu1 %v1904_v10 }
 0x8d6   :  { %v1704_v59 = vadd.f32 %v1703_v21, %v1702_v47  ;;  %2876 = vmatprep.subr.mxu1 %v3018_v0  ;;  %2850 = vmatpush3.msra.mxu0 %v1915_v13  ;;  %v625_v42 = vpop.permute.xlu0 %624 }
 0x8d7   :  { %2877 = vmatpush3.msra.mxu1 %v1903_v3  ;;  %2851 = vmatprep.subr.mxu0 %v3018_v0  ;;  %v1221_v16 = vpop.permute.xlu1 %1220  ;;  %vm632_vm11 = vcmp.eq.s32.totalorder %v625_v42, 1 }
 0x8d8   :  { %v1705_v60 = vrot.slane %v1704_v59, 2  ;;  %2878 = vmatprep.subr.mxu1 %v3018_v0  ;;  %2852 = vmatpush3.msra.mxu0 %v1914_v37  ;;  %vm1228_vm14 = vcmp.eq.s32.totalorder %v1221_v16, 1 }
 0x8d9   :  { %2879 = vmatpush3.msra.mxu1 %v1902_v53  ;;  %2853 = vmatprep.subr.mxu0 %v3018_v0  ;;  %v1231_v24 = vsel %vm1228_vm14, %v3787_v48, -1e+30 }
 0x8da   :  { %v1706_v33 = vadd.f32 %v1705_v60, %v1704_v59  ;;  %2880 = vmatprep.subr.mxu1 %v3018_v0  ;;  %2854 = vmatpush3.msra.mxu0 %v1913_v62  ;;  %v697_v47 = vpop.permute.xlu0 %696 }
 0x8db   :  { %2881 = vmatpush3.msra.mxu1 %v1901_v34  ;;  %2855 = vmatprep.subr.mxu0 %v3018_v0  ;;  %v1224_v17 = vpop.permute.xlu1 %1223  ;;  %vm702_vm9 = vcmp.eq.s32.totalorder %v697_v47, 1 }
 0x8dc   :  { %v1707_v63 = vrot.slane %v1706_v33, 1  ;;  %2882 = vmatprep.subr.mxu1 %v3018_v0  ;;  %2856 = vmatpush3.msra.mxu0 %v1912_v50  ;;  %vm1229_vm4 = vcmp.eq.s32.totalorder %v1224_v17, 1  ;;  %v705_v10 = vsel %vm702_vm9, %v3471_v6, -1e+30 }
 0x8dd   :  { %2883 = vmatpush3.msra.mxu1 %v1900_v11  ;;  %2857 = vmatprep.subr.mxu0 %v3018_v0 }
 0x8de   :  { %v1708_v4 = vadd.f32 %v1707_v63, %v1706_v33  ;;  %2884 = vmatprep.subr.mxu1 %v3018_v0  ;;  %v1287_v51 = vpop.permute.xlu0 %1286  ;;  %v635_v33 = vsel %vm632_vm11, %v3481_v1, -1e+30  ;;  %v672_v63 = vsel %vm669_vm15, %v3471_v6, -1e+30 }
 0x8df   :  { %2885 = vmatpush3.msra.mxu1 %v1899_v52  ;;  %v1254_v18 = vpop.permute.xlu1 %1253  ;;  %vm1292_vm2 = vcmp.eq.s32.totalorder %v1287_v51, 1 }
 0x8e0   :  { %v1715_v9 = vmul.f32 %v4207_v8, %v1708_v4  ;;  %2886 = vmatprep.subr.mxu1 %v3018_v0  ;;  %v1911_v8 = vld [vmem:[%s4581_s14 + $0x88] sm:$0xff]  ;;  %v636_v4 = vsel %vm633_vm12, %v3471_v6, -1e+30  ;;  %vm1261_vm7 = vcmp.eq.s32.totalorder %v1254_v18, 1  ;;  %v1295_v53 = vsel %vm1292_vm2, %v3778_v54, -1e+30 }
 0x8e1   :  { %2887 = vmatpush3.msra.mxu1 %v1898_v57  ;;  %2858 = vmatpush3.msra.mxu0 %v1911_v8  ;;  %v1264_v6 = vsel %vm1261_vm7, %v3787_v48, -1e+30 }
 0x8e2   :  { %v1716_v20 = vsel %vm4684_vm6, %v1715_v9, 0.0  ;;  %2888 = vmatprep.subr.mxu1 %v3018_v0  ;;  %2859 = vmatprep.subr.mxu0 %v3018_v0  ;;  %v667_v19 = vpop.permute.xlu0 %666  ;;  %v671_v9 = vsel %vm668_vm1, %v3481_v1, -1e+30 }
 0x8e3   :  { %2889 = vmatpush3.msra.mxu1 %v1897_v56  ;;  %2860 = vmatpush3.msra.mxu0 %v1910_v12  ;;  %v1257_v40 = vpop.permute.xlu1 %1256  ;;  %vm670_vm10 = vcmp.eq.s32.totalorder %v667_v19, 1  ;;  %v674_v25 = vmax.f32 %v671_v9, %v672_v63 }
 0x8e4   :  { %2890 = vmatprep.subr.mxu1 %v3018_v0  ;;  %2899 = vmatprep.subr.mxu0 %v3018_v0  ;;  %vm1262_vm5 = vcmp.eq.s32.totalorder %v1257_v40, 1  ;;  %v673_v41 = vsel %vm670_vm10, %v3467_v58, -1e+30 }
 0x8e5   :  { %2891 = vmatpush3.msra.mxu1 %v1896_v35  ;;  %v1265_v3 = vsel %vm1262_vm5, %v3778_v54, -1e+30  ;;  %v675_v11 = vmax.f32 %v674_v25, %v673_v41 }
 0x8e6   :  { %2892 = vmatprep.subr.mxu1 %v3018_v0  ;;  %v1260_v26 = vpop.permute.xlu0 %1259  ;;  %v1267_v62 = vmax.f32 %v1264_v6, %v1265_v3 }
 0x8e7   :  { %2893 = vmatpush3.msra.mxu1 %v1895_v55  ;;  %v694_v49 = vpop.permute.xlu1 %693  ;;  %vm1263_vm6 = vcmp.eq.s32.totalorder %v1260_v26, 1  ;;  %v676_v19 = vrot.slane %v675_v11, 4 }
 0x8e8   :  { %2894 = vmatprep.subr.mxu1 %v3018_v0  ;;  %vm701_vm0 = vcmp.eq.s32.totalorder %v694_v49, 1  ;;  %v1266_v52 = vsel %vm1263_vm6, %v3774_v27, -1e+30  ;;  %vm1242_vm6 = vcmp.gt.f32.partialorder %v4382_v39, 0.0 }
 0x8e9   :  { %2895 = vmatpush3.msra.mxu1 %v1894_v43  ;;  %v704_v34 = vsel %vm701_vm0, %v3481_v1, -1e+30  ;;  %v1268_v43 = vmax.f32 %v1267_v62, %v1266_v52 }
 0x8ea   :  { %2934 = vmatprep.subr.mxu1 %v3018_v0  ;;  %v4384_v32 = vpop.permute.xlu0 %1289  ;;  %v707_v56 = vmax.f32 %v704_v34, %v705_v10 }
 0x8eb   :  { %v1284_v21 = vpop.permute.xlu1 %1283  ;;  %vm1293_vm9 = vcmp.eq.s32.totalorder %v4384_v32, 1 }
 0x8ec   :  { %vm1291_vm11 = vcmp.eq.s32.totalorder %v1284_v21, 1  ;;  %v1296_v38 = vsel %vm1293_vm9, %v3774_v27, -1e+30  ;;  %v608_v21 = vmax.f32 %v4322_v29, 1.0 }
 0x8ed   :  { %v1294_v8 = vsel %vm1291_vm11, %v3787_v48, -1e+30  ;;  %vm718_vm11 = vcmask 1041408  }
 0x8ee   :  { %v1297_v35 = vmax.f32 %v1294_v8, %v1295_v53 }
 0x8ef   :  { %v631_v7 = vpop.permute.xlu1 %630 }
 0x8f0   :  { %vm634_vm3 = vcmp.eq.s32.totalorder %v631_v7, 1  ;;  %v1298_v7 = vmax.f32 %v1297_v35, %v1296_v38 }
 0x8f1   :  { %v637_v37 = vsel %vm634_vm3, %v3467_v58, -1e+30  ;;  %vm646_vm3 = vcmp.gt.f32.partialorder %v4322_v29, 0.0 }
 0x8f3   :  { %v1227_v46 = vpop.permute.xlu1 %1226 }
 0x8f4   :  { %vm1230_vm13 = vcmp.eq.s32.totalorder %v1227_v46, 1  ;;  %v1269_v46 = vrot.slane %v1268_v43, 4 }
 0x8f5   :  { %v1233_v50 = vsel %vm1230_vm13, %v3774_v27, -1e+30  ;;  %vm716_vm13 = vcmask 1040384  }
 0x8f7   :  { %v700_v59 = vpop.permute.xlu1 %699 }
 0x8f8   :  { %vm703_vm15 = vcmp.eq.s32.totalorder %v700_v59, 1 }
 0x8f9   :  { %1717 = vadd.xlane.f32.xlu1 %v1716_v20  ;;  %v638_v20 = vmax.f32 %v635_v33, %v636_v4  ;;  %v1270_v33 = vmax.f32 %v1268_v43, %v1269_v46 }
 0x8fb   :  { %v639_v1 = vmax.f32 %v638_v20, %v637_v37  ;;  %v1271_v41 = vrot.slane %v1270_v33, 2 }
 0x8fd   :  { %v640_v40 = vrot.slane %v639_v1, 4 }
 0x8ff   :  { %v641_v59 = vmax.f32 %v639_v1, %v640_v40 }
 0x901   :  { %v642_v9 = vrot.slane %v641_v59, 2 }
 0x903   :  { %v643_v6 = vmax.f32 %v641_v59, %v642_v9 }
 0x90a   :  { %1871 = vperm.xlu1 %2960, %v1863_v15   ;;  %v1232_v15 = vsel %vm1229_vm4, %v3778_v54, -1e+30  ;;  %v706_v54 = vsel %vm703_vm15, %v3467_v58, -1e+30  ;;  %v1207_v58 = vmax.f32 %v4382_v39, 1.0  ;;  %v2089_v39 = vld [vmem:[%s4583_s16 + $0x70] sm:$0xff] }
 0x90b   :  { %v1234_v13 = vmax.f32 %v1231_v24, %v1232_v15  ;;  %v708_v55 = vmax.f32 %v707_v56, %v706_v54  ;;  %v644_v56 = vrot.slane %v643_v6, 1 }
 0x90c   :  { %2979 = vrcp.f32 %v1207_v58 }
 0x90d   :  { %v1235_v12 = vmax.f32 %v1234_v13, %v1233_v50  ;;  %v709_v26 = vrot.slane %v708_v55, 4  ;;  %2981 = vrcp.f32 %v608_v21  ;;  %v1272_v50 = vmax.f32 %v1270_v33, %v1271_v41 }
 0x90f   :  { %v1236_v47 = vrot.slane %v1235_v12, 4  ;;  %v1273_v43 = vrot.slane %v1272_v50, 1 }
 0x942   :  { %v4386_v44 = vpop.permute.xlu0 %1805 }
 0x943   :  { %vm1811_vm4 = vcmp.eq.s32.totalorder %v4386_v44, 1  ;;  %v1237_v44 = vmax.f32 %v1235_v12, %v1236_v47  ;;  %v2980_v12 = vpop.eup %2979 }
 0x944   :  { %v1803_v30 = vpop.permute.xlu1 %1802  ;;  %v1814_v16 = vsel %vm1811_vm4, %v4176_v5, -1e+30  ;;  %v1209_v40 = vmul.f32 %v2980_v12, %v3958_v31  ;;  %v2078_v12 = vld [vmem:[%s4583_s16 + $0x18] sm:$0xff] }
 0x945   :  { %vm1810_vm12 = vcmp.eq.s32.totalorder %v1803_v30, 1  ;;  %v677_v30 = vmax.f32 %v675_v11, %v676_v19  ;;  %v1238_v20 = vrot.slane %v1237_v44, 2  ;;  %v1274_v19 = vmax.f32 %v1272_v50, %v1273_v43  ;;  %v2087_v50 = vld [vmem:[%s4583_s16 + $0x60] sm:$0xff] }
 0x946   :  { %v4388_v45 = vpop.permute.xlu0 %1838  ;;  %v1813_v36 = vsel %vm1810_vm12, %v4188_v28, -1e+30  ;;  %v2173_v43 = vld [vmem:[%s4585_s18 + $0x20] sm:$0xff]  ;;  %vm2258_vm12 = vcmask 10240  }
 0x947   :  { %vm1844_vm10 = vcmp.eq.s32.totalorder %v4388_v45, 1  ;;  %v1816_v49 = vmax.f32 %v1813_v36, %v1814_v16  ;;  %v1299_v45 = vrot.slane %v1298_v7, 4  ;;  %v678_v25 = vrot.slane %v677_v30, 2 }
 0x948   :  { %v1836_v60 = vpop.permute.xlu1 %1835  ;;  %v1847_v17 = vsel %vm1844_vm10, %v4176_v5, -1e+30  ;;  %v1239_v34 = vmax.f32 %v1237_v44, %v1238_v20  ;;  %v1275_v29 = vsel %vm1242_vm6, %v1274_v19, 0.0  ;;  %v2304_v19 = vld [vmem:[%s4584_s17] ss:$0 sm:$0xff] }
 0x949   :  { %vm1843_vm1 = vcmp.eq.s32.totalorder %v1836_v60, 1  ;;  %v710_v60 = vmax.f32 %v708_v55, %v709_v26  ;;  %v1300_v10 = vmax.f32 %v1298_v7, %v1299_v45  ;;  %v679_v11 = vmax.f32 %v677_v30, %v678_v25 }
 0x94a   :  { %v4394_v22 = vpop.permute.xlu0 %1868  ;;  %v1846_v48 = vsel %vm1843_vm1, %v4188_v28, -1e+30 }
 0x94b   :  { %v1849_v51 = vmax.f32 %v1846_v48, %v1847_v17  ;;  %v711_v15 = vrot.slane %v710_v60, 2  ;;  %vm1874_vm7 = vcmp.eq.s32.totalorder %v4394_v22, 1  ;;  %v1301_v62 = vrot.slane %v1300_v10, 2  ;;  %v2982_v48 = vpop.eup %2981 }
 0x94c   :  { %v4396_v23 = vpop.permute.xlu1 %1865  ;;  %v1240_v22 = vrot.slane %v1239_v34, 1  ;;  %v680_v58 = vrot.slane %v679_v11, 1 }
 0x94d   :  { %vm1873_vm2 = vcmp.eq.s32.totalorder %v4396_v23, 1  ;;  %v712_v52 = vmax.f32 %v710_v60, %v711_v15  ;;  %v1877_v23 = vsel %vm1874_vm7, %v4176_v5, -1e+30  ;;  %v1302_v35 = vmax.f32 %v1300_v10, %v1301_v62 }
 0x94e   :  { %v1842_v57 = vpop.permute.xlu0 %1841  ;;  %v1876_v37 = vsel %vm1873_vm2, %v4188_v28, -1e+30  ;;  %v681_v21 = vmax.f32 %v679_v11, %v680_v58  ;;  %v2174_v58 = vld [vmem:[%s4585_s18 + $0x28] sm:$0xff] }
 0x94f   :  { %vm1845_vm5 = vcmp.eq.s32.totalorder %v1842_v57, 1  ;;  %v1879_v54 = vmax.f32 %v1876_v37, %v1877_v23  ;;  %v713_v55 = vrot.slane %v712_v52, 1  ;;  %v1303_v47 = vrot.slane %v1302_v35, 1  ;;  %v2086_v23 = vld [vmem:[%s4583_s16 + $0x58] sm:$0xff] }
 0x950   :  { %v1809_v2 = vpop.permute.xlu1 %1808  ;;  %v1848_v18 = vsel %vm1845_vm5, %v4173_v14, -1e+30  ;;  %v682_v45 = vsel %vm646_vm3, %v681_v21, 0.0  ;;  %v2169_v21 = vld [vmem:[%s4585_s18] sm:$0xff] }
 0x951   :  { %vm1812_vm14 = vcmp.eq.s32.totalorder %v1809_v2, 1  ;;  %v1850_v32 = vmax.f32 %v1849_v51, %v1848_v18  ;;  %v645_v18 = vmax.f32 %v643_v6, %v644_v56  ;;  %v1304_v59 = vmax.f32 %v1302_v35, %v1303_v47  ;;  %v2081_v56 = vld [vmem:[%s4583_s16 + $0x30] sm:$0xff] }
 0x952   :  { %v1815_v42 = vsel %vm1812_vm14, %v4173_v14, -1e+30  ;;  %v2077_v35 = vld [vmem:[%s4583_s16 + $0x10] sm:$0xff] }
 0x953   :  { %v1817_v27 = vmax.f32 %v1816_v49, %v1815_v42  ;;  %v1851_v63 = vrot.slane %v1850_v32, 4  ;;  %v1241_v42 = vmax.f32 %v1239_v34, %v1240_v22  ;;  %v714_v49 = vmax.f32 %v712_v52, %v713_v55  ;;  %v2080_v22 = vld [vmem:[%s4583_s16 + $0x28] sm:$0xff] }
 0x954   :  { %v1305_v41 = vsel %vm1242_vm6, %v1304_v59, 0.0  ;;  %v2076_v55 = vld [vmem:[%s4583_s16 + $0x8] sm:$0xff] }
 0x955   :  { %v1818_v4 = vrot.slane %v1817_v27, 4  ;;  %v1852_v3 = vmax.f32 %v1850_v32, %v1851_v63  ;;  %v649_v32 = vsel %vm646_vm3, %v645_v18, 0.0  ;;  %v715_v44 = vsel %vm646_vm3, %v714_v49, 0.0  ;;  %v2303_v18 = vld [vmem:[%s4582_s15] ss:$0 sm:$0xff] }
 0x956   :  { %v717_v63 = vsel %vm716_vm13, %v649_v32, %v682_v45 }
 0x957   :  { %v1819_v24 = vmax.f32 %v1817_v27, %v1818_v4  ;;  %v1853_v57 = vrot.slane %v1852_v3, 2  ;;  %v1245_v27 = vsel %vm1242_vm6, %v1241_v42, 0.0  ;;  %v719_v15 = vsel %vm718_vm11, %v717_v63, %v715_v44 }
 0x958   :  { %v1306_v4 = vsel %vm716_vm13, %v1245_v27, %v1275_v29  ;;  %v2305_v27 = vld [vmem:[%s4586_s19] ss:$0 sm:$0xff] }
 0x959   :  { %v1820_v2 = vrot.slane %v1819_v24, 2  ;;  %v1854_v38 = vmax.f32 %v1852_v3, %v1853_v57  ;;  %v1307_v6 = vsel %vm718_vm11, %v1306_v4, %v1305_v41  ;;  %v2085_v57 = vld [vmem:[%s4583_s16 + $0x50] sm:$0xff] }
 0x95a   :  { %v1890_v11 = vadd.f32 %v1307_v6, %v719_v15 }
 0x95b   :  { %v1821_v16 = vmax.f32 %v1819_v24, %v1820_v2  ;;  %v1855_v26 = vrot.slane %v1854_v38, 1  ;;  %v2084_v2 = vld [vmem:[%s4583_s16 + $0x48] sm:$0xff] }
 0x95d   :  { %v1822_v7 = vrot.slane %v1821_v16, 1  ;;  %v1856_v33 = vmax.f32 %v1854_v38, %v1855_v26  ;;  %v2172_v38 = vld [vmem:[%s4585_s18 + $0x18] sm:$0xff] }
 0x95f   :  { %v1823_v60 = vmax.f32 %v1821_v16, %v1822_v7 }
 0x982   :  { %v4424_v53 = vpop.xlane.xlu1 %1717 }
 0x983   :  { %v1789_v13 = vmax.f32 %v4424_v53, 1.0  ;;  %vm1824_vm15 = vcmp.gt.f32.partialorder %v4424_v53, 0.0  ;;  %v2088_v53 = vld [vmem:[%s4583_s16 + $0x68] sm:$0xff] }
 0x984   :  { %v1827_v25 = vsel %vm1824_vm15, %v1823_v60, 0.0  ;;  %v1857_v10 = vsel %vm1824_vm15, %v1856_v33, 0.0 }
 0x985   :  { %2983 = vrcp.f32 %v1789_v13  ;;  %v2090_v13 = vld [vmem:[%s4583_s16 + $0x78] sm:$0xff]  ;;  %v1888_v34 = vsel %vm716_vm13, %v1827_v25, %v1857_v10 }
 0x986   :  { %v1872_v8 = vpop.permute.xlu1 %1871 }
 0x987   :  { %vm1875_vm0 = vcmp.eq.s32.totalorder %v1872_v8, 1  ;;  %v2083_v8 = vld [vmem:[%s4583_s16 + $0x40] sm:$0xff] }
 0x988   :  { %v1878_v1 = vsel %vm1875_vm0, %v4173_v14, -1e+30  ;;  %v610_v14 = vmul.f32 %v2982_v48, %v3666_v61  ;;  %v2075_v48 = vld [vmem:[%s4583_s16] sm:$0xff] }
 0x989   :  { %v1880_v28 = vmax.f32 %v1879_v54, %v1878_v1  ;;  %v1785_v36 = vpop.f32.mrf.mxu1  ;;  %v2082_v54 = vld [vmem:[%s4583_s16 + $0x38] sm:$0xff]  ;;  %v2079_v1 = vld [vmem:[%s4583_s16 + $0x20] sm:$0xff] }
 0x98a   :  { %v1892_v31 = vadd.f32 %v1209_v40, %v610_v14  ;;  %v2170_v14 = vld [vmem:[%s4585_s18 + $0x8] sm:$0xff] }
 0x98b   :  { %v1881_v5 = vrot.slane %v1880_v28, 4  ;;  %v2828_v17 = vpop.f32.mrf.mxu1 }
 0x98d   :  { %v1882_v51 = vmax.f32 %v1880_v28, %v1881_v5  ;;  %v2176_v28 = vld [vmem:[%s4585_s18 + $0x38] sm:$0xff] }
 0x98f   :  { %v1883_v46 = vrot.slane %v1882_v51, 2 }
 0x991   :  { %v1884_v61 = vmax.f32 %v1882_v51, %v1883_v46  ;;  %v2171_v51 = vld [vmem:[%s4585_s18 + $0x10] sm:$0xff] }
 0x992   :  { %v2984_v30 = vpop.eup %2983 }
 0x993   :  { %v1885_v9 = vrot.slane %v1884_v61, 1  ;;  %v1791_v20 = vmul.f32 %v2984_v30, %v1785_v36  ;;  %v2175_v36 = vld [vmem:[%s4585_s18 + $0x30] sm:$0xff] }
 0x995   :  { %v1886_v3 = vmax.f32 %v1884_v61, %v1885_v9  ;;  %v1893_v24 = vadd.f32 %v1892_v31, %v1791_v20 }
 0x997   :  { %v1887_v37 = vsel %vm1824_vm15, %v1886_v3, 0.0  ;;  %2862 = vmatmul.mubr.f32.vlgmr.msra.gmra.mxu0 %v1893_v24 }
 0x998   :  { %v1889_v62 = vsel %vm718_vm11, %v1888_v34, %v1887_v37  ;;  %2900 = vmatpush3.msra.mxu0 %v2090_v13  ;;  %2931 = vmatprep.mubr.msk.f32.mxu0 %vm4650_vm8, %v3018_v0 }
 0x999   :  { %v1891_v52 = vadd.f32 %v1890_v11, %v1889_v62  ;;  %2901 = vmatprep.subr.mxu0 %v3018_v0 }
 0x99a   :  { %2902 = vmatpush3.msra.mxu0 %v2089_v39 }
 0x99b   :  { %2897 = vmatmul.mubr.f32.vlgmr.msra.gmra.mxu1 %v1891_v52  ;;  %2903 = vmatprep.subr.mxu0 %v3018_v0 }
 0x99c   :  { %2904 = vmatpush3.msra.mxu0 %v2088_v53  ;;  %2950 = vmatprep.mubr.msk.f32.mxu1 %vm4650_vm8, %v3018_v0  ;;  %vm2184_vm8 = vcmask 523264  }
 0x99d   :  { %2905 = vmatprep.subr.mxu0 %v3018_v0  ;;  %2935 = vmatpush3.msra.mxu1 %v2176_v28 }
 0x99e   :  { %2906 = vmatpush3.msra.mxu0 %v2087_v50  ;;  %2936 = vmatprep.subr.mxu1 %v3018_v0 }
 0x99f   :  { %2907 = vmatprep.subr.mxu0 %v3018_v0  ;;  %2937 = vmatpush3.msra.mxu1 %v2175_v36 }
 0x9a0   :  { %2908 = vmatpush3.msra.mxu0 %v2086_v23  ;;  %2938 = vmatprep.subr.mxu1 %v3018_v0 }
 0x9a1   :  { %2909 = vmatprep.subr.mxu0 %v3018_v0  ;;  %2939 = vmatpush3.msra.mxu1 %v2174_v58 }
 0x9a2   :  { %2910 = vmatpush3.msra.mxu0 %v2085_v57  ;;  %2940 = vmatprep.subr.mxu1 %v3018_v0 }
 0x9a3   :  { %2911 = vmatprep.subr.mxu0 %v3018_v0  ;;  %2941 = vmatpush3.msra.mxu1 %v2173_v43 }
 0x9a4   :  { %2912 = vmatpush3.msra.mxu0 %v2084_v2  ;;  %2942 = vmatprep.subr.mxu1 %v3018_v0 }
 0x9a5   :  { %2913 = vmatprep.subr.mxu0 %v3018_v0  ;;  %2943 = vmatpush3.msra.mxu1 %v2172_v38 }
 0x9a6   :  { %2914 = vmatpush3.msra.mxu0 %v2083_v8  ;;  %2944 = vmatprep.subr.mxu1 %v3018_v0 }
 0x9a7   :  { %2915 = vmatprep.subr.mxu0 %v3018_v0  ;;  %2945 = vmatpush3.msra.mxu1 %v2171_v51 }
 0x9a8   :  { %2916 = vmatpush3.msra.mxu0 %v2082_v54  ;;  %2946 = vmatprep.subr.mxu1 %v3018_v0 }
 0x9a9   :  { %2917 = vmatprep.subr.mxu0 %v3018_v0  ;;  %2947 = vmatpush3.msra.mxu1 %v2170_v14 }
 0x9aa   :  { %2918 = vmatpush3.msra.mxu0 %v2081_v56  ;;  %2948 = vmatprep.subr.mxu1 %v3018_v0 }
 0x9ab   :  { %2919 = vmatprep.subr.mxu0 %v3018_v0  ;;  %2949 = vmatpush3.msra.mxu1 %v2169_v21 }
 0x9ac   :  { %2920 = vmatpush3.msra.mxu0 %v2080_v22 }
 0x9ad   :  { %2921 = vmatprep.subr.mxu0 %v3018_v0 }
 0x9ae   :  { %2922 = vmatpush3.msra.mxu0 %v2079_v1 }
 0x9af   :  { %2923 = vmatprep.subr.mxu0 %v3018_v0 }
 0x9b0   :  { %2924 = vmatpush3.msra.mxu0 %v2078_v12 }
 0x9b1   :  { %2925 = vmatprep.subr.mxu0 %v3018_v0 }
 0x9b2   :  { %2926 = vmatpush3.msra.mxu0 %v2077_v35 }
 0x9b3   :  { %2927 = vmatprep.subr.mxu0 %v3018_v0 }
 0x9b4   :  { %2928 = vmatpush3.msra.mxu0 %v2076_v55 }
 0x9b5   :  { %2929 = vmatprep.subr.mxu0 %v3018_v0 }
 0x9b6   :  { %2930 = vmatpush3.msra.mxu0 %v2075_v48 }
 0xa57   :  { %v1992_v16 = vpop.f32.mrf.mxu0 }
 0xa59   :  { %v2863_v5 = vpop.f32.mrf.mxu0 }
 0xa5b   :  { %v2062_v17 = vpop.f32.mrf.mxu1 }
 0xa5c   :  { %v2063_v42 = vadd.f32 %v2062_v17, %v1992_v16 }
 0xa5d   :  { %v2898_v40 = vpop.f32.mrf.mxu1 }
 0xa5e   :  { %v2073_v47 = vadd.f32 %v2303_v18, %v2063_v42 }
 0xa60   :  { %v2074_v49 = vmax.f32 %v2073_v47, 0.0 }
 0xa62   :  { %2932 = vmatmul.mubr.f32.vlgmr.msra.gmra.mxu0 %v2074_v49 }
 0xb22   :  { %v2164_v7 = vpop.f32.mrf.mxu0 }
 0xb23   :  { %v2165_v26 = vadd.f32 %v2304_v19, %v2164_v7 }
 0xb24   :  { %v2933_v46 = vpop.f32.mrf.mxu0 }
 0xb25   :  { %v2168_v32 = vmax.f32 %v2165_v26, 0.0 }
 0xb27   :  { %2951 = vmatmul.mubr.msk.f32.vlgmr.msra.gmra.mxu1 %vm2184_vm8, %v2168_v32 }
 0xbe7   :  { %v2254_v31 = vpop.f32.mrf.mxu1 }
 0xbe8   :  { %v2255_v59 = vadd.f32 %v2305_v27, %v2254_v31 }
 0xbe9   :  { %v2952_v44 = vpop.f32.mrf.mxu1 }
 0xbea   :  { %v2259_v0 = vsel %vm2258_vm12, %v2255_v59, -inf }
 0xbeb   :  { %2260 = vmax.xlane.f32.xlu0 %v2259_v0 }
 0xc74   :  { %v2261_v61 = vpop.xlane.xlu0 %2260 }
 0xc75   :  { %v2262_v30 = vsub.f32 %v2255_v59, %v2261_v61 }
 0xc77   :  { %v2263_v45 = vmul.f32 1.442695, %v2262_v30 }
 0xc79   :  { %2985 = vpow2.f32 %v2263_v45 }
 0xc86   :  { %v2986_v29 = vpop.eup %2985 }
 0xc87   :  { %v2265_v60 = vsel %vm2258_vm12, %v2986_v29, 0.0 }
 0xc88   :  { %2266 = vadd.xlane.f32.xlu1 %v2265_v60 }
 0xd11   :  { %v2267_v33 = vpop.xlane.xlu1 %2266 }
 0xd12   :  { %2987 = vrcp.f32 %v2267_v33 }
 0xd1f   :  { %v2988_v63 = vpop.eup %2987 }
 0xd20   :  { %v2269_v4 = vmul.f32 %v2988_v63, %v2986_v29 }
 0xd22   :  { %2270 = vst.msk [vmem:[%s4587_s20] sm:$0x7] %vm2258_vm12, %v2269_v4 }
 0xd23   :  { %2275 = vsyncpa [#allocation3], 1 }

</bundles_post_ra>
